<compile_context>
chip_gen: v7x
topology: tpu7x:2x2x1
jax: 0.10.0
libtpu: 0.0.40
codegen_flags: <defaults>
</compile_context>

<pallas_src>
import math

import jax
import jax.numpy as jnp
from jax.experimental import pallas as pl
from jax.experimental.pallas import tpu as pltpu

INPUT_DIM = 512
EMBED_DIM = 256
HIDDEN_DIM = 512
NUM_HEADS = 8
HEAD_DIM = EMBED_DIM // NUM_HEADS            # 32
NUM_LAYERS = 2
NUM_AGE, NUM_GENDER, NUM_RACE = 9, 2, 7
TOTAL_LOGITS = NUM_AGE + NUM_GENDER + NUM_RACE   # 18
HEAD_PAD = 128                               # lane-dense fused head output width
HALF = EMBED_DIM // 2                        # 128
BIAS_W = HIDDEN_DIM                          # widest bias row (512)
LN_EPS = 1e-5


def _layernorm(x, gamma, beta):
    mu = jnp.mean(x, axis=-1, keepdims=True)
    var = jnp.mean((x - mu) ** 2, axis=-1, keepdims=True)
    return (x - mu) * jax.lax.rsqrt(var + LN_EPS) * gamma + beta


def _forward_math(x, w_in, w_qkv, b_qkv, w_out, w_ff1, w_ff2, w_h1, w_h2,
                  bias, recip):
    """Forward math written against indexable Refs OR plain jnp arrays."""
    E, H, NH, Dh = EMBED_DIM, HIDDEN_DIM, NUM_HEADS, HEAD_DIM
    bf = jnp.bfloat16

    xv = x[...]                                   # (B, INPUT_DIM) f32
    B = xv.shape[0]
    biasv = bias[...]                             # (17, BIAS_W) f32

    def brow(r, w):
        return biasv[r:r + 1, 0:w]                # (1, w)

    # input projection (bf16 weights, f32 accumulate)
    h = jnp.dot(xv.astype(bf), w_in[...],
                preferred_element_type=jnp.float32) + brow(0, E)

    scale = 1.0 / math.sqrt(Dh)
    for l in range(NUM_LAYERS):
        base = 1 + 7 * l
        h_bf = h.astype(bf)

        # fused q/k/v: one head-leading batched matmul over 3*NH "heads"
        hb = jnp.broadcast_to(h_bf, (3 * NH, B, E))            # (3*NH, B, E)
        qkv = jnp.einsum('hbe,hde->hbd', hb, w_qkv[l],
                         preferred_element_type=jnp.float32) + b_qkv[l]
        q = qkv[0 * NH:1 * NH]                                  # (NH, B, Dh)
        k = qkv[1 * NH:2 * NH]
        v = qkv[2 * NH:3 * NH]

        # scaled dot-product attention over the B rows (f32 math)
        s = jnp.einsum('hqd,hkd->hqk', q, k,
                       preferred_element_type=jnp.float32) * scale
        s = s - jnp.max(s, axis=-1, keepdims=True)
        p = jnp.exp(s)
        p = p * recip(jnp.sum(p, axis=-1, keepdims=True))
        attn = jnp.einsum('hqk,hkd->hqd', p, v,
                          preferred_element_type=jnp.float32)   # (NH, B, Dh)

        # head-concat + out_proj fused: batched matmul, then sum over heads
        attn_out = jnp.einsum('hqd,hde->hqe', attn.astype(bf), w_out[l],
                              preferred_element_type=jnp.float32)
        attn_out = jnp.sum(attn_out, axis=0) + brow(base + 0, E)

        # post-norm encoder layer (PyTorch default norm_first=False)
        h = _layernorm(h + attn_out, brow(base + 3, E), brow(base + 4, E))

        ff = jnp.dot(h.astype(bf), w_ff1[l],
                     preferred_element_type=jnp.float32) + brow(base + 1, H)
        ff = jnp.maximum(ff, 0.0)                  # relu
        ff = jnp.dot(ff.astype(bf), w_ff2[l],
                     preferred_element_type=jnp.float32) + brow(base + 2, E)
        h = _layernorm(h + ff, brow(base + 5, E), brow(base + 6, E))

    # fused task heads: Linear -> ReLU -> (Dropout=id) -> block-diag Linear
    t = jnp.dot(h.astype(bf), w_h1[...],
                preferred_element_type=jnp.float32) + brow(1 + 7 * NUM_LAYERS, 3 * HALF)
    t = jnp.maximum(t, 0.0)
    return jnp.dot(t.astype(bf), w_h2[...],
                   preferred_element_type=jnp.float32) + brow(2 + 7 * NUM_LAYERS, HEAD_PAD)


def transformer_head_kernel(x_ref, w_in_ref, w_qkv_ref, b_qkv_ref, w_out_ref,
                            w_ff1_ref, w_ff2_ref, w_h1_ref, w_h2_ref, bias_ref,
                            out_ref):
    out_ref[...] = _forward_math(
        x_ref, w_in_ref, w_qkv_ref, b_qkv_ref, w_out_ref,
        w_ff1_ref, w_ff2_ref, w_h1_ref, w_h2_ref, bias_ref,
        recip=lambda d: pl.reciprocal(d, approx=True))


# ----------------------------------------------------------------------------
# Parameter initialization (PyTorch-convention shapes) and one-time packing.
# ----------------------------------------------------------------------------
def init_params(key):
    E, H = EMBED_DIM, HIDDEN_DIM
    keys = iter(jax.random.split(key, 40))

    def w(shape, scale=0.02):
        return jax.random.normal(next(keys), shape, jnp.float32) * scale

    params = {'proj_w': w((E, INPUT_DIM)), 'proj_b': w((E,)),
              'layers': [], 'heads': []}
    for _ in range(NUM_LAYERS):
        params['layers'].append({
            'in_proj_w': w((3 * E, E)), 'in_proj_b': w((3 * E,)),
            'out_proj_w': w((E, E)), 'out_proj_b': w((E,)),
            'lin1_w': w((H, E)), 'lin1_b': w((H,)),
            'lin2_w': w((E, H)), 'lin2_b': w((E,)),
            'ln1_w': jnp.ones((E,), jnp.float32),
            'ln1_b': jnp.zeros((E,), jnp.float32),
            'ln2_w': jnp.ones((E,), jnp.float32),
            'ln2_b': jnp.zeros((E,), jnp.float32)})
    for n_out in (NUM_AGE, NUM_GENDER, NUM_RACE):
        params['heads'].append({'w1': w((HALF, E)), 'b1': w((HALF,)),
                                'w2': w((n_out, HALF)), 'b2': w((n_out,))})
    return params


def pack_params(p):
    """One-time wrapper-side packing: transpose to (in, out), cast to bf16,
    reshape attention weights per-head (q/k/v fused along the head axis),
    fuse the task heads, and gather the small bias / LayerNorm vectors into a
    single f32 slab."""
    E, H, NH, Dh = EMBED_DIM, HIDDEN_DIM, NUM_HEADS, HEAD_DIM
    bf = jnp.bfloat16

    def pad_row(v):
        row = jnp.zeros((BIAS_W,), jnp.float32)
        return row.at[:v.shape[0]].set(v.astype(jnp.float32))

    w_in = p['proj_w'].T.astype(bf)                          # (INPUT_DIM, E)
    bias_rows = [pad_row(p['proj_b'])]

    w_qkv, b_qkv, w_out, w_ff1, w_ff2 = [], [], [], [], []
    for lp in p['layers']:
        # in_proj rows [q; k; v] -> head-leading (3*NH, Dh, E); contract over E
        w_qkv.append(lp['in_proj_w'].reshape(3 * NH, Dh, E).astype(bf))
        b_qkv.append(lp['in_proj_b'].reshape(3 * NH, 1, Dh).astype(jnp.float32))
        # out_proj.T split per head: (NH, Dh, E)
        w_out.append(lp['out_proj_w'].T.reshape(NH, Dh, E).astype(bf))
        w_ff1.append(lp['lin1_w'].T.astype(bf))              # (E, H)
        w_ff2.append(lp['lin2_w'].T.astype(bf))              # (H, E)
        bias_rows += [pad_row(lp['out_proj_b']), pad_row(lp['lin1_b']),
                      pad_row(lp['lin2_b']),
                      pad_row(lp['ln1_w']), pad_row(lp['ln1_b']),
                      pad_row(lp['ln2_w']), pad_row(lp['ln2_b'])]

    # fused task heads: stacked first layer, block-diagonal padded second layer
    w_h1 = jnp.concatenate([hd['w1'].T for hd in p['heads']], axis=1).astype(bf)  # (E, 384)
    b_h1 = jnp.concatenate([hd['b1'] for hd in p['heads']])                       # (384,)
    w2_blk = jnp.zeros((3 * HALF, HEAD_PAD), jnp.float32)
    b2_blk = jnp.zeros((HEAD_PAD,), jnp.float32)
    col = 0
    for i, hd in enumerate(p['heads']):
        n = hd['w2'].shape[0]
        w2_blk = w2_blk.at[i * HALF:(i + 1) * HALF, col:col + n].set(hd['w2'].T)
        b2_blk = b2_blk.at[col:col + n].set(hd['b2'])
        col += n
    bias_rows += [pad_row(b_h1), pad_row(b2_blk)]

    return (w_in,                              # (INPUT_DIM, E)      bf16
            jnp.stack(w_qkv),                  # (L, 3*NH, Dh, E)    bf16
            jnp.stack(b_qkv),                  # (L, 3*NH, 1, Dh)    f32
            jnp.stack(w_out),                  # (L, NH, Dh, E)      bf16
            jnp.stack(w_ff1),                  # (L, E, H)           bf16
            jnp.stack(w_ff2),                  # (L, H, E)           bf16
            w_h1,                              # (E, 3*HALF)         bf16
            w2_blk.astype(bf),                 # (3*HALF, 128)       bf16
            jnp.stack(bias_rows))              # (17, BIAS_W)        f32


# ----------------------------------------------------------------------------
# pallas_call wrapper
# ----------------------------------------------------------------------------
@jax.jit
def run_kernel(x, packed):
    B = x.shape[0]
    vmem = pl.BlockSpec(memory_space=pltpu.MemorySpace.VMEM)
    return pl.pallas_call(
        transformer_head_kernel,
        out_shape=jax.ShapeDtypeStruct((B, HEAD_PAD), jnp.float32),
        in_specs=[vmem] * (1 + len(packed)),
        out_specs=vmem,
        compiler_params=pltpu.CompilerParams(
            vmem_limit_bytes=16 * 1024 * 1024),
    )(x, *packed)


def forward(x, packed):
    out = run_kernel(x, packed)
    a, g = NUM_AGE, NUM_AGE + NUM_GENDER
    return out[:, :a], out[:, a:g], out[:, g:TOTAL_LOGITS]


if __name__ == "__main__":
    key = jax.random.PRNGKey(0)
    kx, kp = jax.random.split(key)
    B = 8
    x = jax.random.normal(kx, (B, INPUT_DIM), jnp.float32)
    packed = pack_params(init_params(kp))

    out_pad = jax.block_until_ready(run_kernel(x, packed))

    # Pure-JAX reference using the *same* packed bf16 weights / math path.
    ref_pad = jax.jit(
        lambda xx, pp: _forward_math(xx, *pp, recip=lambda d: 1.0 / d))(x, packed)
    assert bool(jnp.all(jnp.isfinite(out_pad)))
    assert bool(jnp.allclose(out_pad[:, :TOTAL_LOGITS],
                             ref_pad[:, :TOTAL_LOGITS],
                             rtol=5e-2, atol=2e-2)), "kernel/reference mismatch"

    logits_age, logits_gender, logits_race = forward(x, packed)
    assert logits_age.shape == (B, NUM_AGE)
    assert logits_gender.shape == (B, NUM_GENDER)
    assert logits_race.shape == (B, NUM_RACE)
    print("KERNEL_OK")
</pallas_src>

<mosaic_0001>
module attributes {stable_mosaic.version = 11 : i64} {
  func.func @transformer_head_kernel(%arg0: memref<8x512xf32, #tpu.memory_space<vmem>>, %arg1: memref<512x256xbf16, #tpu.memory_space<vmem>>, %arg2: memref<2x24x32x256xbf16, #tpu.memory_space<vmem>>, %arg3: memref<2x24x1x32xf32, #tpu.memory_space<vmem>>, %arg4: memref<2x8x32x256xbf16, #tpu.memory_space<vmem>>, %arg5: memref<2x256x512xbf16, #tpu.memory_space<vmem>>, %arg6: memref<2x512x256xbf16, #tpu.memory_space<vmem>>, %arg7: memref<256x384xbf16, #tpu.memory_space<vmem>>, %arg8: memref<384x128xbf16, #tpu.memory_space<vmem>>, %arg9: memref<17x512xf32, #tpu.memory_space<vmem>>, %arg10: memref<8x128xf32, #tpu.memory_space<vmem>>) attributes {dimension_semantics = [], scalar_prefetch = 0 : i64, scratch_operands = 0 : i64, tpu.core_type = #tpu.core_type<tc>} {
    %c0 = arith.constant 0 : index
    %c0_0 = arith.constant 0 : index
    %0 = vector.load %arg0[%c0, %c0_0] : memref<8x512xf32, #tpu.memory_space<vmem>>, vector<8x512xf32>
    %c0_1 = arith.constant 0 : index
    %c0_2 = arith.constant 0 : index
    %1 = vector.load %arg9[%c0_1, %c0_2] : memref<17x512xf32, #tpu.memory_space<vmem>>, vector<17x512xf32>
    %2 = arith.truncf %0 : vector<8x512xf32> to vector<8x512xbf16>
    %c0_3 = arith.constant 0 : index
    %c0_4 = arith.constant 0 : index
    %3 = vector.load %arg1[%c0_3, %c0_4] : memref<512x256xbf16, #tpu.memory_space<vmem>>, vector<512x256xbf16>
    %cst = arith.constant dense<0.000000e+00> : vector<8x256xf32>
    %4 = tpu.matmul %2, %3, %cst {dimension_numbers = #tpu.dot_dimension_numbers<[1], [0], [0], [1], [0, 0, 1, 1], [], []>} : vector<8x512xbf16>, vector<512x256xbf16>, vector<8x256xf32> -> vector<8x256xf32>
    %5 = vector.extract_strided_slice %1 {offsets = [0, 0], sizes = [1, 256], strides = [1, 1]} : vector<17x512xf32> to vector<1x256xf32>
    %6 = vector.broadcast %5 : vector<1x256xf32> to vector<8x256xf32>
    %7 = arith.addf %4, %6 : vector<8x256xf32>
    %8 = arith.truncf %7 : vector<8x256xf32> to vector<8x256xbf16>
    %9 = vector.shape_cast %8 : vector<8x256xbf16> to vector<1x8x256xbf16>
    %10 = vector.broadcast %9 : vector<1x8x256xbf16> to vector<24x8x256xbf16>
    %c0_5 = arith.constant 0 : index
    %c0_6 = arith.constant 0 : index
    %c0_7 = arith.constant 0 : index
    %c0_8 = arith.constant 0 : index
    %11 = vector.load %arg2[%c0_5, %c0_6, %c0_7, %c0_8] : memref<2x24x32x256xbf16, #tpu.memory_space<vmem>>, vector<1x24x32x256xbf16>
    %12 = vector.shape_cast %11 : vector<1x24x32x256xbf16> to vector<24x32x256xbf16>
    "tpu.trace_start"() <{level = 10 : i32, message = "hbe,hde->hbd"}> : () -> ()
    %cst_9 = arith.constant dense<0.000000e+00> : vector<24x8x32xf32>
    %13 = tpu.matmul %10, %12, %cst_9 {dimension_numbers = #tpu.dot_dimension_numbers<[2], [2], [1], [1], [0, 0, 0, 1, 1, 1], [0], [0]>} : vector<24x8x256xbf16>, vector<24x32x256xbf16>, vector<24x8x32xf32> -> vector<24x8x32xf32>
    "tpu.trace_stop"() : () -> ()
    %c0_10 = arith.constant 0 : index
    %c0_11 = arith.constant 0 : index
    %c0_12 = arith.constant 0 : index
    %c0_13 = arith.constant 0 : index
    %14 = vector.load %arg3[%c0_10, %c0_11, %c0_12, %c0_13] : memref<2x24x1x32xf32, #tpu.memory_space<vmem>>, vector<1x24x1x32xf32>
    %15 = vector.shape_cast %14 : vector<1x24x1x32xf32> to vector<24x1x32xf32>
    %16 = vector.broadcast %15 : vector<24x1x32xf32> to vector<24x8x32xf32>
    %17 = arith.addf %13, %16 : vector<24x8x32xf32>
    %18 = vector.extract_strided_slice %17 {offsets = [0, 0, 0], sizes = [8, 8, 32], strides = [1, 1, 1]} : vector<24x8x32xf32> to vector<8x8x32xf32>
    %19 = vector.extract_strided_slice %17 {offsets = [8, 0, 0], sizes = [8, 8, 32], strides = [1, 1, 1]} : vector<24x8x32xf32> to vector<8x8x32xf32>
    %20 = vector.extract_strided_slice %17 {offsets = [16, 0, 0], sizes = [8, 8, 32], strides = [1, 1, 1]} : vector<24x8x32xf32> to vector<8x8x32xf32>
    "tpu.trace_start"() <{level = 10 : i32, message = "hqd,hkd->hqk"}> : () -> ()
    %cst_14 = arith.constant dense<0.000000e+00> : vector<8x8x8xf32>
    %21 = tpu.matmul %18, %19, %cst_14 {dimension_numbers = #tpu.dot_dimension_numbers<[2], [2], [1], [1], [0, 0, 0, 1, 1, 1], [0], [0]>} : vector<8x8x32xf32>, vector<8x8x32xf32>, vector<8x8x8xf32> -> vector<8x8x8xf32>
    "tpu.trace_stop"() : () -> ()
    %cst_15 = arith.constant 0.176776692 : f32
    %22 = vector.broadcast %cst_15 : f32 to vector<8x8x8xf32>
    %23 = arith.mulf %21, %22 : vector<8x8x8xf32>
    %cst_16 = arith.constant dense<0xFF800000> : vector<8x8xf32>
    %24 = vector.multi_reduction <maximumf>, %23, %cst_16 [2] : vector<8x8x8xf32> to vector<8x8xf32>
    %25 = vector.shape_cast %24 : vector<8x8xf32> to vector<8x8x1xf32>
    %26 = vector.broadcast %25 : vector<8x8x1xf32> to vector<8x8x8xf32>
    %27 = arith.subf %23, %26 : vector<8x8x8xf32>
    %28 = math.exp %27 : vector<8x8x8xf32>
    %cst_17 = arith.constant dense<0.000000e+00> : vector<8x8xf32>
    %29 = vector.multi_reduction <add>, %28, %cst_17 [2] : vector<8x8x8xf32> to vector<8x8xf32>
    %30 = vector.shape_cast %29 : vector<8x8xf32> to vector<8x8x1xf32>
    %31 = tpu.reciprocal %30 {approx = true} : vector<8x8x1xf32> -> vector<8x8x1xf32>
    %32 = vector.broadcast %31 : vector<8x8x1xf32> to vector<8x8x8xf32>
    %33 = arith.mulf %28, %32 : vector<8x8x8xf32>
    "tpu.trace_start"() <{level = 10 : i32, message = "hqk,hkd->hqd"}> : () -> ()
    %cst_18 = arith.constant dense<0.000000e+00> : vector<8x8x32xf32>
    %34 = tpu.matmul %33, %20, %cst_18 {dimension_numbers = #tpu.dot_dimension_numbers<[2], [1], [1], [2], [0, 0, 0, 1, 1, 2], [0], [0]>} : vector<8x8x8xf32>, vector<8x8x32xf32>, vector<8x8x32xf32> -> vector<8x8x32xf32>
    "tpu.trace_stop"() : () -> ()
    %35 = arith.truncf %34 : vector<8x8x32xf32> to vector<8x8x32xbf16>
    %c0_19 = arith.constant 0 : index
    %c0_20 = arith.constant 0 : index
    %c0_21 = arith.constant 0 : index
    %c0_22 = arith.constant 0 : index
    %36 = vector.load %arg4[%c0_19, %c0_20, %c0_21, %c0_22] : memref<2x8x32x256xbf16, #tpu.memory_space<vmem>>, vector<1x8x32x256xbf16>
    %37 = vector.shape_cast %36 : vector<1x8x32x256xbf16> to vector<8x32x256xbf16>
    "tpu.trace_start"() <{level = 10 : i32, message = "hqd,hde->hqe"}> : () -> ()
    %cst_23 = arith.constant dense<0.000000e+00> : vector<8x8x256xf32>
    %38 = tpu.matmul %35, %37, %cst_23 {dimension_numbers = #tpu.dot_dimension_numbers<[2], [1], [1], [2], [0, 0, 0, 1, 1, 2], [0], [0]>} : vector<8x8x32xbf16>, vector<8x32x256xbf16>, vector<8x8x256xf32> -> vector<8x8x256xf32>
    "tpu.trace_stop"() : () -> ()
    %cst_24 = arith.constant dense<0.000000e+00> : vector<8x256xf32>
    %39 = vector.multi_reduction <add>, %38, %cst_24 [0] : vector<8x8x256xf32> to vector<8x256xf32>
    %40 = vector.extract_strided_slice %1 {offsets = [1, 0], sizes = [1, 256], strides = [1, 1]} : vector<17x512xf32> to vector<1x256xf32>
    %41 = vector.broadcast %40 : vector<1x256xf32> to vector<8x256xf32>
    %42 = arith.addf %39, %41 : vector<8x256xf32>
    %43 = arith.addf %7, %42 : vector<8x256xf32>
    %44 = vector.extract_strided_slice %1 {offsets = [4, 0], sizes = [1, 256], strides = [1, 1]} : vector<17x512xf32> to vector<1x256xf32>
    %45 = vector.extract_strided_slice %1 {offsets = [5, 0], sizes = [1, 256], strides = [1, 1]} : vector<17x512xf32> to vector<1x256xf32>
    %cst_25 = arith.constant dense<0.000000e+00> : vector<8xf32>
    %46 = vector.multi_reduction <add>, %43, %cst_25 [1] : vector<8x256xf32> to vector<8xf32>
    %47 = vector.shape_cast %46 : vector<8xf32> to vector<8x1xf32>
    %cst_26 = arith.constant 2.560000e+02 : f32
    %48 = vector.broadcast %cst_26 : f32 to vector<8x1xf32>
    %49 = arith.divf %47, %48 : vector<8x1xf32>
    %50 = vector.broadcast %49 : vector<8x1xf32> to vector<8x256xf32>
    %51 = arith.subf %43, %50 : vector<8x256xf32>
    %52 = arith.mulf %51, %51 : vector<8x256xf32>
    %cst_27 = arith.constant dense<0.000000e+00> : vector<8xf32>
    %53 = vector.multi_reduction <add>, %52, %cst_27 [1] : vector<8x256xf32> to vector<8xf32>
    %54 = vector.shape_cast %53 : vector<8xf32> to vector<8x1xf32>
    %cst_28 = arith.constant 2.560000e+02 : f32
    %55 = vector.broadcast %cst_28 : f32 to vector<8x1xf32>
    %56 = arith.divf %54, %55 : vector<8x1xf32>
    %57 = vector.broadcast %49 : vector<8x1xf32> to vector<8x256xf32>
    %58 = arith.subf %43, %57 : vector<8x256xf32>
    %cst_29 = arith.constant 9.99999974E-6 : f32
    %59 = vector.broadcast %cst_29 : f32 to vector<8x1xf32>
    %60 = arith.addf %56, %59 : vector<8x1xf32>
    %61 = math.rsqrt %60 : vector<8x1xf32>
    %62 = vector.broadcast %61 : vector<8x1xf32> to vector<8x256xf32>
    %63 = arith.mulf %58, %62 : vector<8x256xf32>
    %64 = vector.broadcast %44 : vector<1x256xf32> to vector<8x256xf32>
    %65 = arith.mulf %63, %64 : vector<8x256xf32>
    %66 = vector.broadcast %45 : vector<1x256xf32> to vector<8x256xf32>
    %67 = arith.addf %65, %66 : vector<8x256xf32>
    %68 = arith.truncf %67 : vector<8x256xf32> to vector<8x256xbf16>
    %c0_30 = arith.constant 0 : index
    %c0_31 = arith.constant 0 : index
    %c0_32 = arith.constant 0 : index
    %69 = vector.load %arg5[%c0_30, %c0_31, %c0_32] : memref<2x256x512xbf16, #tpu.memory_space<vmem>>, vector<1x256x512xbf16>
    %70 = vector.shape_cast %69 : vector<1x256x512xbf16> to vector<256x512xbf16>
    %cst_33 = arith.constant dense<0.000000e+00> : vector<8x512xf32>
    %71 = tpu.matmul %68, %70, %cst_33 {dimension_numbers = #tpu.dot_dimension_numbers<[1], [0], [0], [1], [0, 0, 1, 1], [], []>} : vector<8x256xbf16>, vector<256x512xbf16>, vector<8x512xf32> -> vector<8x512xf32>
    %72 = vector.extract_strided_slice %1 {offsets = [2, 0], sizes = [1, 512], strides = [1, 1]} : vector<17x512xf32> to vector<1x512xf32>
    %73 = vector.broadcast %72 : vector<1x512xf32> to vector<8x512xf32>
    %74 = arith.addf %71, %73 : vector<8x512xf32>
    %cst_34 = arith.constant 0.000000e+00 : f32
    %75 = vector.broadcast %cst_34 : f32 to vector<8x512xf32>
    %76 = arith.maximumf %74, %75 : vector<8x512xf32>
    %77 = arith.truncf %76 : vector<8x512xf32> to vector<8x512xbf16>
    %c0_35 = arith.constant 0 : index
    %c0_36 = arith.constant 0 : index
    %c0_37 = arith.constant 0 : index
    %78 = vector.load %arg6[%c0_35, %c0_36, %c0_37] : memref<2x512x256xbf16, #tpu.memory_space<vmem>>, vector<1x512x256xbf16>
    %79 = vector.shape_cast %78 : vector<1x512x256xbf16> to vector<512x256xbf16>
    %cst_38 = arith.constant dense<0.000000e+00> : vector<8x256xf32>
    %80 = tpu.matmul %77, %79, %cst_38 {dimension_numbers = #tpu.dot_dimension_numbers<[1], [0], [0], [1], [0, 0, 1, 1], [], []>} : vector<8x512xbf16>, vector<512x256xbf16>, vector<8x256xf32> -> vector<8x256xf32>
    %81 = vector.extract_strided_slice %1 {offsets = [3, 0], sizes = [1, 256], strides = [1, 1]} : vector<17x512xf32> to vector<1x256xf32>
    %82 = vector.broadcast %81 : vector<1x256xf32> to vector<8x256xf32>
    %83 = arith.addf %80, %82 : vector<8x256xf32>
    %84 = arith.addf %67, %83 : vector<8x256xf32>
    %85 = vector.extract_strided_slice %1 {offsets = [6, 0], sizes = [1, 256], strides = [1, 1]} : vector<17x512xf32> to vector<1x256xf32>
    %86 = vector.extract_strided_slice %1 {offsets = [7, 0], sizes = [1, 256], strides = [1, 1]} : vector<17x512xf32> to vector<1x256xf32>
    %cst_39 = arith.constant dense<0.000000e+00> : vector<8xf32>
    %87 = vector.multi_reduction <add>, %84, %cst_39 [1] : vector<8x256xf32> to vector<8xf32>
    %88 = vector.shape_cast %87 : vector<8xf32> to vector<8x1xf32>
    %cst_40 = arith.constant 2.560000e+02 : f32
    %89 = vector.broadcast %cst_40 : f32 to vector<8x1xf32>
    %90 = arith.divf %88, %89 : vector<8x1xf32>
    %91 = vector.broadcast %90 : vector<8x1xf32> to vector<8x256xf32>
    %92 = arith.subf %84, %91 : vector<8x256xf32>
    %93 = arith.mulf %92, %92 : vector<8x256xf32>
    %cst_41 = arith.constant dense<0.000000e+00> : vector<8xf32>
    %94 = vector.multi_reduction <add>, %93, %cst_41 [1] : vector<8x256xf32> to vector<8xf32>
    %95 = vector.shape_cast %94 : vector<8xf32> to vector<8x1xf32>
    %cst_42 = arith.constant 2.560000e+02 : f32
    %96 = vector.broadcast %cst_42 : f32 to vector<8x1xf32>
    %97 = arith.divf %95, %96 : vector<8x1xf32>
    %98 = vector.broadcast %90 : vector<8x1xf32> to vector<8x256xf32>
    %99 = arith.subf %84, %98 : vector<8x256xf32>
    %cst_43 = arith.constant 9.99999974E-6 : f32
    %100 = vector.broadcast %cst_43 : f32 to vector<8x1xf32>
    %101 = arith.addf %97, %100 : vector<8x1xf32>
    %102 = math.rsqrt %101 : vector<8x1xf32>
    %103 = vector.broadcast %102 : vector<8x1xf32> to vector<8x256xf32>
    %104 = arith.mulf %99, %103 : vector<8x256xf32>
    %105 = vector.broadcast %85 : vector<1x256xf32> to vector<8x256xf32>
    %106 = arith.mulf %104, %105 : vector<8x256xf32>
    %107 = vector.broadcast %86 : vector<1x256xf32> to vector<8x256xf32>
    %108 = arith.addf %106, %107 : vector<8x256xf32>
    %109 = arith.truncf %108 : vector<8x256xf32> to vector<8x256xbf16>
    %110 = vector.shape_cast %109 : vector<8x256xbf16> to vector<1x8x256xbf16>
    %111 = vector.broadcast %110 : vector<1x8x256xbf16> to vector<24x8x256xbf16>
    %c1 = arith.constant 1 : index
    %c0_44 = arith.constant 0 : index
    %c0_45 = arith.constant 0 : index
    %c0_46 = arith.constant 0 : index
    %112 = vector.load %arg2[%c1, %c0_44, %c0_45, %c0_46] : memref<2x24x32x256xbf16, #tpu.memory_space<vmem>>, vector<1x24x32x256xbf16>
    %113 = vector.shape_cast %112 : vector<1x24x32x256xbf16> to vector<24x32x256xbf16>
    "tpu.trace_start"() <{level = 10 : i32, message = "hbe,hde->hbd"}> : () -> ()
    %cst_47 = arith.constant dense<0.000000e+00> : vector<24x8x32xf32>
    %114 = tpu.matmul %111, %113, %cst_47 {dimension_numbers = #tpu.dot_dimension_numbers<[2], [2], [1], [1], [0, 0, 0, 1, 1, 1], [0], [0]>} : vector<24x8x256xbf16>, vector<24x32x256xbf16>, vector<24x8x32xf32> -> vector<24x8x32xf32>
    "tpu.trace_stop"() : () -> ()
    %c1_48 = arith.constant 1 : index
    %c0_49 = arith.constant 0 : index
    %c0_50 = arith.constant 0 : index
    %c0_51 = arith.constant 0 : index
    %115 = vector.load %arg3[%c1_48, %c0_49, %c0_50, %c0_51] : memref<2x24x1x32xf32, #tpu.memory_space<vmem>>, vector<1x24x1x32xf32>
    %116 = vector.shape_cast %115 : vector<1x24x1x32xf32> to vector<24x1x32xf32>
    %117 = vector.broadcast %116 : vector<24x1x32xf32> to vector<24x8x32xf32>
    %118 = arith.addf %114, %117 : vector<24x8x32xf32>
    %119 = vector.extract_strided_slice %118 {offsets = [0, 0, 0], sizes = [8, 8, 32], strides = [1, 1, 1]} : vector<24x8x32xf32> to vector<8x8x32xf32>
    %120 = vector.extract_strided_slice %118 {offsets = [8, 0, 0], sizes = [8, 8, 32], strides = [1, 1, 1]} : vector<24x8x32xf32> to vector<8x8x32xf32>
    %121 = vector.extract_strided_slice %118 {offsets = [16, 0, 0], sizes = [8, 8, 32], strides = [1, 1, 1]} : vector<24x8x32xf32> to vector<8x8x32xf32>
    "tpu.trace_start"() <{level = 10 : i32, message = "hqd,hkd->hqk"}> : () -> ()
    %cst_52 = arith.constant dense<0.000000e+00> : vector<8x8x8xf32>
    %122 = tpu.matmul %119, %120, %cst_52 {dimension_numbers = #tpu.dot_dimension_numbers<[2], [2], [1], [1], [0, 0, 0, 1, 1, 1], [0], [0]>} : vector<8x8x32xf32>, vector<8x8x32xf32>, vector<8x8x8xf32> -> vector<8x8x8xf32>
    "tpu.trace_stop"() : () -> ()
    %cst_53 = arith.constant 0.176776692 : f32
    %123 = vector.broadcast %cst_53 : f32 to vector<8x8x8xf32>
    %124 = arith.mulf %122, %123 : vector<8x8x8xf32>
    %cst_54 = arith.constant dense<0xFF800000> : vector<8x8xf32>
    %125 = vector.multi_reduction <maximumf>, %124, %cst_54 [2] : vector<8x8x8xf32> to vector<8x8xf32>
    %126 = vector.shape_cast %125 : vector<8x8xf32> to vector<8x8x1xf32>
    %127 = vector.broadcast %126 : vector<8x8x1xf32> to vector<8x8x8xf32>
    %128 = arith.subf %124, %127 : vector<8x8x8xf32>
    %129 = math.exp %128 : vector<8x8x8xf32>
    %cst_55 = arith.constant dense<0.000000e+00> : vector<8x8xf32>
    %130 = vector.multi_reduction <add>, %129, %cst_55 [2] : vector<8x8x8xf32> to vector<8x8xf32>
    %131 = vector.shape_cast %130 : vector<8x8xf32> to vector<8x8x1xf32>
    %132 = tpu.reciprocal %131 {approx = true} : vector<8x8x1xf32> -> vector<8x8x1xf32>
    %133 = vector.broadcast %132 : vector<8x8x1xf32> to vector<8x8x8xf32>
    %134 = arith.mulf %129, %133 : vector<8x8x8xf32>
    "tpu.trace_start"() <{level = 10 : i32, message = "hqk,hkd->hqd"}> : () -> ()
    %cst_56 = arith.constant dense<0.000000e+00> : vector<8x8x32xf32>
    %135 = tpu.matmul %134, %121, %cst_56 {dimension_numbers = #tpu.dot_dimension_numbers<[2], [1], [1], [2], [0, 0, 0, 1, 1, 2], [0], [0]>} : vector<8x8x8xf32>, vector<8x8x32xf32>, vector<8x8x32xf32> -> vector<8x8x32xf32>
    "tpu.trace_stop"() : () -> ()
    %136 = arith.truncf %135 : vector<8x8x32xf32> to vector<8x8x32xbf16>
    %c1_57 = arith.constant 1 : index
    %c0_58 = arith.constant 0 : index
    %c0_59 = arith.constant 0 : index
    %c0_60 = arith.constant 0 : index
    %137 = vector.load %arg4[%c1_57, %c0_58, %c0_59, %c0_60] : memref<2x8x32x256xbf16, #tpu.memory_space<vmem>>, vector<1x8x32x256xbf16>
    %138 = vector.shape_cast %137 : vector<1x8x32x256xbf16> to vector<8x32x256xbf16>
    "tpu.trace_start"() <{level = 10 : i32, message = "hqd,hde->hqe"}> : () -> ()
    %cst_61 = arith.constant dense<0.000000e+00> : vector<8x8x256xf32>
    %139 = tpu.matmul %136, %138, %cst_61 {dimension_numbers = #tpu.dot_dimension_numbers<[2], [1], [1], [2], [0, 0, 0, 1, 1, 2], [0], [0]>} : vector<8x8x32xbf16>, vector<8x32x256xbf16>, vector<8x8x256xf32> -> vector<8x8x256xf32>
    "tpu.trace_stop"() : () -> ()
    %cst_62 = arith.constant dense<0.000000e+00> : vector<8x256xf32>
    %140 = vector.multi_reduction <add>, %139, %cst_62 [0] : vector<8x8x256xf32> to vector<8x256xf32>
    %141 = vector.extract_strided_slice %1 {offsets = [8, 0], sizes = [1, 256], strides = [1, 1]} : vector<17x512xf32> to vector<1x256xf32>
    %142 = vector.broadcast %141 : vector<1x256xf32> to vector<8x256xf32>
    %143 = arith.addf %140, %142 : vector<8x256xf32>
    %144 = arith.addf %108, %143 : vector<8x256xf32>
    %145 = vector.extract_strided_slice %1 {offsets = [11, 0], sizes = [1, 256], strides = [1, 1]} : vector<17x512xf32> to vector<1x256xf32>
    %146 = vector.extract_strided_slice %1 {offsets = [12, 0], sizes = [1, 256], strides = [1, 1]} : vector<17x512xf32> to vector<1x256xf32>
    %cst_63 = arith.constant dense<0.000000e+00> : vector<8xf32>
    %147 = vector.multi_reduction <add>, %144, %cst_63 [1] : vector<8x256xf32> to vector<8xf32>
    %148 = vector.shape_cast %147 : vector<8xf32> to vector<8x1xf32>
    %cst_64 = arith.constant 2.560000e+02 : f32
    %149 = vector.broadcast %cst_64 : f32 to vector<8x1xf32>
    %150 = arith.divf %148, %149 : vector<8x1xf32>
    %151 = vector.broadcast %150 : vector<8x1xf32> to vector<8x256xf32>
    %152 = arith.subf %144, %151 : vector<8x256xf32>
    %153 = arith.mulf %152, %152 : vector<8x256xf32>
    %cst_65 = arith.constant dense<0.000000e+00> : vector<8xf32>
    %154 = vector.multi_reduction <add>, %153, %cst_65 [1] : vector<8x256xf32> to vector<8xf32>
    %155 = vector.shape_cast %154 : vector<8xf32> to vector<8x1xf32>
    %cst_66 = arith.constant 2.560000e+02 : f32
    %156 = vector.broadcast %cst_66 : f32 to vector<8x1xf32>
    %157 = arith.divf %155, %156 : vector<8x1xf32>
    %158 = vector.broadcast %150 : vector<8x1xf32> to vector<8x256xf32>
    %159 = arith.subf %144, %158 : vector<8x256xf32>
    %cst_67 = arith.constant 9.99999974E-6 : f32
    %160 = vector.broadcast %cst_67 : f32 to vector<8x1xf32>
    %161 = arith.addf %157, %160 : vector<8x1xf32>
    %162 = math.rsqrt %161 : vector<8x1xf32>
    %163 = vector.broadcast %162 : vector<8x1xf32> to vector<8x256xf32>
    %164 = arith.mulf %159, %163 : vector<8x256xf32>
    %165 = vector.broadcast %145 : vector<1x256xf32> to vector<8x256xf32>
    %166 = arith.mulf %164, %165 : vector<8x256xf32>
    %167 = vector.broadcast %146 : vector<1x256xf32> to vector<8x256xf32>
    %168 = arith.addf %166, %167 : vector<8x256xf32>
    %169 = arith.truncf %168 : vector<8x256xf32> to vector<8x256xbf16>
    %c1_68 = arith.constant 1 : index
    %c0_69 = arith.constant 0 : index
    %c0_70 = arith.constant 0 : index
    %170 = vector.load %arg5[%c1_68, %c0_69, %c0_70] : memref<2x256x512xbf16, #tpu.memory_space<vmem>>, vector<1x256x512xbf16>
    %171 = vector.shape_cast %170 : vector<1x256x512xbf16> to vector<256x512xbf16>
    %cst_71 = arith.constant dense<0.000000e+00> : vector<8x512xf32>
    %172 = tpu.matmul %169, %171, %cst_71 {dimension_numbers = #tpu.dot_dimension_numbers<[1], [0], [0], [1], [0, 0, 1, 1], [], []>} : vector<8x256xbf16>, vector<256x512xbf16>, vector<8x512xf32> -> vector<8x512xf32>
    %173 = vector.extract_strided_slice %1 {offsets = [9, 0], sizes = [1, 512], strides = [1, 1]} : vector<17x512xf32> to vector<1x512xf32>
    %174 = vector.broadcast %173 : vector<1x512xf32> to vector<8x512xf32>
    %175 = arith.addf %172, %174 : vector<8x512xf32>
    %cst_72 = arith.constant 0.000000e+00 : f32
    %176 = vector.broadcast %cst_72 : f32 to vector<8x512xf32>
    %177 = arith.maximumf %175, %176 : vector<8x512xf32>
    %178 = arith.truncf %177 : vector<8x512xf32> to vector<8x512xbf16>
    %c1_73 = arith.constant 1 : index
    %c0_74 = arith.constant 0 : index
    %c0_75 = arith.constant 0 : index
    %179 = vector.load %arg6[%c1_73, %c0_74, %c0_75] : memref<2x512x256xbf16, #tpu.memory_space<vmem>>, vector<1x512x256xbf16>
    %180 = vector.shape_cast %179 : vector<1x512x256xbf16> to vector<512x256xbf16>
    %cst_76 = arith.constant dense<0.000000e+00> : vector<8x256xf32>
    %181 = tpu.matmul %178, %180, %cst_76 {dimension_numbers = #tpu.dot_dimension_numbers<[1], [0], [0], [1], [0, 0, 1, 1], [], []>} : vector<8x512xbf16>, vector<512x256xbf16>, vector<8x256xf32> -> vector<8x256xf32>
    %182 = vector.extract_strided_slice %1 {offsets = [10, 0], sizes = [1, 256], strides = [1, 1]} : vector<17x512xf32> to vector<1x256xf32>
    %183 = vector.broadcast %182 : vector<1x256xf32> to vector<8x256xf32>
    %184 = arith.addf %181, %183 : vector<8x256xf32>
    %185 = arith.addf %168, %184 : vector<8x256xf32>
    %186 = vector.extract_strided_slice %1 {offsets = [13, 0], sizes = [1, 256], strides = [1, 1]} : vector<17x512xf32> to vector<1x256xf32>
    %187 = vector.extract_strided_slice %1 {offsets = [14, 0], sizes = [1, 256], strides = [1, 1]} : vector<17x512xf32> to vector<1x256xf32>
    %cst_77 = arith.constant dense<0.000000e+00> : vector<8xf32>
    %188 = vector.multi_reduction <add>, %185, %cst_77 [1] : vector<8x256xf32> to vector<8xf32>
    %189 = vector.shape_cast %188 : vector<8xf32> to vector<8x1xf32>
    %cst_78 = arith.constant 2.560000e+02 : f32
    %190 = vector.broadcast %cst_78 : f32 to vector<8x1xf32>
    %191 = arith.divf %189, %190 : vector<8x1xf32>
    %192 = vector.broadcast %191 : vector<8x1xf32> to vector<8x256xf32>
    %193 = arith.subf %185, %192 : vector<8x256xf32>
    %194 = arith.mulf %193, %193 : vector<8x256xf32>
    %cst_79 = arith.constant dense<0.000000e+00> : vector<8xf32>
    %195 = vector.multi_reduction <add>, %194, %cst_79 [1] : vector<8x256xf32> to vector<8xf32>
    %196 = vector.shape_cast %195 : vector<8xf32> to vector<8x1xf32>
    %cst_80 = arith.constant 2.560000e+02 : f32
    %197 = vector.broadcast %cst_80 : f32 to vector<8x1xf32>
    %198 = arith.divf %196, %197 : vector<8x1xf32>
    %199 = vector.broadcast %191 : vector<8x1xf32> to vector<8x256xf32>
    %200 = arith.subf %185, %199 : vector<8x256xf32>
    %cst_81 = arith.constant 9.99999974E-6 : f32
    %201 = vector.broadcast %cst_81 : f32 to vector<8x1xf32>
    %202 = arith.addf %198, %201 : vector<8x1xf32>
    %203 = math.rsqrt %202 : vector<8x1xf32>
    %204 = vector.broadcast %203 : vector<8x1xf32> to vector<8x256xf32>
    %205 = arith.mulf %200, %204 : vector<8x256xf32>
    %206 = vector.broadcast %186 : vector<1x256xf32> to vector<8x256xf32>
    %207 = arith.mulf %205, %206 : vector<8x256xf32>
    %208 = vector.broadcast %187 : vector<1x256xf32> to vector<8x256xf32>
    %209 = arith.addf %207, %208 : vector<8x256xf32>
    %210 = arith.truncf %209 : vector<8x256xf32> to vector<8x256xbf16>
    %c0_82 = arith.constant 0 : index
    %c0_83 = arith.constant 0 : index
    %211 = vector.load %arg7[%c0_82, %c0_83] : memref<256x384xbf16, #tpu.memory_space<vmem>>, vector<256x384xbf16>
    %cst_84 = arith.constant dense<0.000000e+00> : vector<8x384xf32>
    %212 = tpu.matmul %210, %211, %cst_84 {dimension_numbers = #tpu.dot_dimension_numbers<[1], [0], [0], [1], [0, 0, 1, 1], [], []>} : vector<8x256xbf16>, vector<256x384xbf16>, vector<8x384xf32> -> vector<8x384xf32>
    %213 = vector.extract_strided_slice %1 {offsets = [15, 0], sizes = [1, 384], strides = [1, 1]} : vector<17x512xf32> to vector<1x384xf32>
    %214 = vector.broadcast %213 : vector<1x384xf32> to vector<8x384xf32>
    %215 = arith.addf %212, %214 : vector<8x384xf32>
    %cst_85 = arith.constant 0.000000e+00 : f32
    %216 = vector.broadcast %cst_85 : f32 to vector<8x384xf32>
    %217 = arith.maximumf %215, %216 : vector<8x384xf32>
    %218 = arith.truncf %217 : vector<8x384xf32> to vector<8x384xbf16>
    %c0_86 = arith.constant 0 : index
    %c0_87 = arith.constant 0 : index
    %219 = vector.load %arg8[%c0_86, %c0_87] : memref<384x128xbf16, #tpu.memory_space<vmem>>, vector<384x128xbf16>
    %cst_88 = arith.constant dense<0.000000e+00> : vector<8x128xf32>
    %220 = tpu.matmul %218, %219, %cst_88 {dimension_numbers = #tpu.dot_dimension_numbers<[1], [0], [0], [1], [0, 0, 1, 1], [], []>} : vector<8x384xbf16>, vector<384x128xbf16>, vector<8x128xf32> -> vector<8x128xf32>
    %221 = vector.extract_strided_slice %1 {offsets = [16, 0], sizes = [1, 128], strides = [1, 1]} : vector<17x512xf32> to vector<1x128xf32>
    %222 = vector.broadcast %221 : vector<1x128xf32> to vector<8x128xf32>
    %223 = arith.addf %220, %222 : vector<8x128xf32>
    %c0_89 = arith.constant 0 : index
    %c0_90 = arith.constant 0 : index
    %224 = vector.load %arg10[%c0_89, %c0_90] : memref<8x128xf32, #tpu.memory_space<vmem>>, vector<8x128xf32>
    tpu.vector_store %arg10[%c0_89, %c0_90], %223 {strides = array<i32>} : memref<8x128xf32, #tpu.memory_space<vmem>>, vector<8x128xf32>,
    return
  }
}

</mosaic_0001>

<bundles_post_ra>
// kernel: run_kernel.1
= control target key start
LH: loop header
LB: loop body
LE: loop exit
PB: predicated region body
PF: predicated region fallthrough
CT: control target
= control target key end

     0   :  { %15 = vsyncpa [#allocation3], 0  ;;  %s13837_s0 = inlined_call_operand.hbm [shape: f32[8,512], index: 0, kind: input, shape index: {}]   ;;  %s13838_s1 = inlined_call_operand.hbm [shape: bf16[512,256], index: 1, kind: input, shape index: {}]   ;;  %s13839_s2 = inlined_call_operand.hbm [shape: bf16[2,24,32,256], index: 2, kind: input, shape index: {}]   ;;  %s13840_s3 = inlined_call_operand.hbm [shape: f32[2,24,1,32], index: 3, kind: input, shape index: {}]   ;;  %s13841_s4 = inlined_call_operand.hbm [shape: bf16[2,8,32,256], index: 4, kind: input, shape index: {}]   ;;  %s13842_s5 = inlined_call_operand.hbm [shape: bf16[2,256,512], index: 5, kind: input, shape index: {}]   ;;  %s13843_s6 = inlined_call_operand.hbm [shape: bf16[2,512,256], index: 6, kind: input, shape index: {}]   ;;  %s13844_s7 = inlined_call_operand.hbm [shape: bf16[256,384], index: 7, kind: input, shape index: {}]   ;;  %s13845_s8 = inlined_call_operand.hbm [shape: bf16[384,128], index: 8, kind: input, shape index: {}]   ;;  %s13846_s9 = inlined_call_operand.hbm [shape: f32[17,512], index: 9, kind: input, shape index: {}]   ;;  %s13847_s10 = inlined_call_operand.hbm [shape: f32[8,128], index: 10, kind: output, shape index: {}]  }
   0x1   :  { %16 = vsyncpa [#allocation6], 0 }
   0x2   :  { %17 = vsyncpa [#allocation9], 0 }
   0x3   :  { %18 = vsyncpa [#allocation12], 0 }
   0x4   :  { %19 = vsyncpa [#allocation15], 0 }
   0x5   :  { %20 = vsyncpa [#allocation18], 0 }
   0x6   :  { %21 = vsyncpa [#allocation4], 0  ;;  %s12985_s13 = smov [#allocation5]   ;;  %s12729_s17 = scalar_lea.hbm %s13838_s1, 8192 }
   0x7   :  { %s37_s14 = sshll.u32 %s12985_s13, 4  ;;  %p12730_p0 = scmp.ne.s32.totalorder %s13838_s1, %s12729_s17  ;;  %s38_s14 = int_to_ptr.vmem [resolvable:$true] %s37_s14 }
   0x8   :  { %p12733_p1 = scmp.lt.u32.totalorder %s12729_s17, %s13838_s1 }
   0xa   :  { %p12735_p2 = pnand %p12733_p1, %p12730_p0 }
   0xc   :  { %12738 = shalt.err (!%p12735_p2)
}
   0xd   :  { %s12739_s22 = scalar_lea.vmem %s38_s14, 8192  ;;  %p12744_p4 = scmp.lt.s32.totalorder %s38_s14, %s38_s14 }
   0xe   :  { %p12740_p3 = scmp.ne.s32.totalorder %s38_s14, %s12739_s22  ;;  %p12745_p5 = scmp.lt.s32.totalorder %s12739_s22, %s12739_s22 }
  0x10   :  { %p12746_p6 = por %p12745_p5, %p12744_p4 }
  0x12   :  { %p12747_p7 = pnand %p12746_p6, %p12740_p3 }
  0x14   :  { %12750 = shalt.err (!%p12747_p7)
}
  0x15   :  { %s12986_s23 = smov 128   ;;  %s12987_s24 = smov 8  }
  0x16   :  { %43 = dma.hbm_to_vmem [thread:$0]  %s13838_s1, 8192, %s38_s14, [#allocation6], %s12986_s23, %s12986_s23, %s12987_s24  }
  0x17   :  { %s12988_s27 = smov [#allocation8]   ;;  %s12751_s11 = scalar_lea.hbm %s13840_s3, 768 }
  0x18   :  { %s61_s28 = sshll.u32 %s12988_s27, 4  ;;  %p12752_p8 = scmp.ne.s32.totalorder %s13840_s3, %s12751_s11  ;;  %s62_s28 = int_to_ptr.vmem [resolvable:$true] %s61_s28 }
  0x19   :  { %p12755_p9 = scmp.lt.u32.totalorder %s12751_s11, %s13840_s3 }
  0x1b   :  { %p12757_p10 = pnand %p12755_p9, %p12752_p8 }
  0x1d   :  { %12760 = shalt.err (!%p12757_p10)
}
  0x1e   :  { %s12761_s17 = scalar_lea.vmem %s62_s28, 768  ;;  %p12766_p12 = scmp.lt.s32.totalorder %s62_s28, %s62_s28 }
  0x1f   :  { %p12762_p11 = scmp.ne.s32.totalorder %s62_s28, %s12761_s17  ;;  %p12767_p13 = scmp.lt.s32.totalorder %s12761_s17, %s12761_s17 }
  0x21   :  { %p12768_p0 = por %p12767_p13, %p12766_p12 }
  0x23   :  { %p12769_p1 = pnand %p12768_p0, %p12762_p11 }
  0x25   :  { %12772 = shalt.err (!%p12769_p1)
}
  0x26   :  { %s12989_s1 = smov 16   ;;  %s12990_s14 = smov 1  }
  0x27   :  { %67 = dma.hbm_to_vmem [thread:$0]  %s13840_s3, 768, %s62_s28, [#allocation9], %s12989_s1, %s12989_s1, %s12990_s14  }
  0x28   :  { %s12991_s20 = smov [#allocation11]   ;;  %s12992_s22 = smov [#allocation14]  }
  0x29   :  { %s85_s21 = sshll.u32 %s12991_s20, 4  ;;  %s109_s25 = sshll.u32 %s12992_s22, 4  ;;  %s86_s21 = int_to_ptr.vmem [resolvable:$true] %s85_s21  ;;  %s110_s25 = int_to_ptr.vmem [resolvable:$true] %s109_s25 }
  0x2a   :  { %s12773_s29 = scalar_lea.hbm %s13842_s5, 16384 }
  0x2b   :  { %p12774_p2 = scmp.ne.s32.totalorder %s13842_s5, %s12773_s29  ;;  %p12777_p3 = scmp.lt.u32.totalorder %s12773_s29, %s13842_s5 }
  0x2d   :  { %p12779_p4 = pnand %p12777_p3, %p12774_p2 }
  0x2f   :  { %12782 = shalt.err (!%p12779_p4)
}
  0x30   :  { %s12783_s3 = scalar_lea.vmem %s86_s21, 16384  ;;  %p12788_p6 = scmp.lt.s32.totalorder %s86_s21, %s86_s21 }
  0x31   :  { %p12784_p5 = scmp.ne.s32.totalorder %s86_s21, %s12783_s3  ;;  %p12789_p7 = scmp.lt.s32.totalorder %s12783_s3, %s12783_s3 }
  0x33   :  { %p12790_p8 = por %p12789_p7, %p12788_p6 }
  0x35   :  { %p12791_p9 = pnand %p12790_p8, %p12784_p5 }
  0x37   :  { %12794 = shalt.err (!%p12791_p9)
}
  0x38   :  { %s12993_s28 = smov 256   ;;  %s12795_s18 = scalar_lea.hbm %s13844_s7, 6144 }
  0x39   :  { %91 = dma.hbm_to_vmem [thread:$0]  %s13842_s5, 16384, %s86_s21, [#allocation12], %s12993_s28, %s12993_s28, %s12989_s1  }
  0x3a   :  { %p12796_p10 = scmp.ne.s32.totalorder %s13844_s7, %s12795_s18  ;;  %p12799_p11 = scmp.lt.u32.totalorder %s12795_s18, %s13844_s7 }
  0x3c   :  { %p12801_p12 = pnand %p12799_p11, %p12796_p10 }
  0x3e   :  { %12804 = shalt.err (!%p12801_p12)
}
  0x3f   :  { %s12805_s27 = scalar_lea.vmem %s110_s25, 6144  ;;  %p12810_p0 = scmp.lt.s32.totalorder %s110_s25, %s110_s25 }
  0x40   :  { %p12806_p13 = scmp.ne.s32.totalorder %s110_s25, %s12805_s27  ;;  %p12811_p1 = scmp.lt.s32.totalorder %s12805_s27, %s12805_s27 }
  0x42   :  { %p12812_p2 = por %p12811_p1, %p12810_p0 }
  0x44   :  { %p12813_p3 = pnand %p12812_p2, %p12806_p13 }
  0x46   :  { %12816 = shalt.err (!%p12813_p3)
}
  0x47   :  { %s12994_s5 = smov 192   ;;  %s12995_s1 = smov 12  }
  0x48   :  { %115 = dma.hbm_to_vmem [thread:$0]  %s13844_s7, 6144, %s110_s25, [#allocation15], %s12994_s5, %s12994_s5, %s12995_s1  }
  0x49   :  { %s12996_s30 = smov [#allocation2]   ;;  %s12997_s12 = smov [#allocation7]  }
  0x4a   :  { %s28_s11 = sshll.u32 %s12996_s30, 4  ;;  %s49_s13 = sshll.u32 %s12997_s12, 4  ;;  %s29_s11 = int_to_ptr.vmem [resolvable:$true] %s28_s11  ;;  %s50_s13 = int_to_ptr.vmem [resolvable:$true] %s49_s13 }
  0x4b   :  { %s12817_s15 = scalar_lea.hbm %s13837_s0, 512 }
  0x4c   :  { %p12818_p4 = scmp.ne.s32.totalorder %s13837_s0, %s12817_s15  ;;  %p12821_p5 = scmp.lt.u32.totalorder %s12817_s15, %s13837_s0 }
  0x4e   :  { %p12823_p6 = pnand %p12821_p5, %p12818_p4 }
  0x50   :  { %12826 = shalt.err (!%p12823_p6)
}
  0x51   :  { %s12827_s7 = scalar_lea.vmem %s29_s11, 512  ;;  %p12832_p8 = scmp.lt.s32.totalorder %s29_s11, %s29_s11 }
  0x52   :  { %p12828_p7 = scmp.ne.s32.totalorder %s29_s11, %s12827_s7  ;;  %p12833_p9 = scmp.lt.s32.totalorder %s12827_s7, %s12827_s7 }
  0x54   :  { %p12834_p10 = por %p12833_p9, %p12832_p8 }
  0x56   :  { %p12835_p11 = pnand %p12834_p10, %p12828_p7 }
  0x58   :  { %12838 = shalt.err (!%p12835_p11)
}
  0x59   :  { %31 = dma.hbm_to_vmem [thread:$0]  %s13837_s0, 512, %s29_s11, [#allocation3]  }
  0x5a   :  { %s12839_s26 = scalar_lea.hbm %s13839_s2, 24576 }
  0x5b   :  { %p12840_p12 = scmp.ne.s32.totalorder %s13839_s2, %s12839_s26  ;;  %p12843_p13 = scmp.lt.u32.totalorder %s12839_s26, %s13839_s2 }
  0x5d   :  { %p12845_p0 = pnand %p12843_p13, %p12840_p12 }
  0x5f   :  { %12848 = shalt.err (!%p12845_p0)
}
  0x60   :  { %s12849_s29 = scalar_lea.vmem %s50_s13, 24576  ;;  %p12854_p2 = scmp.lt.s32.totalorder %s50_s13, %s50_s13 }
  0x61   :  { %p12850_p1 = scmp.ne.s32.totalorder %s50_s13, %s12849_s29  ;;  %p12855_p3 = scmp.lt.s32.totalorder %s12849_s29, %s12849_s29 }
  0x63   :  { %p12856_p4 = por %p12855_p3, %p12854_p2 }
  0x65   :  { %p12857_p5 = pnand %p12856_p4, %p12850_p1 }
  0x67   :  { %12860 = shalt.err (!%p12857_p5)
}
  0x68   :  { %55 = dma.hbm_to_vmem [thread:$0]  %s13839_s2, 24576, %s50_s13, [#allocation6], %s12986_s23, %s12986_s23, %s12987_s24  }
  0x69   :  { %s12998_s11 = smov [#allocation10]   ;;  %s12999_s3 = smov [#allocation13]  }
  0x6a   :  { %s73_s12 = sshll.u32 %s12998_s11, 4  ;;  %s97_s28 = sshll.u32 %s12999_s3, 4  ;;  %s74_s12 = int_to_ptr.vmem [resolvable:$true] %s73_s12  ;;  %s98_s28 = int_to_ptr.vmem [resolvable:$true] %s97_s28 }
  0x6b   :  { %s12861_s17 = scalar_lea.hbm %s13841_s4, 8192 }
  0x6c   :  { %p12862_p6 = scmp.ne.s32.totalorder %s13841_s4, %s12861_s17  ;;  %p12865_p7 = scmp.lt.u32.totalorder %s12861_s17, %s13841_s4 }
  0x6e   :  { %p12867_p8 = pnand %p12865_p7, %p12862_p6 }
  0x70   :  { %12870 = shalt.err (!%p12867_p8)
}
  0x71   :  { %s12871_s2 = scalar_lea.vmem %s74_s12, 8192  ;;  %p12876_p10 = scmp.lt.s32.totalorder %s74_s12, %s74_s12 }
  0x72   :  { %p12872_p9 = scmp.ne.s32.totalorder %s74_s12, %s12871_s2  ;;  %p12877_p11 = scmp.lt.s32.totalorder %s12871_s2, %s12871_s2 }
  0x74   :  { %p12878_p12 = por %p12877_p11, %p12876_p10 }
  0x76   :  { %p12879_p13 = pnand %p12878_p12, %p12872_p9 }
  0x78   :  { %12882 = shalt.err (!%p12879_p13)
}
  0x79   :  { %79 = dma.hbm_to_vmem [thread:$0]  %s13841_s4, 8192, %s74_s12, [#allocation9], %s12986_s23, %s12986_s23, %s12987_s24  }
  0x7a   :  { %s12883_s26 = scalar_lea.hbm %s13843_s6, 16384 }
  0x7b   :  { %p12884_p0 = scmp.ne.s32.totalorder %s13843_s6, %s12883_s26  ;;  %p12887_p1 = scmp.lt.u32.totalorder %s12883_s26, %s13843_s6 }
  0x7d   :  { %p12889_p2 = pnand %p12887_p1, %p12884_p0 }
  0x7f   :  { %12892 = shalt.err (!%p12889_p2)
}
  0x80   :  { %s12893_s29 = scalar_lea.vmem %s98_s28, 16384  ;;  %p12898_p4 = scmp.lt.s32.totalorder %s98_s28, %s98_s28 }
  0x81   :  { %p12894_p3 = scmp.ne.s32.totalorder %s98_s28, %s12893_s29  ;;  %p12899_p5 = scmp.lt.s32.totalorder %s12893_s29, %s12893_s29 }
  0x83   :  { %p12900_p6 = por %p12899_p5, %p12898_p4 }
  0x85   :  { %p12901_p7 = pnand %p12900_p6, %p12894_p3 }
  0x87   :  { %12904 = shalt.err (!%p12901_p7)
}
  0x88   :  { %103 = dma.hbm_to_vmem [thread:$0]  %s13843_s6, 16384, %s98_s28, [#allocation12], %s12986_s23, %s12986_s23, %s12987_s24  }
  0x89   :  { %s13000_s30 = smov [#allocation16]   ;;  %s12905_s15 = scalar_lea.hbm %s13845_s8, 3072 }
  0x8a   :  { %s121_s11 = sshll.u32 %s13000_s30, 4  ;;  %p12906_p8 = scmp.ne.s32.totalorder %s13845_s8, %s12905_s15  ;;  %s122_s11 = int_to_ptr.vmem [resolvable:$true] %s121_s11 }
  0x8b   :  { %p12909_p9 = scmp.lt.u32.totalorder %s12905_s15, %s13845_s8 }
  0x8d   :  { %p12911_p10 = pnand %p12909_p9, %p12906_p8 }
  0x8f   :  { %12914 = shalt.err (!%p12911_p10)
}
  0x90   :  { %s12915_s7 = scalar_lea.vmem %s122_s11, 3072  ;;  %p12920_p12 = scmp.lt.s32.totalorder %s122_s11, %s122_s11 }
  0x91   :  { %p12916_p11 = scmp.ne.s32.totalorder %s122_s11, %s12915_s7  ;;  %p12921_p13 = scmp.lt.s32.totalorder %s12915_s7, %s12915_s7 }
  0x93   :  { %p12922_p0 = por %p12921_p13, %p12920_p12 }
  0x95   :  { %p12923_p1 = pnand %p12922_p0, %p12916_p11 }
  0x97   :  { %12926 = shalt.err (!%p12923_p1)
}
  0x98   :  { %s13001_s6 = smov 64   ;;  %s13002_s23 = smov 4  }
  0x99   :  { %127 = dma.hbm_to_vmem [thread:$0]  %s13845_s8, 3072, %s122_s11, [#allocation15], %s13001_s6, %s13001_s6, %s13002_s23  }
  0x9a   :  { %s13003_s25 = smov [#allocation17]   ;;  %s12927_s20 = scalar_lea.hbm %s13846_s9, 1536 }
  0x9b   :  { %s133_s2 = sshll.u32 %s13003_s25, 4  ;;  %p12928_p2 = scmp.ne.s32.totalorder %s13846_s9, %s12927_s20  ;;  %s134_s2 = int_to_ptr.vmem [resolvable:$true] %s133_s2 }
  0x9c   :  { %p12931_p3 = scmp.lt.u32.totalorder %s12927_s20, %s13846_s9 }
  0x9e   :  { %p12933_p4 = pnand %p12931_p3, %p12928_p2 }
  0xa0   :  { %12936 = shalt.err (!%p12933_p4)
}
  0xa1   :  { %s12937_s1 = scalar_lea.vmem %s134_s2, 1536  ;;  %p12942_p6 = scmp.lt.s32.totalorder %s134_s2, %s134_s2 }
  0xa2   :  { %p12938_p5 = scmp.ne.s32.totalorder %s134_s2, %s12937_s1  ;;  %p12943_p7 = scmp.lt.s32.totalorder %s12937_s1, %s12937_s1 }
  0xa4   :  { %p12944_p8 = por %p12943_p7, %p12942_p6 }
  0xa6   :  { %p12945_p9 = pnand %p12944_p8, %p12938_p5 }
  0xa8   :  { %12948 = shalt.err (!%p12945_p9)
}
  0xa9   :  { %s13004_s8 = smov 512   ;;  %s13005_s21 = smov 32  }
  0xaa   :  { %139 = dma.hbm_to_vmem [thread:$0]  %s13846_s9, 1536, %s134_s2, [#allocation18], %s13004_s8, %s13004_s8, %s13005_s21  }
  0xab   :  { %12971 = dma.done.wait [#allocation3], 512  }
  0xac   :  { %12972 = vsyncadd [#allocation3], 4294966784 }
  0xad   :  { %12973 = dma.done.wait [#allocation6], 32768  }
  0xae   :  { %12974 = vsyncadd [#allocation6], 4294934528 }
  0xaf   :  { %12975 = dma.done.wait [#allocation9], 8960  }
  0xb0   :  { %12976 = vsyncadd [#allocation9], 4294958336 }
  0xb1   :  { %12977 = dma.done.wait [#allocation12], 32768  }
  0xb2   :  { %12978 = vsyncadd [#allocation12], 4294934528 }
  0xb3   :  { %12979 = dma.done.wait [#allocation15], 9216  }
  0xb4   :  { %12980 = vsyncadd [#allocation15], 4294958080 }
  0xb5   :  { %12981 = dma.done.wait [#allocation18], 1536  }
  0xb6   :  { %12982 = vsyncadd [#allocation18], 4294965760  ;;  %v11701_v0 = vld [vmem:[#allocation5 + $0x4] ss:$8 sps:$4 sm:$0xff]   ;;  %v11703_v1 = vld [vmem:[#allocation5] ss:$8 sps:$4 sm:$0xff]  }
  0xb7   :  { %580 = vmatprep.subr.bf16.mxu0 %v11701_v0  ;;  %v11704_v2 = vld [vmem:[#allocation5 + $0x14] ss:$8 sps:$4 sm:$0xff]   ;;  %v11706_v3 = vld [vmem:[#allocation5 + $0x10] ss:$8 sps:$4 sm:$0xff]   ;;  %v11707_v4 = vld [vmem:[#allocation5 + $0x24] ss:$8 sps:$4 sm:$0xff]  }
  0xb8   :  { %581 = vmatpush1.bf16.msra.mxu0 %v11703_v1  ;;  %v11709_v5 = vld [vmem:[#allocation5 + $0x20] ss:$8 sps:$4 sm:$0xff]   ;;  %v11710_v6 = vld [vmem:[#allocation5 + $0x34] ss:$8 sps:$4 sm:$0xff]   ;;  %v11712_v7 = vld [vmem:[#allocation5 + $0x30] ss:$8 sps:$4 sm:$0xff]  }
  0xb9   :  { %582 = vmatprep.subr.bf16.mxu0 %v11704_v2  ;;  %v11713_v8 = vld [vmem:[#allocation5 + $0x44] ss:$8 sps:$4 sm:$0xff]   ;;  %v11715_v9 = vld [vmem:[#allocation5 + $0x40] ss:$8 sps:$4 sm:$0xff]   ;;  %v11716_v10 = vld [vmem:[#allocation5 + $0x54] ss:$8 sps:$4 sm:$0xff]  }
  0xba   :  { %v11718_v11 = vld [vmem:[#allocation5 + $0x50] ss:$8 sps:$4 sm:$0xff]   ;;  %v11719_v12 = vld [vmem:[#allocation5 + $0x64] ss:$8 sps:$4 sm:$0xff]   ;;  %v11721_v15 = vld [vmem:[#allocation5 + $0x60] ss:$8 sps:$4 sm:$0xff]  }
  0xbb   :  { %v172_v13 = vld [vmem:[#allocation2 + $0x8] sm:$0xff]  ;;  %v11722_v16 = vld [vmem:[#allocation5 + $0x74] ss:$8 sps:$4 sm:$0xff]   ;;  %v11724_v17 = vld [vmem:[#allocation5 + $0x70] ss:$8 sps:$4 sm:$0xff]   ;;  %vm13007_vm0 = vmmov 0  }
  0xbc   :  { %583 = vmatpush1.bf16.msra.mxu0 %v11706_v3  ;;  %v185_v14 = vpack.c.bf16 %v172_v13, %v172_v13  ;;  %v11725_v18 = vld [vmem:[#allocation5 + $0x84] ss:$8 sps:$4 sm:$0xff]   ;;  %v11727_v19 = vld [vmem:[#allocation5 + $0x80] ss:$8 sps:$4 sm:$0xff]   ;;  %v11728_v20 = vld [vmem:[#allocation5 + $0x94] ss:$8 sps:$4 sm:$0xff]  }
  0xbd   :  { %584 = vmatprep.subr.bf16.mxu0 %v11707_v4  ;;  %v11730_v21 = vld [vmem:[#allocation5 + $0x90] ss:$8 sps:$4 sm:$0xff]   ;;  %v11731_v22 = vld [vmem:[#allocation5 + $0xa4] ss:$8 sps:$4 sm:$0xff]   ;;  %v11733_v23 = vld [vmem:[#allocation5 + $0xa0] ss:$8 sps:$4 sm:$0xff]  }
  0xbe   :  { %612 = vmatprep.mubr.bf16.mxu0 %v185_v14  ;;  %v11734_v24 = vld [vmem:[#allocation5 + $0xb4] ss:$8 sps:$4 sm:$0xff]   ;;  %v11736_v25 = vld [vmem:[#allocation5 + $0xb0] ss:$8 sps:$4 sm:$0xff]   ;;  %v11737_v26 = vld [vmem:[#allocation5 + $0xc4] ss:$8 sps:$4 sm:$0xff]  }
  0xbf   :  { %v11797_v27 = vld [vmem:[#allocation7 + $0x4] ss:$8 sps:$4 sm:$0xff]   ;;  %v11739_v28 = vld [vmem:[#allocation5 + $0xc0] ss:$8 sps:$4 sm:$0xff]   ;;  %v11803_v30 = vld [vmem:[#allocation7 + $0x14] ss:$8 sps:$4 sm:$0xff]  }
  0xc0   :  { %585 = vmatpush1.bf16.msra.mxu0 %v11709_v5  ;;  %948 = vmatprep.subr.bf16.mxu1 %v11797_v27  ;;  %v11802_v29 = vld [vmem:[#allocation7] ss:$8 sps:$4 sm:$0xff]   ;;  %v11740_v31 = vld [vmem:[#allocation5 + $0xd4] ss:$8 sps:$4 sm:$0xff]   ;;  %v11742_v32 = vld [vmem:[#allocation5 + $0xd0] ss:$8 sps:$4 sm:$0xff]  }
  0xc1   :  { %586 = vmatprep.subr.bf16.mxu0 %v11710_v6  ;;  %949 = vmatpush1.bf16.xpose.msra.mxu1 %v11802_v29  ;;  %v11743_v33 = vld [vmem:[#allocation5 + $0xe4] ss:$8 sps:$4 sm:$0xff]   ;;  %v11808_v34 = vld [vmem:[#allocation7 + $0x10] ss:$8 sps:$4 sm:$0xff]   ;;  %v11745_v35 = vld [vmem:[#allocation5 + $0xe0] ss:$8 sps:$4 sm:$0xff]  }
  0xc2   :  { %950 = vmatprep.subr.bf16.mxu1 %v11803_v30  ;;  %v11746_v36 = vld [vmem:[#allocation5 + $0xf4] ss:$8 sps:$4 sm:$0xff]   ;;  %v11748_v37 = vld [vmem:[#allocation5 + $0xf0] ss:$8 sps:$4 sm:$0xff]   ;;  %v171_v38 = vld [vmem:[#allocation2] sm:$0xff]  ;;  %vm2368_vm1 = vcmask 261120  }
  0xc3   :  { %v11751_v39 = vld [vmem:[#allocation5 + $0x104] ss:$8 sps:$4 sm:$0xff]   ;;  %v174_v40 = vld [vmem:[#allocation2 + $0x18] sm:$0xff]  ;;  %v11749_v41 = vld [vmem:[#allocation5 + $0x100] ss:$8 sps:$4 sm:$0xff]   ;;  %v184_v42 = vpack.c.bf16 %v171_v38, %v171_v38  ;;  %vm2985_vm2 = vcmask 64512  }
  0xc4   :  { %587 = vmatpush1.bf16.msra.mxu0 %v11712_v7  ;;  %v11754_v43 = vld [vmem:[#allocation5 + $0x114] ss:$8 sps:$4 sm:$0xff]   ;;  %v187_v44 = vpack.c.bf16 %v174_v40, %v174_v40  ;;  %v11752_v45 = vld [vmem:[#allocation5 + $0x110] ss:$8 sps:$4 sm:$0xff]   ;;  %v11757_v46 = vld [vmem:[#allocation5 + $0x124] ss:$8 sps:$4 sm:$0xff]  }
  0xc5   :  { %588 = vmatprep.subr.bf16.mxu0 %v11713_v8  ;;  %v11755_v47 = vld [vmem:[#allocation5 + $0x120] ss:$8 sps:$4 sm:$0xff]   ;;  %v11760_v48 = vld [vmem:[#allocation5 + $0x134] ss:$8 sps:$4 sm:$0xff]   ;;  %v11758_v49 = vld [vmem:[#allocation5 + $0x130] ss:$8 sps:$4 sm:$0xff]  }
  0xc6   :  { %v11763_v50 = vld [vmem:[#allocation5 + $0x144] ss:$8 sps:$4 sm:$0xff]   ;;  %v11761_v51 = vld [vmem:[#allocation5 + $0x140] ss:$8 sps:$4 sm:$0xff]   ;;  %v11766_v52 = vld [vmem:[#allocation5 + $0x154] ss:$8 sps:$4 sm:$0xff]  }
  0xc7   :  { %v11764_v53 = vld [vmem:[#allocation5 + $0x150] ss:$8 sps:$4 sm:$0xff]   ;;  %v11769_v54 = vld [vmem:[#allocation5 + $0x164] ss:$8 sps:$4 sm:$0xff]   ;;  %v11767_v55 = vld [vmem:[#allocation5 + $0x160] ss:$8 sps:$4 sm:$0xff]  }
  0xc8   :  { %589 = vmatpush1.bf16.msra.mxu0 %v11715_v9  ;;  %v11772_v56 = vld [vmem:[#allocation5 + $0x174] ss:$8 sps:$4 sm:$0xff]   ;;  %v11770_v57 = vld [vmem:[#allocation5 + $0x170] ss:$8 sps:$4 sm:$0xff]   ;;  %v11775_v58 = vld [vmem:[#allocation5 + $0x184] ss:$8 sps:$4 sm:$0xff]  }
  0xc9   :  { %590 = vmatprep.subr.bf16.mxu0 %v11716_v10  ;;  %951 = vmatpush1.bf16.xpose.msra.mxu1 %v11808_v34  ;;  %v11773_v59 = vld [vmem:[#allocation5 + $0x180] ss:$8 sps:$4 sm:$0xff]   ;;  %v11778_v60 = vld [vmem:[#allocation5 + $0x194] ss:$8 sps:$4 sm:$0xff]   ;;  %v11776_v61 = vld [vmem:[#allocation5 + $0x190] ss:$8 sps:$4 sm:$0xff]  }
  0xca   :  { %v11781_v62 = vld [vmem:[#allocation5 + $0x1a4] ss:$8 sps:$4 sm:$0xff]   ;;  %v11779_v63 = vld [vmem:[#allocation5 + $0x1a0] ss:$8 sps:$4 sm:$0xff]   ;;  %v11784_v0 = vld [vmem:[#allocation5 + $0x1b4] ss:$8 sps:$4 sm:$0xff]  }
  0xcb   :  { %v11782_v1 = vld [vmem:[#allocation5 + $0x1b0] ss:$8 sps:$4 sm:$0xff]   ;;  %v11787_v2 = vld [vmem:[#allocation5 + $0x1c4] ss:$8 sps:$4 sm:$0xff]   ;;  %v11785_v3 = vld [vmem:[#allocation5 + $0x1c0] ss:$8 sps:$4 sm:$0xff]  }
  0xcc   :  { %591 = vmatpush1.bf16.msra.mxu0 %v11718_v11  ;;  %v11790_v4 = vld [vmem:[#allocation5 + $0x1d4] ss:$8 sps:$4 sm:$0xff]   ;;  %v11788_v5 = vld [vmem:[#allocation5 + $0x1d0] ss:$8 sps:$4 sm:$0xff]   ;;  %v11793_v6 = vld [vmem:[#allocation5 + $0x1e4] ss:$8 sps:$4 sm:$0xff]  }
  0xcd   :  { %592 = vmatprep.subr.bf16.mxu0 %v11719_v12  ;;  %v11791_v7 = vld [vmem:[#allocation5 + $0x1e0] ss:$8 sps:$4 sm:$0xff]   ;;  %v11796_v8 = vld [vmem:[#allocation5 + $0x1f4] ss:$8 sps:$4 sm:$0xff]   ;;  %v11794_v9 = vld [vmem:[#allocation5 + $0x1f0] ss:$8 sps:$4 sm:$0xff]  }
  0xce   :  { %v173_v10 = vld [vmem:[#allocation2 + $0x10] sm:$0xff]  ;;  %v11801_v11 = vld [vmem:[#allocation7 + $0x144] ss:$8 sps:$4 sm:$0xff]   ;;  %v11799_v13 = vld [vmem:[#allocation7 + $0x140] ss:$8 sps:$4 sm:$0xff]   ;;  %s13009_s9 = smov [#allocation19]  }
  0xcf   :  { %v186_v12 = vpack.c.bf16 %v173_v10, %v173_v10  ;;  %v11807_v14 = vld [vmem:[#allocation7 + $0x154] ss:$8 sps:$4 sm:$0xff]   ;;  %v11818_v38 = vld [vmem:[#allocation7 + $0x190] ss:$8 sps:$4 sm:$0xff]   ;;  %v11826_v40 = vld [vmem:[#allocation7 + $0x1c4] ss:$8 sps:$4 sm:$0xff]  }
  0xd0   :  { %593 = vmatpush1.bf16.msra.mxu0 %v11721_v15  ;;  %v11805_v15 = vld [vmem:[#allocation7 + $0x150] ss:$8 sps:$4 sm:$0xff]   ;;  %v11872_v10 = vld [vmem:[#allocation7 + $0x2c0] ss:$8 sps:$4 sm:$0xff]   ;;  %s10598_s0 = sshll.u32 %s13009_s9, 4  ;;  %s10599_s0 = int_to_ptr.vmem [resolvable:$true] %s10598_s0 }
  0xd1   :  { %594 = vmatprep.subr.bf16.mxu0 %v11722_v16  ;;  %v11811_v16 = vld [vmem:[#allocation7 + $0x24] ss:$8 sps:$4 sm:$0xff]   ;;  %s12949_s30 = scalar_lea.vmem %s10599_s0, 128  ;;  %p12954_p11 = scmp.lt.s32.totalorder %s10599_s0, %s10599_s0 }
  0xd2   :  { %1008 = vmatprep.subr.bf16.mxu1 %v11811_v16  ;;  %v11881_v16 = vld [vmem:[#allocation7 + $0xe0] ss:$8 sps:$4 sm:$0xff]   ;;  %p12950_p10 = scmp.ne.s32.totalorder %s10599_s0, %s12949_s30  ;;  %p12955_p12 = scmp.lt.s32.totalorder %s12949_s30, %s12949_s30 }
  0xd4   :  { %595 = vmatpush1.bf16.msra.mxu0 %v11724_v17  ;;  %v11814_v17 = vld [vmem:[#allocation7 + $0x184] ss:$8 sps:$4 sm:$0xff]   ;;  %p12956_p13 = por %p12955_p12, %p12954_p11 }
  0xd5   :  { %596 = vmatprep.subr.bf16.mxu0 %v11725_v18  ;;  %v252_v18 = vlaneseq }
  0xd6   :  { %p12957_p0 = pnand %p12956_p13, %p12950_p10 }
  0xd8   :  { %597 = vmatpush1.bf16.msra.mxu0 %v11727_v19  ;;  %v13197_v19 = vshrl.u32 %v252_v18, 7  ;;  %v11884_v18 = vld [vmem:[#allocation7 + $0xf0] ss:$8 sps:$4 sm:$0xff]  }
  0xd9   :  { %598 = vmatprep.subr.bf16.mxu0 %v11728_v20 }
  0xda   :  { %v13200_v20 = vsub.s32 0, %v13197_v19 }
  0xdc   :  { %599 = vmatpush1.bf16.msra.mxu0 %v11730_v21  ;;  %v175_v21 = vld [vmem:[#allocation17] sm:$0xff] }
  0xdd   :  { %600 = vmatprep.subr.bf16.mxu0 %v11731_v22  ;;  %v176_v22 = vld [vmem:[#allocation17 + $0x8] sm:$0xff] }
  0xe0   :  { %601 = vmatpush1.bf16.msra.mxu0 %v11733_v23  ;;  %v255_v23 = vrot.slane %v175_v21, %v13200_v20  ;;  %v11889_v21 = vld [vmem:[#allocation7 + $0x104] ss:$8 sps:$4 sm:$0xff]  }
  0xe1   :  { %602 = vmatprep.subr.bf16.mxu0 %v11734_v24  ;;  %v259_v24 = vrot.slane %v176_v22, %v13200_v20  ;;  %v11887_v22 = vld [vmem:[#allocation7 + $0x100] ss:$8 sps:$4 sm:$0xff]  }
  0xe4   :  { %603 = vmatpush1.bf16.msra.mxu0 %v11736_v25 }
  0xe5   :  { %604 = vmatprep.subr.bf16.mxu0 %v11737_v26 }
  0xe8   :  { %605 = vmatpush1.bf16.msra.mxu0 %v11739_v28 }
  0xe9   :  { %606 = vmatprep.subr.bf16.mxu0 %v11740_v31 }
  0xec   :  { %607 = vmatpush1.bf16.msra.mxu0 %v11742_v32  ;;  %v11809_v32 = vld [vmem:[#allocation7 + $0x20] ss:$8 sps:$4 sm:$0xff]  }
  0xed   :  { %608 = vmatprep.subr.bf16.mxu0 %v11743_v33  ;;  %v11812_v33 = vld [vmem:[#allocation7 + $0x180] ss:$8 sps:$4 sm:$0xff]  }
  0xf0   :  { %609 = vmatpush1.bf16.msra.mxu0 %v11745_v35  ;;  %v11817_v35 = vld [vmem:[#allocation7 + $0x34] ss:$8 sps:$4 sm:$0xff]  }
  0xf1   :  { %610 = vmatprep.subr.bf16.mxu0 %v11746_v36  ;;  %v11820_v36 = vld [vmem:[#allocation7 + $0x194] ss:$8 sps:$4 sm:$0xff]  }
  0xf4   :  { %611 = vmatpush1.bf16.msra.mxu0 %v11748_v37  ;;  %v11815_v37 = vld [vmem:[#allocation7 + $0x30] ss:$8 sps:$4 sm:$0xff]  }
  0xf5   :  { %621 = vmatprep.subr.bf16.mxu0 %v11751_v39  ;;  %v11823_v39 = vld [vmem:[#allocation7 + $0x44] ss:$8 sps:$4 sm:$0xff]  }
  0xf7   :  { %613 = vmatmul.mubr.bf16.vlgmr.msra.gmra.mrb[0].mxu0 %v184_v42  ;;  %v11824_v42 = vld [vmem:[#allocation7 + $0x1c0] ss:$8 sps:$4 sm:$0xff]  }
  0xf8   :  { %622 = vmatpush1.bf16.msra.mxu0 %v11749_v41  ;;  %653 = vmatprep.mubr.bf16.mxu0 %v187_v44  ;;  %v11821_v41 = vld [vmem:[#allocation7 + $0x40] ss:$8 sps:$4 sm:$0xff]   ;;  %v11832_v44 = vld [vmem:[#allocation7 + $0x1d4] ss:$8 sps:$4 sm:$0xff]  }
  0xf9   :  { %623 = vmatprep.subr.bf16.mxu0 %v11754_v43  ;;  %v11829_v43 = vld [vmem:[#allocation7 + $0x54] ss:$8 sps:$4 sm:$0xff]  }
  0xfc   :  { %624 = vmatpush1.bf16.msra.mxu0 %v11752_v45  ;;  %v11827_v45 = vld [vmem:[#allocation7 + $0x50] ss:$8 sps:$4 sm:$0xff]  }
  0xfd   :  { %625 = vmatprep.subr.bf16.mxu0 %v11757_v46  ;;  %v11830_v46 = vld [vmem:[#allocation7 + $0x1d0] ss:$8 sps:$4 sm:$0xff]  }
 0x100   :  { %626 = vmatpush1.bf16.msra.mxu0 %v11755_v47  ;;  %v11835_v47 = vld [vmem:[#allocation7 + $0x64] ss:$8 sps:$4 sm:$0xff]  }
 0x101   :  { %627 = vmatprep.subr.bf16.mxu0 %v11760_v48  ;;  %v11838_v48 = vld [vmem:[#allocation7 + $0x204] ss:$8 sps:$4 sm:$0xff]  }
 0x104   :  { %628 = vmatpush1.bf16.msra.mxu0 %v11758_v49  ;;  %v11833_v49 = vld [vmem:[#allocation7 + $0x60] ss:$8 sps:$4 sm:$0xff]  }
 0x105   :  { %629 = vmatprep.subr.bf16.mxu0 %v11763_v50  ;;  %v11836_v50 = vld [vmem:[#allocation7 + $0x200] ss:$8 sps:$4 sm:$0xff]  }
 0x108   :  { %630 = vmatpush1.bf16.msra.mxu0 %v11761_v51  ;;  %v11841_v51 = vld [vmem:[#allocation7 + $0x74] ss:$8 sps:$4 sm:$0xff]  }
 0x109   :  { %631 = vmatprep.subr.bf16.mxu0 %v11766_v52  ;;  %v11844_v52 = vld [vmem:[#allocation7 + $0x214] ss:$8 sps:$4 sm:$0xff]  }
 0x10c   :  { %632 = vmatpush1.bf16.msra.mxu0 %v11764_v53  ;;  %v11839_v53 = vld [vmem:[#allocation7 + $0x70] ss:$8 sps:$4 sm:$0xff]  }
 0x10d   :  { %633 = vmatprep.subr.bf16.mxu0 %v11769_v54  ;;  %v11842_v54 = vld [vmem:[#allocation7 + $0x210] ss:$8 sps:$4 sm:$0xff]  }
 0x110   :  { %634 = vmatpush1.bf16.msra.mxu0 %v11767_v55  ;;  %v11847_v55 = vld [vmem:[#allocation7 + $0x84] ss:$8 sps:$4 sm:$0xff]  }
 0x111   :  { %635 = vmatprep.subr.bf16.mxu0 %v11772_v56  ;;  %v11850_v56 = vld [vmem:[#allocation7 + $0x244] ss:$8 sps:$4 sm:$0xff]  }
 0x114   :  { %636 = vmatpush1.bf16.msra.mxu0 %v11770_v57  ;;  %v11845_v57 = vld [vmem:[#allocation7 + $0x80] ss:$8 sps:$4 sm:$0xff]  }
 0x115   :  { %637 = vmatprep.subr.bf16.mxu0 %v11775_v58  ;;  %v11848_v58 = vld [vmem:[#allocation7 + $0x240] ss:$8 sps:$4 sm:$0xff]  }
 0x118   :  { %638 = vmatpush1.bf16.msra.mxu0 %v11773_v59  ;;  %v11853_v59 = vld [vmem:[#allocation7 + $0x94] ss:$8 sps:$4 sm:$0xff]  }
 0x119   :  { %639 = vmatprep.subr.bf16.mxu0 %v11778_v60  ;;  %v11856_v60 = vld [vmem:[#allocation7 + $0x254] ss:$8 sps:$4 sm:$0xff]  }
 0x11c   :  { %640 = vmatpush1.bf16.msra.mxu0 %v11776_v61  ;;  %v11851_v61 = vld [vmem:[#allocation7 + $0x90] ss:$8 sps:$4 sm:$0xff]  }
 0x11d   :  { %641 = vmatprep.subr.bf16.mxu0 %v11781_v62  ;;  %v11854_v62 = vld [vmem:[#allocation7 + $0x250] ss:$8 sps:$4 sm:$0xff]  }
 0x120   :  { %642 = vmatpush1.bf16.msra.mxu0 %v11779_v63  ;;  %v11859_v63 = vld [vmem:[#allocation7 + $0xa4] ss:$8 sps:$4 sm:$0xff]  }
 0x121   :  { %643 = vmatprep.subr.bf16.mxu0 %v11784_v0  ;;  %v11862_v0 = vld [vmem:[#allocation7 + $0x284] ss:$8 sps:$4 sm:$0xff]  }
 0x124   :  { %644 = vmatpush1.bf16.msra.mxu0 %v11782_v1  ;;  %v11857_v1 = vld [vmem:[#allocation7 + $0xa0] ss:$8 sps:$4 sm:$0xff]  }
 0x125   :  { %645 = vmatprep.subr.bf16.mxu0 %v11787_v2  ;;  %v11860_v2 = vld [vmem:[#allocation7 + $0x280] ss:$8 sps:$4 sm:$0xff]  }
 0x128   :  { %646 = vmatpush1.bf16.msra.mxu0 %v11785_v3  ;;  %v11865_v3 = vld [vmem:[#allocation7 + $0xb4] ss:$8 sps:$4 sm:$0xff]  }
 0x129   :  { %647 = vmatprep.subr.bf16.mxu0 %v11790_v4  ;;  %v11868_v4 = vld [vmem:[#allocation7 + $0x294] ss:$8 sps:$4 sm:$0xff]  }
 0x12c   :  { %648 = vmatpush1.bf16.msra.mxu0 %v11788_v5  ;;  %v11863_v5 = vld [vmem:[#allocation7 + $0xb0] ss:$8 sps:$4 sm:$0xff]  }
 0x12d   :  { %649 = vmatprep.subr.bf16.mxu0 %v11793_v6  ;;  %v11866_v6 = vld [vmem:[#allocation7 + $0x290] ss:$8 sps:$4 sm:$0xff]  }
 0x130   :  { %650 = vmatpush1.bf16.msra.mxu0 %v11791_v7  ;;  %v11871_v7 = vld [vmem:[#allocation7 + $0xc4] ss:$8 sps:$4 sm:$0xff]  }
 0x131   :  { %651 = vmatprep.subr.bf16.mxu0 %v11796_v8  ;;  %v11874_v8 = vld [vmem:[#allocation7 + $0x2c4] ss:$8 sps:$4 sm:$0xff]  }
 0x134   :  { %652 = vmatpush1.bf16.msra.mxu0 %v11794_v9  ;;  %v11869_v9 = vld [vmem:[#allocation7 + $0xc0] ss:$8 sps:$4 sm:$0xff]  }
 0x135   :  { %1548 = vmatprep.subr.bf16.mxu0 %v11801_v11  ;;  %v11877_v11 = vld [vmem:[#allocation7 + $0xd4] ss:$8 sps:$4 sm:$0xff]  }
 0x137   :  { %654 = vmatmul.mubr.bf16.vlgmr.msra.gmra.mrb[0].mxu0 %v186_v12  ;;  %v11880_v12 = vld [vmem:[#allocation7 + $0x2d4] ss:$8 sps:$4 sm:$0xff]  }
 0x13d   :  { %1549 = vmatpush1.bf16.xpose.msra.mxu0 %v11799_v13  ;;  %v11875_v13 = vld [vmem:[#allocation7 + $0xd0] ss:$8 sps:$4 sm:$0xff]  }
 0x13e   :  { %1550 = vmatprep.subr.bf16.mxu0 %v11807_v14  ;;  %v11878_v14 = vld [vmem:[#allocation7 + $0x2d0] ss:$8 sps:$4 sm:$0xff]  }
 0x145   :  { %1551 = vmatpush1.bf16.xpose.msra.mxu0 %v11805_v15  ;;  %v11883_v15 = vld [vmem:[#allocation7 + $0xe4] ss:$8 sps:$4 sm:$0xff]  }
 0x146   :  { %1668 = vmatprep.subr.bf16.mxu0 %v11814_v17  ;;  %v11886_v17 = vld [vmem:[#allocation7 + $0xf4] ss:$8 sps:$4 sm:$0xff]  }
 0x20a   :  { %v655_v25 = vpop.f32.mrb[0].mxu0 }
 0x20b   :  { %v13204_v26 = vadd.f32 %v655_v25, %v255_v23  ;;  %v657_v27 = vpop.f32.mrb[1].mxu0  ;;  %v11892_v23 = vld [vmem:[#allocation7 + $0x114] ss:$8 sps:$4 sm:$0xff]   ;;  %v11895_v25 = vld [vmem:[#allocation7 + $0x124] ss:$8 sps:$4 sm:$0xff]  }
 0x20c   :  { %v13206_v28 = vadd.f32 %v657_v27, %v259_v24  ;;  %v659_v29 = vpop.f32.mrb[2].mxu0  ;;  %v11890_v24 = vld [vmem:[#allocation7 + $0x110] ss:$8 sps:$4 sm:$0xff]   ;;  %v11893_v27 = vld [vmem:[#allocation7 + $0x120] ss:$8 sps:$4 sm:$0xff]  }
 0x20d   :  { %v660_v30 = vpop.f32.mrb[3].mxu0  ;;  %v13214_v34 = vpack.c.bf16 %v13204_v26, %v13204_v26  ;;  %v11898_v29 = vld [vmem:[#allocation7 + $0x134] ss:$8 sps:$4 sm:$0xff]  }
 0x20e   :  { %v13210_v31 = vpack.c.bf16 %v13206_v28, %v13206_v28  ;;  %v11896_v30 = vld [vmem:[#allocation7 + $0x130] ss:$8 sps:$4 sm:$0xff]  }
 0x210   :  { %980 = vmatprep.mubr.bf16.mxu1 %v13210_v31  ;;  %1580 = vmatprep.mubr.bf16.mxu0 %v13210_v31 }
 0x211   :  { %981 = vmatmul.mubr.bf16.vlgmr.msra.gmra.mrb[0].mxu1 %v13214_v34  ;;  %1581 = vmatmul.mubr.bf16.vlgmr.msra.gmra.mrb[4].mxu0 %v13214_v34 }
 0x212   :  { %1009 = vmatpush1.bf16.xpose.msra.mxu1 %v11809_v32  ;;  %1669 = vmatpush1.bf16.xpose.msra.mxu0 %v11812_v33  ;;  %v11901_v32 = vld [vmem:[#allocation7 + $0x164] ss:$8 sps:$4 sm:$0xff]   ;;  %v11899_v33 = vld [vmem:[#allocation7 + $0x160] ss:$8 sps:$4 sm:$0xff]  }
 0x213   :  { %1040 = vmatprep.mubr.bf16.mxu1 %v13210_v31  ;;  %1700 = vmatprep.mubr.bf16.mxu0 %v13210_v31 }
 0x214   :  { %1010 = vmatprep.subr.bf16.mxu1 %v11817_v35  ;;  %1670 = vmatprep.subr.bf16.mxu0 %v11820_v36  ;;  %v11904_v35 = vld [vmem:[#allocation7 + $0x174] ss:$8 sps:$4 sm:$0xff]   ;;  %v11902_v36 = vld [vmem:[#allocation7 + $0x170] ss:$8 sps:$4 sm:$0xff]  }
 0x21a   :  { %1011 = vmatpush1.bf16.xpose.msra.mxu1 %v11815_v37  ;;  %1671 = vmatpush1.bf16.xpose.msra.mxu0 %v11818_v38  ;;  %v11907_v37 = vld [vmem:[#allocation7 + $0x1a4] ss:$8 sps:$4 sm:$0xff]   ;;  %v11905_v38 = vld [vmem:[#allocation7 + $0x1a0] ss:$8 sps:$4 sm:$0xff]  }
 0x21b   :  { %1068 = vmatprep.subr.bf16.mxu1 %v11823_v39  ;;  %1788 = vmatprep.subr.bf16.mxu0 %v11826_v40  ;;  %v11910_v39 = vld [vmem:[#allocation7 + $0x1b4] ss:$8 sps:$4 sm:$0xff]   ;;  %v11908_v40 = vld [vmem:[#allocation7 + $0x1b0] ss:$8 sps:$4 sm:$0xff]  }
 0x221   :  { %1041 = vmatmul.mubr.bf16.vlgmr.msra.gmra.mrb[4].mxu1 %v13214_v34  ;;  %1701 = vmatmul.mubr.bf16.vlgmr.msra.gmra.mrb[8].mxu0 %v13214_v34 }
 0x222   :  { %1069 = vmatpush1.bf16.xpose.msra.mxu1 %v11821_v41  ;;  %1100 = vmatprep.mubr.bf16.mxu1 %v13210_v31  ;;  %v11913_v41 = vld [vmem:[#allocation7 + $0x1e4] ss:$8 sps:$4 sm:$0xff]  }
 0x223   :  { %1789 = vmatpush1.bf16.xpose.msra.mxu0 %v11824_v42  ;;  %1820 = vmatprep.mubr.bf16.mxu0 %v13210_v31  ;;  %v11911_v42 = vld [vmem:[#allocation7 + $0x1e0] ss:$8 sps:$4 sm:$0xff]  }
 0x224   :  { %1070 = vmatprep.subr.bf16.mxu1 %v11829_v43  ;;  %1790 = vmatprep.subr.bf16.mxu0 %v11832_v44  ;;  %v11916_v43 = vld [vmem:[#allocation7 + $0x1f4] ss:$8 sps:$4 sm:$0xff]   ;;  %v11914_v44 = vld [vmem:[#allocation7 + $0x1f0] ss:$8 sps:$4 sm:$0xff]  }
 0x22a   :  { %1071 = vmatpush1.bf16.xpose.msra.mxu1 %v11827_v45  ;;  %v11919_v45 = vld [vmem:[#allocation7 + $0x224] ss:$8 sps:$4 sm:$0xff]  }
 0x22b   :  { %1791 = vmatpush1.bf16.xpose.msra.mxu0 %v11830_v46  ;;  %1128 = vmatprep.subr.bf16.mxu1 %v11835_v47  ;;  %v11917_v46 = vld [vmem:[#allocation7 + $0x220] ss:$8 sps:$4 sm:$0xff]   ;;  %v11922_v47 = vld [vmem:[#allocation7 + $0x234] ss:$8 sps:$4 sm:$0xff]  }
 0x22c   :  { %1908 = vmatprep.subr.bf16.mxu0 %v11838_v48  ;;  %v11920_v48 = vld [vmem:[#allocation7 + $0x230] ss:$8 sps:$4 sm:$0xff]  }
 0x231   :  { %1101 = vmatmul.mubr.bf16.vlgmr.msra.gmra.mrb[8].mxu1 %v13214_v34 }
 0x232   :  { %1821 = vmatmul.mubr.bf16.vlgmr.msra.gmra.mrb[12].mxu0 %v13214_v34  ;;  %1129 = vmatpush1.bf16.xpose.msra.mxu1 %v11833_v49  ;;  %v11925_v49 = vld [vmem:[#allocation7 + $0x264] ss:$8 sps:$4 sm:$0xff]  }
 0x233   :  { %1160 = vmatprep.mubr.bf16.mxu1 %v13210_v31  ;;  %1909 = vmatpush1.bf16.xpose.msra.mxu0 %v11836_v50  ;;  %v11923_v50 = vld [vmem:[#allocation7 + $0x260] ss:$8 sps:$4 sm:$0xff]  }
 0x234   :  { %1940 = vmatprep.mubr.bf16.mxu0 %v13210_v31  ;;  %1130 = vmatprep.subr.bf16.mxu1 %v11841_v51  ;;  %v11928_v51 = vld [vmem:[#allocation7 + $0x274] ss:$8 sps:$4 sm:$0xff]  }
 0x235   :  { %1910 = vmatprep.subr.bf16.mxu0 %v11844_v52 }
 0x23a   :  { %1131 = vmatpush1.bf16.xpose.msra.mxu1 %v11839_v53 }
 0x23b   :  { %1911 = vmatpush1.bf16.xpose.msra.mxu0 %v11842_v54  ;;  %1188 = vmatprep.subr.bf16.mxu1 %v11847_v55 }
 0x23c   :  { %2028 = vmatprep.subr.bf16.mxu0 %v11850_v56 }
 0x241   :  { %1161 = vmatmul.mubr.bf16.vlgmr.msra.gmra.mrb[12].mxu1 %v13214_v34 }
 0x242   :  { %1941 = vmatmul.mubr.bf16.vlgmr.msra.gmra.mrb[16].mxu0 %v13214_v34  ;;  %1189 = vmatpush1.bf16.xpose.msra.mxu1 %v11845_v57 }
 0x243   :  { %1220 = vmatprep.mubr.bf16.mxu1 %v13210_v31  ;;  %2029 = vmatpush1.bf16.xpose.msra.mxu0 %v11848_v58  ;;  %v11926_v58 = vld [vmem:[#allocation7 + $0x270] ss:$8 sps:$4 sm:$0xff]  }
 0x244   :  { %2060 = vmatprep.mubr.bf16.mxu0 %v13210_v31  ;;  %1190 = vmatprep.subr.bf16.mxu1 %v11853_v59 }
 0x245   :  { %2030 = vmatprep.subr.bf16.mxu0 %v11856_v60 }
 0x24a   :  { %1191 = vmatpush1.bf16.xpose.msra.mxu1 %v11851_v61  ;;  %v11931_v61 = vld [vmem:[#allocation7 + $0x2a4] ss:$8 sps:$4 sm:$0xff]  }
 0x24b   :  { %2031 = vmatpush1.bf16.xpose.msra.mxu0 %v11854_v62  ;;  %1248 = vmatprep.subr.bf16.mxu1 %v11859_v63  ;;  %v13006_v62 = vmov 0.0   ;;  %v11929_v63 = vld [vmem:[#allocation7 + $0x2a0] ss:$8 sps:$4 sm:$0xff]  }
 0x24c   :  { %2148 = vmatprep.subr.bf16.mxu0 %v11862_v0  ;;  %v11934_v0 = vld [vmem:[#allocation7 + $0x2b4] ss:$8 sps:$4 sm:$0xff]  }
 0x251   :  { %1221 = vmatmul.mubr.bf16.vlgmr.msra.gmra.mrb[16].mxu1 %v13214_v34 }
 0x252   :  { %2061 = vmatmul.mubr.bf16.vlgmr.msra.gmra.mrb[20].mxu0 %v13214_v34  ;;  %1249 = vmatpush1.bf16.xpose.msra.mxu1 %v11857_v1 }
 0x253   :  { %1280 = vmatprep.mubr.bf16.mxu1 %v13210_v31  ;;  %2149 = vmatpush1.bf16.xpose.msra.mxu0 %v11860_v2 }
 0x254   :  { %2180 = vmatprep.mubr.bf16.mxu0 %v13210_v31  ;;  %1250 = vmatprep.subr.bf16.mxu1 %v11865_v3 }
 0x255   :  { %2150 = vmatprep.subr.bf16.mxu0 %v11868_v4 }
 0x25a   :  { %1251 = vmatpush1.bf16.xpose.msra.mxu1 %v11863_v5 }
 0x25b   :  { %2151 = vmatpush1.bf16.xpose.msra.mxu0 %v11866_v6  ;;  %1308 = vmatprep.subr.bf16.mxu1 %v11871_v7  ;;  %v11932_v7 = vld [vmem:[#allocation7 + $0x2b0] ss:$8 sps:$4 sm:$0xff]  }
 0x25c   :  { %2268 = vmatprep.subr.bf16.mxu0 %v11874_v8 }
 0x261   :  { %1281 = vmatmul.mubr.bf16.vlgmr.msra.gmra.mrb[20].mxu1 %v13214_v34 }
 0x262   :  { %2181 = vmatmul.mubr.bf16.vlgmr.msra.gmra.mrb[24].mxu0 %v13214_v34  ;;  %1309 = vmatpush1.bf16.xpose.msra.mxu1 %v11869_v9 }
 0x263   :  { %1340 = vmatprep.mubr.bf16.mxu1 %v13210_v31  ;;  %2269 = vmatpush1.bf16.xpose.msra.mxu0 %v11872_v10  ;;  %v11937_v10 = vld [vmem:[#allocation7 + $0x2e4] ss:$8 sps:$4 sm:$0xff]  }
 0x264   :  { %2300 = vmatprep.mubr.bf16.mxu0 %v13210_v31  ;;  %1310 = vmatprep.subr.bf16.mxu1 %v11877_v11  ;;  %v11935_v11 = vld [vmem:[#allocation7 + $0x2e0] ss:$8 sps:$4 sm:$0xff]  }
 0x265   :  { %2270 = vmatprep.subr.bf16.mxu0 %v11880_v12  ;;  %v11940_v12 = vld [vmem:[#allocation7 + $0x2f4] ss:$8 sps:$4 sm:$0xff]  }
 0x26a   :  { %1311 = vmatpush1.bf16.xpose.msra.mxu1 %v11875_v13 }
 0x26b   :  { %2271 = vmatpush1.bf16.xpose.msra.mxu0 %v11878_v14  ;;  %1368 = vmatprep.subr.bf16.mxu1 %v11883_v15 }
 0x26c   :  { %11490 = vmatprep.subr.mxu0 %v13006_v62 }
 0x271   :  { %1341 = vmatmul.mubr.bf16.vlgmr.msra.gmra.mrb[24].mxu1 %v13214_v34 }
 0x272   :  { %2301 = vmatmul.mubr.bf16.vlgmr.msra.gmra.mrb[28].mxu0 %v13214_v34  ;;  %1369 = vmatpush1.bf16.xpose.msra.mxu1 %v11881_v16 }
 0x273   :  { %1400 = vmatprep.mubr.bf16.mxu1 %v13210_v31  ;;  %1370 = vmatprep.subr.bf16.mxu1 %v11886_v17 }
 0x274   :  { %11492 = vmatprep.mubr.msk.f32.mxu0 %vm13007_vm0, %v13006_v62 }
 0x27a   :  { %1371 = vmatpush1.bf16.xpose.msra.mxu1 %v11884_v18  ;;  %v11938_v18 = vld [vmem:[#allocation7 + $0x2f0] ss:$8 sps:$4 sm:$0xff]  }
 0x27b   :  { %1428 = vmatprep.subr.bf16.mxu1 %v11889_v21 }
 0x281   :  { %1401 = vmatmul.mubr.bf16.vlgmr.msra.gmra.mrb[28].mxu1 %v13214_v34 }
 0x282   :  { %1429 = vmatpush1.bf16.xpose.msra.mxu1 %v11887_v22  ;;  %1460 = vmatprep.mubr.bf16.mxu1 %v13210_v31 }
 0x283   :  { %1430 = vmatprep.subr.bf16.mxu1 %v11892_v23 }
 0x28a   :  { %1431 = vmatpush1.bf16.xpose.msra.mxu1 %v11890_v24 }
 0x28b   :  { %1488 = vmatprep.subr.bf16.mxu1 %v11895_v25 }
 0x291   :  { %1461 = vmatmul.mubr.bf16.vlgmr.msra.gmra.mrb[32].mxu1 %v13214_v34 }
 0x292   :  { %1489 = vmatpush1.bf16.xpose.msra.mxu1 %v11893_v27  ;;  %1520 = vmatprep.mubr.bf16.mxu1 %v13210_v31 }
 0x293   :  { %1490 = vmatprep.subr.bf16.mxu1 %v11898_v29 }
 0x29a   :  { %1491 = vmatpush1.bf16.xpose.msra.mxu1 %v11896_v30 }
 0x29b   :  { %1608 = vmatprep.subr.bf16.mxu1 %v11901_v32 }
 0x2a1   :  { %1521 = vmatmul.mubr.bf16.vlgmr.msra.gmra.mrb[36].mxu1 %v13214_v34 }
 0x2a2   :  { %1609 = vmatpush1.bf16.xpose.msra.mxu1 %v11899_v33  ;;  %1640 = vmatprep.mubr.bf16.mxu1 %v13210_v31 }
 0x2a3   :  { %1610 = vmatprep.subr.bf16.mxu1 %v11904_v35 }
 0x2aa   :  { %1611 = vmatpush1.bf16.xpose.msra.mxu1 %v11902_v36 }
 0x2ab   :  { %1728 = vmatprep.subr.bf16.mxu1 %v11907_v37 }
 0x2b1   :  { %1641 = vmatmul.mubr.bf16.vlgmr.msra.gmra.mrb[40].mxu1 %v13214_v34 }
 0x2b2   :  { %1729 = vmatpush1.bf16.xpose.msra.mxu1 %v11905_v38  ;;  %1760 = vmatprep.mubr.bf16.mxu1 %v13210_v31 }
 0x2b3   :  { %1730 = vmatprep.subr.bf16.mxu1 %v11910_v39 }
 0x2ba   :  { %1731 = vmatpush1.bf16.xpose.msra.mxu1 %v11908_v40 }
 0x2bb   :  { %1848 = vmatprep.subr.bf16.mxu1 %v11913_v41 }
 0x2c1   :  { %1761 = vmatmul.mubr.bf16.vlgmr.msra.gmra.mrb[44].mxu1 %v13214_v34 }
 0x2c2   :  { %1849 = vmatpush1.bf16.xpose.msra.mxu1 %v11911_v42  ;;  %1880 = vmatprep.mubr.bf16.mxu1 %v13210_v31 }
 0x2c3   :  { %1850 = vmatprep.subr.bf16.mxu1 %v11916_v43 }
 0x2ca   :  { %1851 = vmatpush1.bf16.xpose.msra.mxu1 %v11914_v44 }
 0x2cb   :  { %1968 = vmatprep.subr.bf16.mxu1 %v11919_v45 }
 0x2d1   :  { %1881 = vmatmul.mubr.bf16.vlgmr.msra.gmra.mrb[48].mxu1 %v13214_v34 }
 0x2d2   :  { %1969 = vmatpush1.bf16.xpose.msra.mxu1 %v11917_v46  ;;  %2000 = vmatprep.mubr.bf16.mxu1 %v13210_v31 }
 0x2d3   :  { %1970 = vmatprep.subr.bf16.mxu1 %v11922_v47 }
 0x2da   :  { %1971 = vmatpush1.bf16.xpose.msra.mxu1 %v11920_v48 }
 0x2db   :  { %2088 = vmatprep.subr.bf16.mxu1 %v11925_v49 }
 0x2e1   :  { %2001 = vmatmul.mubr.bf16.vlgmr.msra.gmra.mrb[52].mxu1 %v13214_v34 }
 0x2e2   :  { %2089 = vmatpush1.bf16.xpose.msra.mxu1 %v11923_v50  ;;  %2120 = vmatprep.mubr.bf16.mxu1 %v13210_v31 }
 0x2e3   :  { %2090 = vmatprep.subr.bf16.mxu1 %v11928_v51 }
 0x2e4   :  { %v13259_v52 = vpop.f32.mrb[0].mxu1  ;;  %v13261_v53 = vpop.f32.mrb[4].mxu0 }
 0x2e5   :  { %v984_v54 = vpop.f32.mrb[1].mxu1  ;;  %v1584_v55 = vpop.f32.mrb[5].mxu0 }
 0x2e6   :  { %v985_v56 = vpop.f32.mrb[2].mxu1  ;;  %v1585_v57 = vpop.f32.mrb[6].mxu0 }
 0x2e7   :  { %v986_v59 = vpop.f32.mrb[3].mxu1  ;;  %v1586_v60 = vpop.f32.mrb[7].mxu0 }
 0x2ea   :  { %2091 = vmatpush1.bf16.xpose.msra.mxu1 %v11926_v58 }
 0x2eb   :  { %2208 = vmatprep.subr.bf16.mxu1 %v11931_v61 }
 0x2f1   :  { %2121 = vmatmul.mubr.bf16.vlgmr.msra.gmra.mrb[56].mxu1 %v13214_v34 }
 0x2f2   :  { %2209 = vmatpush1.bf16.xpose.msra.mxu1 %v11929_v63  ;;  %2240 = vmatprep.mubr.bf16.mxu1 %v13210_v31 }
 0x2f3   :  { %2210 = vmatprep.subr.bf16.mxu1 %v11934_v0 }
 0x2f4   :  { %v13268_v1 = vpop.f32.mrb[4].mxu1  ;;  %v13270_v2 = vpop.f32.mrb[8].mxu0 }
 0x2f5   :  { %v1044_v3 = vpop.f32.mrb[5].mxu1  ;;  %v1704_v4 = vpop.f32.mrb[9].mxu0 }
 0x2f6   :  { %v1045_v5 = vpop.f32.mrb[6].mxu1  ;;  %v1705_v6 = vpop.f32.mrb[10].mxu0  ;;  %v10684_v3 = vld [vmem:[#allocation8 + $0x8] ss:$0 sm:$0xff] }
 0x2f7   :  { %v1046_v8 = vpop.f32.mrb[7].mxu1  ;;  %v1706_v9 = vpop.f32.mrb[11].mxu0  ;;  %v10676_v5 = vld [vmem:[#allocation8] ss:$0 sm:$0xff] }
 0x2f8   :  { %v10686_v8 = vld [vmem:[#allocation8 + $0xa] ss:$0 sm:$0xff] }
 0x2fa   :  { %2211 = vmatpush1.bf16.xpose.msra.mxu1 %v11932_v7 }
 0x2fb   :  { %2328 = vmatprep.subr.bf16.mxu1 %v11937_v10 }
 0x301   :  { %2241 = vmatmul.mubr.bf16.vlgmr.msra.gmra.mrb[60].mxu1 %v13214_v34 }
 0x302   :  { %2329 = vmatpush1.bf16.xpose.msra.mxu1 %v11935_v11  ;;  %2360 = vmatprep.mubr.bf16.mxu1 %v13210_v31  ;;  %v983_v11 = vadd.f32 %v10676_v5, %v13259_v52  ;;  %v10680_v52 = vld [vmem:[#allocation8 + $0x4] ss:$0 sm:$0xff] }
 0x303   :  { %2330 = vmatprep.subr.bf16.mxu1 %v11940_v12  ;;  %v1583_v12 = vadd.f32 %v10686_v8, %v13261_v53 }
 0x304   :  { %v13274_v13 = vpop.f32.mrb[8].mxu1 }
 0x305   :  { %v13276_v14 = vpop.f32.mrb[12].mxu0  ;;  %v1104_v15 = vpop.f32.mrb[9].mxu1 }
 0x306   :  { %v1824_v16 = vpop.f32.mrb[13].mxu0  ;;  %v1105_v17 = vpop.f32.mrb[10].mxu1  ;;  %v10678_v15 = vld [vmem:[#allocation8 + $0x2] ss:$0 sm:$0xff] }
 0x307   :  { %v1825_v21 = vpop.f32.mrb[14].mxu0  ;;  %v1106_v22 = vpop.f32.mrb[11].mxu1  ;;  %v10688_v16 = vld [vmem:[#allocation8 + $0xc] ss:$0 sm:$0xff]  ;;  %v1103_v17 = vadd.f32 %v10678_v15, %v13274_v13  ;;  %v10692_v13 = vld [vmem:[#allocation8 + $0x10] ss:$0 sm:$0xff] }
 0x308   :  { %v1826_v23 = vpop.f32.mrb[15].mxu0  ;;  %v10690_v21 = vld [vmem:[#allocation8 + $0xe] ss:$0 sm:$0xff] }
 0x309   :  { %v1823_v22 = vadd.f32 %v10690_v21, %v13276_v14  ;;  %v10682_v23 = vld [vmem:[#allocation8 + $0x6] ss:$0 sm:$0xff] }
 0x30a   :  { %2331 = vmatpush1.bf16.xpose.msra.mxu1 %v11938_v18  ;;  %v1703_v18 = vadd.f32 %v10688_v16, %v13270_v2 }
 0x30b   :  { %11495 = vmatprep.subr.mxu1 %v13006_v62 }
 0x311   :  { %2361 = vmatmul.mubr.bf16.vlgmr.msra.gmra.mrb[64].mxu1 %v13214_v34 }
 0x312   :  { %11497 = vmatprep.mubr.msk.f32.mxu1 %vm13007_vm0, %v13006_v62 }
 0x314   :  { %v13282_v31 = vpop.f32.mrb[12].mxu1 }
 0x315   :  { %v13284_v24 = vpop.f32.mrb[16].mxu0  ;;  %v1164_v25 = vpop.f32.mrb[13].mxu1 }
 0x316   :  { %v1944_v27 = vpop.f32.mrb[17].mxu0  ;;  %v1165_v29 = vpop.f32.mrb[14].mxu1  ;;  %v10685_v25 = vld [vmem:[#allocation8 + $0x9] ss:$0 sm:$0xff] }
 0x317   :  { %v1945_v30 = vpop.f32.mrb[18].mxu0  ;;  %v1166_v32 = vpop.f32.mrb[15].mxu1  ;;  %v10677_v29 = vld [vmem:[#allocation8 + $0x1] ss:$0 sm:$0xff] }
 0x318   :  { %v1946_v33 = vpop.f32.mrb[19].mxu0  ;;  %v1943_v30 = vadd.f32 %v10692_v13, %v13284_v24  ;;  %v10687_v24 = vld [vmem:[#allocation8 + $0xb] ss:$0 sm:$0xff] }
 0x324   :  { %v1222_v35 = vpop.f32.mrb[16].mxu1 }
 0x325   :  { %v13286_v36 = vpop.f32.mrb[20].mxu0  ;;  %v1224_v37 = vpop.f32.mrb[17].mxu1  ;;  %v1223_v53 = vadd.f32 %v10680_v52, %v1222_v35 }
 0x326   :  { %v2064_v38 = vpop.f32.mrb[21].mxu0  ;;  %v1225_v39 = vpop.f32.mrb[18].mxu1  ;;  %v1043_v37 = vadd.f32 %v10677_v29, %v13268_v1 }
 0x327   :  { %v2065_v34 = vpop.f32.mrb[22].mxu0  ;;  %v1226_v40 = vpop.f32.mrb[19].mxu1  ;;  %v10679_v39 = vld [vmem:[#allocation8 + $0x3] ss:$0 sm:$0xff] }
 0x328   :  { %v2066_v41 = vpop.f32.mrb[23].mxu0  ;;  %v1163_v1 = vadd.f32 %v10679_v39, %v13282_v31  ;;  %v10691_v31 = vld [vmem:[#allocation8 + $0xf] ss:$0 sm:$0xff] }
 0x334   :  { %v13288_v42 = vpop.f32.mrb[20].mxu1 }
 0x335   :  { %v13290_v43 = vpop.f32.mrb[24].mxu0  ;;  %v1284_v44 = vpop.f32.mrb[21].mxu1 }
 0x336   :  { %v2184_v45 = vpop.f32.mrb[25].mxu0  ;;  %v1285_v46 = vpop.f32.mrb[22].mxu1 }
 0x337   :  { %v2185_v47 = vpop.f32.mrb[26].mxu0  ;;  %v1286_v48 = vpop.f32.mrb[23].mxu1  ;;  %v10689_v45 = vld [vmem:[#allocation8 + $0xd] ss:$0 sm:$0xff] }
 0x338   :  { %v2186_v49 = vpop.f32.mrb[27].mxu0  ;;  %v10681_v47 = vld [vmem:[#allocation8 + $0x5] ss:$0 sm:$0xff] }
 0x344   :  { %v1342_v50 = vpop.f32.mrb[24].mxu1 }
 0x345   :  { %v13292_v51 = vpop.f32.mrb[28].mxu0  ;;  %v1344_v54 = vpop.f32.mrb[25].mxu1  ;;  %v1343_v2 = vadd.f32 %v10682_v23, %v1342_v50 }
 0x346   :  { %v2304_v55 = vpop.f32.mrb[29].mxu0  ;;  %v1345_v56 = vpop.f32.mrb[26].mxu1 }
 0x347   :  { %v2305_v57 = vpop.f32.mrb[30].mxu0  ;;  %v1346_v58 = vpop.f32.mrb[27].mxu1  ;;  %v1283_v55 = vadd.f32 %v10681_v47, %v13288_v42  ;;  %v10693_v42 = vld [vmem:[#allocation8 + $0x11] ss:$0 sm:$0xff] }
 0x348   :  { %v2306_v59 = vpop.f32.mrb[31].mxu0  ;;  %v10683_v57 = vld [vmem:[#allocation8 + $0x7] ss:$0 sm:$0xff] }
 0x354   :  { %v13294_v60 = vpop.f32.mrb[28].mxu1 }
 0x355   :  { %v1404_v61 = vpop.f32.mrb[29].mxu1 }
 0x356   :  { %v1405_v63 = vpop.f32.mrb[30].mxu1 }
 0x357   :  { %v1406_v0 = vpop.f32.mrb[31].mxu1 }
 0x358   :  { %v1403_v0 = vadd.f32 %v10683_v57, %v13294_v60 }
 0x364   :  { %v1462_v4 = vpop.f32.mrb[32].mxu1 }
 0x365   :  { %v1463_v6 = vadd.f32 %v10684_v3, %v1462_v4  ;;  %v1464_v7 = vpop.f32.mrb[33].mxu1 }
 0x366   :  { %v1465_v9 = vpop.f32.mrb[34].mxu1 }
 0x367   :  { %v1466_v10 = vpop.f32.mrb[35].mxu1  ;;  %11491 = vmatpush3.xpose.msk.msra.mxu0 %vm2368_vm1, %v1463_v6 }
 0x368   :  { %11500 = vmatprep.subr.mxu0 %v13006_v62 }
 0x36a   :  { %11493 = vmatmul.mubr.msk.f32.vlgmr.msra.gmra.mrb[32].mxu0 %vm2368_vm1, %v983_v11 }
 0x36b   :  { %11501 = vmatpush3.xpose.msk.msra.mxu0 %vm2368_vm1, %v1583_v12  ;;  %11502 = vmatprep.mubr.msk.f32.mxu0 %vm13007_vm0, %v13006_v62 }
 0x36c   :  { %11510 = vmatprep.subr.mxu0 %v13006_v62 }
 0x36e   :  { %11503 = vmatmul.mubr.msk.f32.vlgmr.msra.gmra.mrb[34].mxu0 %vm2368_vm1, %v1103_v17 }
 0x36f   :  { %11511 = vmatpush3.xpose.msk.msra.mxu0 %vm2368_vm1, %v1703_v18  ;;  %11512 = vmatprep.mubr.msk.f32.mxu0 %vm13007_vm0, %v13006_v62 }
 0x370   :  { %11520 = vmatprep.subr.mxu0 %v13006_v62 }
 0x372   :  { %11513 = vmatmul.mubr.msk.f32.vlgmr.msra.gmra.mrb[36].mxu0 %vm2368_vm1, %v1223_v53 }
 0x373   :  { %11521 = vmatpush3.xpose.msk.msra.mxu0 %vm2368_vm1, %v1823_v22  ;;  %11522 = vmatprep.mubr.msk.f32.mxu0 %vm13007_vm0, %v13006_v62 }
 0x374   :  { %v1522_v27 = vpop.f32.mrb[36].mxu1  ;;  %11530 = vmatprep.subr.mxu0 %v13006_v62 }
 0x375   :  { %v1523_v32 = vadd.f32 %v10685_v25, %v1522_v27  ;;  %v1524_v33 = vpop.f32.mrb[37].mxu1 }
 0x376   :  { %v1525_v14 = vpop.f32.mrb[38].mxu1  ;;  %11523 = vmatmul.mubr.msk.f32.vlgmr.msra.gmra.mrb[38].mxu0 %vm2368_vm1, %v1343_v2 }
 0x377   :  { %v1526_v35 = vpop.f32.mrb[39].mxu1  ;;  %11496 = vmatpush3.xpose.msk.msra.mxu1 %vm2368_vm1, %v1523_v32  ;;  %11531 = vmatpush3.msra.mxu0 %v1943_v30 }
 0x378   :  { %11505 = vmatprep.subr.mxu1 %v13006_v62  ;;  %11532 = vmatprep.mubr.msk.f32.mxu0 %vm13007_vm0, %v13006_v62 }
 0x379   :  { %11540 = vmatprep.subr.mxu0 %v13006_v62 }
 0x37a   :  { %11498 = vmatmul.mubr.msk.f32.vlgmr.msra.gmra.mrb[68].mxu1 %vm2368_vm1, %v1043_v37 }
 0x37b   :  { %11507 = vmatprep.mubr.msk.f32.mxu1 %vm13007_vm0, %v13006_v62 }
 0x384   :  { %v1642_v38 = vpop.f32.mrb[40].mxu1 }
 0x385   :  { %v1643_v34 = vadd.f32 %v10687_v24, %v1642_v38  ;;  %v1644_v40 = vpop.f32.mrb[41].mxu1 }
 0x386   :  { %v1645_v41 = vpop.f32.mrb[42].mxu1 }
 0x387   :  { %v1646_v44 = vpop.f32.mrb[43].mxu1  ;;  %11506 = vmatpush3.xpose.msk.msra.mxu1 %vm2368_vm1, %v1643_v34 }
 0x388   :  { %11515 = vmatprep.subr.mxu1 %v13006_v62 }
 0x38a   :  { %11508 = vmatmul.mubr.msk.f32.vlgmr.msra.gmra.mrb[70].mxu1 %vm2368_vm1, %v1163_v1 }
 0x38b   :  { %11517 = vmatprep.mubr.msk.f32.mxu1 %vm13007_vm0, %v13006_v62 }
 0x394   :  { %v1762_v46 = vpop.f32.mrb[44].mxu1 }
 0x395   :  { %v1763_v48 = vadd.f32 %v10689_v45, %v1762_v46  ;;  %v1764_v49 = vpop.f32.mrb[45].mxu1 }
 0x396   :  { %v1765_v50 = vpop.f32.mrb[46].mxu1 }
 0x397   :  { %v1766_v54 = vpop.f32.mrb[47].mxu1  ;;  %11516 = vmatpush3.xpose.msk.msra.mxu1 %vm2368_vm1, %v1763_v48 }
 0x398   :  { %11525 = vmatprep.subr.mxu1 %v13006_v62 }
 0x39a   :  { %11518 = vmatmul.mubr.msk.f32.vlgmr.msra.gmra.mrb[72].mxu1 %vm2368_vm1, %v1283_v55 }
 0x39b   :  { %11527 = vmatprep.mubr.msk.f32.mxu1 %vm13007_vm0, %v13006_v62 }
 0x3a4   :  { %v1882_v56 = vpop.f32.mrb[48].mxu1 }
 0x3a5   :  { %v1883_v58 = vadd.f32 %v10691_v31, %v1882_v56  ;;  %v1884_v59 = vpop.f32.mrb[49].mxu1 }
 0x3a6   :  { %v1885_v61 = vpop.f32.mrb[50].mxu1 }
 0x3a7   :  { %v1886_v63 = vpop.f32.mrb[51].mxu1  ;;  %11526 = vmatpush3.xpose.msk.msra.mxu1 %vm2368_vm1, %v1883_v58 }
 0x3a8   :  { %11535 = vmatprep.subr.mxu1 %v13006_v62 }
 0x3aa   :  { %11528 = vmatmul.mubr.msk.f32.vlgmr.msra.gmra.mrb[74].mxu1 %vm2368_vm1, %v1403_v0 }
 0x3ab   :  { %11537 = vmatprep.mubr.msk.f32.mxu1 %vm13007_vm0, %v13006_v62 }
 0x3b4   :  { %v2002_v3 = vpop.f32.mrb[52].mxu1 }
 0x3b5   :  { %v2003_v4 = vadd.f32 %v10693_v42, %v2002_v3  ;;  %v2004_v5 = vpop.f32.mrb[53].mxu1 }
 0x3b6   :  { %v2005_v6 = vpop.f32.mrb[54].mxu1 }
 0x3b7   :  { %v2006_v7 = vpop.f32.mrb[55].mxu1  ;;  %11536 = vmatpush3.msra.mxu1 %v2003_v4 }
 0x3b8   :  { %11545 = vmatprep.subr.mxu1 %v13006_v62 }
 0x3c4   :  { %v13348_v8 = vpop.f32.mrb[56].mxu1 }
 0x3c5   :  { %v2124_v9 = vpop.f32.mrb[57].mxu1 }
 0x3c6   :  { %v2125_v60 = vpop.f32.mrb[58].mxu1 }
 0x3c7   :  { %v2126_v10 = vpop.f32.mrb[59].mxu1 }
 0x3d4   :  { %v13350_v11 = vpop.f32.mrb[60].mxu1 }
 0x3d5   :  { %v2244_v12 = vpop.f32.mrb[61].mxu1 }
 0x3d6   :  { %v2245_v15 = vpop.f32.mrb[62].mxu1 }
 0x3d7   :  { %v2246_v16 = vpop.f32.mrb[63].mxu1 }
 0x3e4   :  { %v13352_v17 = vpop.f32.mrb[64].mxu1 }
 0x3e5   :  { %v2364_v18 = vpop.f32.mrb[65].mxu1 }
 0x3e6   :  { %v2365_v52 = vpop.f32.mrb[66].mxu1 }
 0x3e7   :  { %v2366_v21 = vpop.f32.mrb[67].mxu1 }
 0x43d   :  { %v2441_v53 = vpop.f32.mrb[32].mxu0 }
 0x43e   :  { %v2977_v22 = vmul.f32 0.17677669, %v2441_v53  ;;  %v11494_v23 = vpop.f32.mrb[33].mxu0 }
 0x440   :  { %v2986_v13 = vsel %vm2985_vm2, %v2977_v22, -inf }
 0x441   :  { %2987 = vmax.xlane.f32.xlu0 %v2986_v13  ;;  %v2593_v25 = vpop.f32.mrb[34].mxu0 }
 0x442   :  { %v2979_v2 = vmul.f32 0.17677669, %v2593_v25  ;;  %v11504_v27 = vpop.f32.mrb[35].mxu0 }
 0x444   :  { %v2992_v29 = vsel %vm2985_vm2, %v2979_v2, -inf }
 0x445   :  { %2993 = vmax.xlane.f32.xlu1 %v2992_v29  ;;  %v2745_v30 = vpop.f32.mrb[36].mxu0 }
 0x446   :  { %v11514_v32 = vpop.f32.mrb[37].mxu0  ;;  %v2981_v38 = vmul.f32 0.17677669, %v2745_v30 }
 0x448   :  { %v2998_v40 = vsel %vm2985_vm2, %v2981_v38, -inf }
 0x449   :  { %v2897_v33 = vpop.f32.mrb[38].mxu0 }
 0x44a   :  { %v11524_v14 = vpop.f32.mrb[39].mxu0  ;;  %v2983_v34 = vmul.f32 0.17677669, %v2897_v33 }
 0x44c   :  { %v3004_v41 = vsel %vm2985_vm2, %v2983_v34, -inf }
 0x44d   :  { %v2517_v35 = vpop.f32.mrb[68].mxu1 }
 0x44e   :  { %v2978_v37 = vmul.f32 0.17677669, %v2517_v35  ;;  %v11499_v24 = vpop.f32.mrb[69].mxu1 }
 0x450   :  { %v2989_v39 = vsel %vm2985_vm2, %v2978_v37, -inf }
 0x451   :  { %2990 = vmax.xlane.f32.xlu0 %v2989_v39 }
 0x455   :  { %2999 = vmax.xlane.f32.xlu0 %v2998_v40 }
 0x459   :  { %3005 = vmax.xlane.f32.xlu0 %v3004_v41 }
 0x45d   :  { %v2669_v44 = vpop.f32.mrb[70].mxu1 }
 0x45e   :  { %v2980_v1 = vmul.f32 0.17677669, %v2669_v44  ;;  %v11509_v45 = vpop.f32.mrb[71].mxu1 }
 0x460   :  { %v2995_v46 = vsel %vm2985_vm2, %v2980_v1, -inf }
 0x461   :  { %2996 = vmax.xlane.f32.xlu1 %v2995_v46 }
 0x46d   :  { %v2821_v47 = vpop.f32.mrb[72].mxu1 }
 0x46e   :  { %v2982_v48 = vmul.f32 0.17677669, %v2821_v47  ;;  %v11519_v49 = vpop.f32.mrb[73].mxu1 }
 0x470   :  { %v3001_v50 = vsel %vm2985_vm2, %v2982_v48, -inf }
 0x471   :  { %3002 = vmax.xlane.f32.xlu1 %v3001_v50 }
 0x47d   :  { %v2973_v54 = vpop.f32.mrb[74].mxu1 }
 0x47e   :  { %v2984_v55 = vmul.f32 0.17677669, %v2973_v54  ;;  %v11529_v31 = vpop.f32.mrb[75].mxu1 }
 0x480   :  { %v3007_v56 = vsel %vm2985_vm2, %v2984_v55, -inf }
 0x481   :  { %3008 = vmax.xlane.f32.xlu1 %v3007_v56  ;;  %v10695_v56 = vld [vmem:[#allocation8 + $0x13] ss:$0 sm:$0xff] }
 0x4ce   :  { %v2988_v57 = vpop.xlane.xlu0 %2987 }
 0x4cf   :  { %v3010_v58 = vsub.f32 %v2977_v22, %v2988_v57 }
 0x4d1   :  { %v3018_v59 = vmul.f32 1.442695, %v3010_v58 }
 0x4d2   :  { %v2994_v61 = vpop.xlane.xlu1 %2993 }
 0x4d3   :  { %12653 = vpow2.f32 %v3018_v59  ;;  %v3012_v63 = vsub.f32 %v2979_v2, %v2994_v61  ;;  %v2123_v59 = vadd.f32 %v10695_v56, %v13348_v8  ;;  %v10698_v61 = vld [vmem:[#allocation8 + $0x16] ss:$0 sm:$0xff]  ;;  %v11941_v8 = vld [vmem:[#allocation10] ss:$8 sps:$4 sm:$0xff]  }
 0x4d4   :  { %v11979_v56 = vld [vmem:[#allocation10 + $0xa4] ss:$8 sps:$4 sm:$0xff]  }
 0x4d5   :  { %v3022_v0 = vmul.f32 1.442695, %v3012_v63 }
 0x4d7   :  { %12655 = vpow2.f32 %v3022_v0 }
 0x4dd   :  { %v12654_v42 = vpop.eup %12653 }
 0x4de   :  { %v2991_v3 = vpop.xlane.xlu0 %2990  ;;  %v3034_v4 = vsel %vm2985_vm2, %v12654_v42, 0.0 }
 0x4df   :  { %v3011_v5 = vsub.f32 %v2978_v37, %v2991_v3  ;;  %3035 = vadd.xlane.f32.xlu0 %v3034_v4  ;;  %v2303_v3 = vadd.f32 %v10698_v61, %v13292_v51 }
 0x4e1   :  { %v12656_v6 = vpop.eup %12655  ;;  %v3020_v7 = vmul.f32 1.442695, %v3011_v5 }
 0x4e2   :  { %v3000_v9 = vpop.xlane.xlu0 %2999  ;;  %v3040_v60 = vsel %vm2985_vm2, %v12656_v6, 0.0 }
 0x4e3   :  { %12657 = vpow2.f32 %v3020_v7  ;;  %v3014_v10 = vsub.f32 %v2981_v38, %v3000_v9  ;;  %3041 = vadd.xlane.f32.xlu0 %v3040_v60  ;;  %v11944_v7 = vld [vmem:[#allocation10 + $0x10] ss:$8 sps:$4 sm:$0xff]   ;;  %v10697_v9 = vld [vmem:[#allocation8 + $0x15] ss:$0 sm:$0xff] }
 0x4e5   :  { %v3026_v12 = vmul.f32 1.442695, %v3014_v10  ;;  %v2243_v10 = vadd.f32 %v10697_v9, %v13350_v11 }
 0x4e6   :  { %v3006_v15 = vpop.xlane.xlu0 %3005 }
 0x4e7   :  { %12659 = vpow2.f32 %v3026_v12  ;;  %v3016_v16 = vsub.f32 %v2983_v34, %v3006_v15  ;;  %v10699_v15 = vld [vmem:[#allocation8 + $0x17] ss:$0 sm:$0xff] }
 0x4e9   :  { %v3030_v18 = vmul.f32 1.442695, %v3016_v16 }
 0x4eb   :  { %12661 = vpow2.f32 %v3030_v18 }
 0x4ed   :  { %v12658_v52 = vpop.eup %12657 }
 0x4ee   :  { %v2997_v21 = vpop.xlane.xlu1 %2996  ;;  %v3037_v53 = vsel %vm2985_vm2, %v12658_v52, 0.0 }
 0x4ef   :  { %v3013_v22 = vsub.f32 %v2980_v1, %v2997_v21  ;;  %3038 = vadd.xlane.f32.xlu1 %v3037_v53  ;;  %v10694_v1 = vld [vmem:[#allocation8 + $0x12] ss:$0 sm:$0xff] }
 0x4f0   :  { %v2063_v47 = vadd.f32 %v10694_v1, %v13286_v36 }
 0x4f1   :  { %v12660_v23 = vpop.eup %12659  ;;  %v3024_v13 = vmul.f32 1.442695, %v3013_v22  ;;  %v13008_v22 = vmov 0  }
 0x4f2   :  { %v3046_v25 = vsel %vm2985_vm2, %v12660_v23, 0.0 }
 0x4f3   :  { %12663 = vpow2.f32 %v3024_v13  ;;  %3047 = vadd.xlane.f32.xlu0 %v3046_v25  ;;  %v11955_v13 = vld [vmem:[#allocation10 + $0x24] ss:$8 sps:$4 sm:$0xff]   ;;  %v11956_v25 = vld [vmem:[#allocation10 + $0x30] ss:$8 sps:$4 sm:$0xff]  }
 0x4f5   :  { %v13366_v2 = vpop.eup %12661 }
 0x4f6   :  { %v3052_v27 = vsel %vm2985_vm2, %v13366_v2, 0.0 }
 0x4f7   :  { %3053 = vadd.xlane.f32.xlu0 %v3052_v27  ;;  %v11970_v27 = vld [vmem:[#allocation10 + $0x64] ss:$8 sps:$4 sm:$0xff]  }
 0x4fd   :  { %v13370_v29 = vpop.eup %12663 }
 0x4fe   :  { %v3003_v30 = vpop.xlane.xlu1 %3002  ;;  %v3043_v32 = vsel %vm2985_vm2, %v13370_v29, 0.0 }
 0x4ff   :  { %v3015_v33 = vsub.f32 %v2982_v48, %v3003_v30  ;;  %3044 = vadd.xlane.f32.xlu1 %v3043_v32  ;;  %v10696_v48 = vld [vmem:[#allocation8 + $0x14] ss:$0 sm:$0xff]  ;;  %v11947_v30 = vld [vmem:[#allocation10 + $0x40] ss:$8 sps:$4 sm:$0xff]  }
 0x501   :  { %v3028_v14 = vmul.f32 1.442695, %v3015_v33 }
 0x503   :  { %12665 = vpow2.f32 %v3028_v14  ;;  %v11952_v14 = vld [vmem:[#allocation10 + $0x54] ss:$8 sps:$4 sm:$0xff]  }
 0x50d   :  { %v13374_v35 = vpop.eup %12665 }
 0x50e   :  { %v3009_v37 = vpop.xlane.xlu1 %3008  ;;  %v3049_v24 = vsel %vm2985_vm2, %v13374_v35, 0.0 }
 0x50f   :  { %v3017_v38 = vsub.f32 %v2984_v55, %v3009_v37  ;;  %3050 = vadd.xlane.f32.xlu1 %v3049_v24  ;;  %v2183_v55 = vadd.f32 %v10696_v48, %v13290_v43  ;;  %v11950_v37 = vld [vmem:[#allocation10 + $0x50] ss:$8 sps:$4 sm:$0xff]   ;;  %v11976_v48 = vld [vmem:[#allocation10 + $0x74] ss:$8 sps:$4 sm:$0xff]  }
 0x511   :  { %v3032_v39 = vmul.f32 1.442695, %v3017_v38  ;;  %v11961_v38 = vld [vmem:[#allocation10 + $0x84] ss:$8 sps:$4 sm:$0xff]  }
 0x513   :  { %12667 = vpow2.f32 %v3032_v39  ;;  %v11959_v39 = vld [vmem:[#allocation10 + $0x80] ss:$8 sps:$4 sm:$0xff]  }
 0x51d   :  { %v13378_v34 = vpop.eup %12667 }
 0x51e   :  { %v3055_v40 = vsel %vm2985_vm2, %v13378_v34, 0.0 }
 0x51f   :  { %3056 = vadd.xlane.f32.xlu1 %v3055_v40  ;;  %v11964_v40 = vld [vmem:[#allocation10 + $0x94] ss:$8 sps:$4 sm:$0xff]  }
 0x56c   :  { %v3036_v41 = vpop.xlane.xlu0 %3035 }
 0x56d   :  { %12669 = vrcp.f32 %v3036_v41  ;;  %v11962_v41 = vld [vmem:[#allocation10 + $0x90] ss:$8 sps:$4 sm:$0xff]  }
 0x570   :  { %v3042_v44 = vpop.xlane.xlu0 %3041 }
 0x571   :  { %12671 = vrcp.f32 %v3042_v44  ;;  %v11967_v44 = vld [vmem:[#allocation10 + $0xc4] ss:$8 sps:$4 sm:$0xff]  }
 0x577   :  { %v12670_v45 = vpop.eup %12669 }
 0x578   :  { %v3066_v46 = vmul.f32 %v12670_v45, %v12654_v42  ;;  %v11943_v42 = vld [vmem:[#allocation10 + $0x4] ss:$8 sps:$4 sm:$0xff]   ;;  %v11968_v45 = vld [vmem:[#allocation10 + $0x60] ss:$8 sps:$4 sm:$0xff]  }
 0x57a   :  { %11533 = vmatmul.mubr.msk.f32.vlgmr.msra.gmra.mrb[40].mxu0 %vm2985_vm2, %v3066_v46 }
 0x57b   :  { %v12672_v49 = vpop.eup %12671  ;;  %11541 = vmatpush3.msra.mxu0 %v2063_v47  ;;  %11542 = vmatprep.mubr.msk.f32.mxu0 %vm13007_vm0, %v13006_v62 }
 0x57c   :  { %v3068_v50 = vmul.f32 %v12672_v49, %v12656_v6  ;;  %v3039_v54 = vpop.xlane.xlu1 %3038  ;;  %11550 = vmatprep.subr.mxu0 %v13006_v62  ;;  %v11946_v6 = vld [vmem:[#allocation10 + $0x14] ss:$8 sps:$4 sm:$0xff]  }
 0x57d   :  { %12673 = vrcp.f32 %v3039_v54 }
 0x57e   :  { %11543 = vmatmul.mubr.msk.f32.vlgmr.msra.gmra.mrb[42].mxu0 %vm2985_vm2, %v3068_v50  ;;  %v11965_v50 = vld [vmem:[#allocation10 + $0xc0] ss:$8 sps:$4 sm:$0xff]  }
 0x57f   :  { %11551 = vmatpush3.msra.mxu0 %v2183_v55  ;;  %11552 = vmatprep.mubr.msk.f32.mxu0 %vm13007_vm0, %v13006_v62 }
 0x580   :  { %v3048_v36 = vpop.xlane.xlu0 %3047  ;;  %11560 = vmatprep.subr.mxu0 %v13006_v62 }
 0x581   :  { %12675 = vrcp.f32 %v3048_v36  ;;  %v11973_v36 = vld [vmem:[#allocation10 + $0xd4] ss:$8 sps:$4 sm:$0xff]  }
 0x584   :  { %v3054_v31 = vpop.xlane.xlu0 %3053 }
 0x585   :  { %12677 = vrcp.f32 %v3054_v31  ;;  %v11974_v31 = vld [vmem:[#allocation10 + $0x70] ss:$8 sps:$4 sm:$0xff]  }
 0x587   :  { %v12674_v57 = vpop.eup %12673 }
 0x588   :  { %v3067_v58 = vmul.f32 %v12674_v57, %v12658_v52  ;;  %v2363_v52 = vadd.f32 %v10699_v15, %v13352_v17  ;;  %v11953_v17 = vld [vmem:[#allocation10 + $0x20] ss:$8 sps:$4 sm:$0xff]  }
 0x58a   :  { %11538 = vmatmul.mubr.msk.f32.vlgmr.msra.gmra.mrb[76].mxu1 %vm2985_vm2, %v3067_v58  ;;  %v11971_v58 = vld [vmem:[#allocation10 + $0xd0] ss:$8 sps:$4 sm:$0xff]  }
 0x58b   :  { %v12676_v43 = vpop.eup %12675  ;;  %11546 = vmatpush3.msra.mxu1 %v2123_v59  ;;  %11547 = vmatprep.mubr.msk.f32.mxu1 %vm13007_vm0, %v13006_v62 }
 0x58c   :  { %v3070_v63 = vmul.f32 %v12676_v43, %v12660_v23  ;;  %v3045_v0 = vpop.xlane.xlu1 %3044  ;;  %11555 = vmatprep.subr.mxu1 %v13006_v62  ;;  %v11949_v23 = vld [vmem:[#allocation10 + $0x44] ss:$8 sps:$4 sm:$0xff]  }
 0x58d   :  { %12679 = vrcp.f32 %v3045_v0 }
 0x58e   :  { %11553 = vmatmul.mubr.msk.f32.vlgmr.msra.gmra.mrb[44].mxu0 %vm2985_vm2, %v3070_v63  ;;  %v11977_v63 = vld [vmem:[#allocation10 + $0xa0] ss:$8 sps:$4 sm:$0xff]  }
 0x58f   :  { %v12678_v4 = vpop.eup %12677  ;;  %11561 = vmatpush3.msra.mxu0 %v2303_v3  ;;  %11562 = vmatprep.mubr.msk.f32.mxu0 %vm13007_vm0, %v13006_v62  ;;  %v11982_v3 = vld [vmem:[#allocation10 + $0xb4] ss:$8 sps:$4 sm:$0xff]  }
 0x590   :  { %v3072_v5 = vmul.f32 %v12678_v4, %v13366_v2  ;;  %3721 = vmatprep.subr.bf16.mxu0 %v11943_v42  ;;  %v11958_v2 = vld [vmem:[#allocation10 + $0x34] ss:$8 sps:$4 sm:$0xff]   ;;  %v11980_v4 = vld [vmem:[#allocation10 + $0xb0] ss:$8 sps:$4 sm:$0xff]  }
 0x592   :  { %11563 = vmatmul.mubr.msk.f32.vlgmr.msra.gmra.mrb[46].mxu0 %vm2985_vm2, %v3072_v5 }
 0x593   :  { %3722 = vmatpush1.bf16.msra.mxu0 %v11941_v8  ;;  %3753 = vmatprep.mubr.bf16.mxu0 %v13008_v22  ;;  %v11985_v8 = vld [vmem:[#allocation10 + $0xe4] ss:$8 sps:$4 sm:$0xff]  }
 0x594   :  { %3723 = vmatprep.subr.bf16.mxu0 %v11946_v6  ;;  %v11983_v6 = vld [vmem:[#allocation10 + $0xe0] ss:$8 sps:$4 sm:$0xff]  }
 0x597   :  { %v12680_v51 = vpop.eup %12679  ;;  %3724 = vmatpush1.bf16.msra.mxu0 %v11944_v7 }
 0x598   :  { %v3069_v60 = vmul.f32 %v12680_v51, %v13370_v29  ;;  %3849 = vmatprep.subr.bf16.mxu0 %v11949_v23  ;;  %v11988_v51 = vld [vmem:[#allocation10 + $0xf4] ss:$8 sps:$4 sm:$0xff]  }
 0x59a   :  { %11548 = vmatmul.mubr.msk.f32.vlgmr.msra.gmra.mrb[78].mxu1 %vm2985_vm2, %v3069_v60  ;;  %v11986_v60 = vld [vmem:[#allocation10 + $0xf0] ss:$8 sps:$4 sm:$0xff]  }
 0x59b   :  { %11556 = vmatpush3.msra.mxu1 %v2243_v10  ;;  %11557 = vmatprep.mubr.msk.f32.mxu1 %vm13007_vm0, %v13006_v62 }
 0x59c   :  { %v3051_v12 = vpop.xlane.xlu1 %3050  ;;  %11565 = vmatprep.subr.mxu1 %v13006_v62 }
 0x59d   :  { %12681 = vrcp.f32 %v3051_v12 }
 0x5a7   :  { %v12682_v16 = vpop.eup %12681 }
 0x5a8   :  { %v3071_v18 = vmul.f32 %v12682_v16, %v13374_v35 }
 0x5aa   :  { %11558 = vmatmul.mubr.msk.f32.vlgmr.msra.gmra.mrb[80].mxu1 %vm2985_vm2, %v3071_v18 }
 0x5ab   :  { %11566 = vmatpush3.msra.mxu1 %v2363_v52  ;;  %11567 = vmatprep.mubr.msk.f32.mxu1 %vm13007_vm0, %v13006_v62 }
 0x5ac   :  { %v3057_v11 = vpop.xlane.xlu1 %3056  ;;  %3785 = vmatprep.subr.bf16.mxu1 %v11955_v13 }
 0x5ad   :  { %12683 = vrcp.f32 %v3057_v11 }
 0x5b7   :  { %v12684_v21 = vpop.eup %12683 }
 0x5b8   :  { %v3073_v53 = vmul.f32 %v12684_v21, %v13378_v34 }
 0x5ba   :  { %11568 = vmatmul.mubr.msk.f32.vlgmr.msra.gmra.mrb[82].mxu1 %vm2985_vm2, %v3073_v53 }
 0x5bb   :  { %3817 = vmatprep.mubr.bf16.mxu1 %v13008_v22  ;;  %3786 = vmatpush1.bf16.msra.mxu1 %v11953_v17 }
 0x5bc   :  { %3787 = vmatprep.subr.bf16.mxu1 %v11958_v2 }
 0x5bf   :  { %3788 = vmatpush1.bf16.msra.mxu1 %v11956_v25 }
 0x5c0   :  { %3913 = vmatprep.subr.bf16.mxu1 %v11970_v27 }
 0x64d   :  { %v3143_v29 = vpop.f32.mrb[40].mxu0 }
 0x64e   :  { %v3658_v32 = vpack.c.bf16 %v3143_v29, %v3143_v29  ;;  %v11534_v33 = vpop.f32.mrb[41].mxu0 }
 0x650   :  { %10824 = vmatmul.mubr.msk.bf16.vlgmr.msra.gmra.mrb[48].mxu0 %vm2368_vm1, %v3658_v32 }
 0x651   :  { %v3289_v35 = vpop.f32.mrb[42].mxu0  ;;  %3850 = vmatpush1.bf16.msra.mxu0 %v11947_v30  ;;  %3881 = vmatprep.mubr.bf16.mxu0 %v13008_v22 }
 0x652   :  { %v11544_v24 = vpop.f32.mrb[43].mxu0  ;;  %3851 = vmatprep.subr.bf16.mxu0 %v11952_v14  ;;  %v3660_v34 = vpack.c.bf16 %v3289_v35, %v3289_v35 }
 0x655   :  { %3852 = vmatpush1.bf16.msra.mxu0 %v11950_v37 }
 0x656   :  { %3977 = vmatprep.subr.bf16.mxu0 %v11961_v38 }
 0x658   :  { %10834 = vmatmul.mubr.msk.bf16.vlgmr.msra.gmra.mrb[52].mxu0 %vm2368_vm1, %v3660_v34 }
 0x659   :  { %3978 = vmatpush1.bf16.msra.mxu0 %v11959_v39  ;;  %4009 = vmatprep.mubr.bf16.mxu0 %v13008_v22 }
 0x65a   :  { %3979 = vmatprep.subr.bf16.mxu0 %v11964_v40 }
 0x65d   :  { %v3216_v1 = vpop.f32.mrb[76].mxu1  ;;  %3980 = vmatpush1.bf16.msra.mxu0 %v11962_v41 }
 0x65e   :  { %v3659_v46 = vpack.c.bf16 %v3216_v1, %v3216_v1  ;;  %v11539_v47 = vpop.f32.mrb[77].mxu1  ;;  %4105 = vmatprep.subr.bf16.mxu0 %v11967_v44 }
 0x660   :  { %10829 = vmatmul.mubr.msk.bf16.vlgmr.msra.gmra.mrb[84].mxu1 %vm2368_vm1, %v3659_v46 }
 0x661   :  { %v3435_v49 = vpop.f32.mrb[44].mxu0  ;;  %3914 = vmatpush1.bf16.msra.mxu1 %v11968_v45  ;;  %3945 = vmatprep.mubr.bf16.mxu1 %v13008_v22 }
 0x662   :  { %v3662_v54 = vpack.c.bf16 %v3435_v49, %v3435_v49  ;;  %v11554_v55 = vpop.f32.mrb[45].mxu0  ;;  %3915 = vmatprep.subr.bf16.mxu1 %v11976_v48 }
 0x664   :  { %10844 = vmatmul.mubr.msk.bf16.vlgmr.msra.gmra.mrb[56].mxu0 %vm2368_vm1, %v3662_v54 }
 0x665   :  { %v3581_v57 = vpop.f32.mrb[46].mxu0  ;;  %4106 = vmatpush1.bf16.msra.mxu0 %v11965_v50  ;;  %4137 = vmatprep.mubr.bf16.mxu0 %v13008_v22 }
 0x666   :  { %v11564_v59 = vpop.f32.mrb[47].mxu0  ;;  %4107 = vmatprep.subr.bf16.mxu0 %v11973_v36  ;;  %3916 = vmatpush1.bf16.msra.mxu1 %v11974_v31  ;;  %v3664_v61 = vpack.c.bf16 %v3581_v57, %v3581_v57 }
 0x667   :  { %4041 = vmatprep.subr.bf16.mxu1 %v11979_v56  ;;  %v13433_v59 = vsub.s32 1, %v13197_v19 }
 0x669   :  { %4108 = vmatpush1.bf16.msra.mxu0 %v11971_v58 }
 0x66c   :  { %10854 = vmatmul.mubr.msk.bf16.vlgmr.msra.gmra.mrb[60].mxu0 %vm2368_vm1, %v3664_v61  ;;  %v13435_v61 = vld [vmem:[#allocation17] sm:$0xff] }
 0x66d   :  { %v3362_v43 = vpop.f32.mrb[78].mxu1 }
 0x66e   :  { %v3661_v0 = vpack.c.bf16 %v3362_v43, %v3362_v43  ;;  %v11549_v42 = vpop.f32.mrb[79].mxu1  ;;  %v4227_v43 = vrot.slane %v13435_v61, %v13433_v59 }
 0x670   :  { %10839 = vmatmul.mubr.msk.bf16.vlgmr.msra.gmra.mrb[88].mxu1 %vm2368_vm1, %v3661_v0  ;;  %v13439_v0 = vld [vmem:[#allocation17 + $0x8] sm:$0xff] }
 0x671   :  { %4042 = vmatpush1.bf16.msra.mxu1 %v11977_v63  ;;  %4073 = vmatprep.mubr.bf16.mxu1 %v13008_v22  ;;  %v4231_v42 = vrot.slane %v13439_v0, %v13433_v59 }
 0x672   :  { %4043 = vmatprep.subr.bf16.mxu1 %v11982_v3 }
 0x675   :  { %4044 = vmatpush1.bf16.msra.mxu1 %v11980_v4 }
 0x676   :  { %4169 = vmatprep.subr.bf16.mxu1 %v11985_v8 }
 0x67d   :  { %v3508_v5 = vpop.f32.mrb[80].mxu1 }
 0x67e   :  { %v3663_v7 = vpack.c.bf16 %v3508_v5, %v3508_v5  ;;  %v11559_v9 = vpop.f32.mrb[81].mxu1 }
 0x680   :  { %10849 = vmatmul.mubr.msk.bf16.vlgmr.msra.gmra.mrb[92].mxu1 %vm2368_vm1, %v3663_v7 }
 0x681   :  { %4170 = vmatpush1.bf16.msra.mxu1 %v11983_v6  ;;  %4201 = vmatprep.mubr.bf16.mxu1 %v13008_v22 }
 0x682   :  { %4171 = vmatprep.subr.bf16.mxu1 %v11988_v51 }
 0x685   :  { %4172 = vmatpush1.bf16.msra.mxu1 %v11986_v60 }
 0x68d   :  { %v3654_v10 = vpop.f32.mrb[82].mxu1 }
 0x68e   :  { %v3665_v12 = vpack.c.bf16 %v3654_v10, %v3654_v10  ;;  %v11569_v15 = vpop.f32.mrb[83].mxu1 }
 0x68f   :  { %v11991_v15 = vld [vmem:[#allocation11 + $0x4] ss:$16 sps:$4 sm:$0xff]  }
 0x690   :  { %10859 = vmatmul.mubr.msk.bf16.vlgmr.msra.gmra.mrb[96].mxu1 %vm2368_vm1, %v3665_v12  ;;  %v11989_v12 = vld [vmem:[#allocation11] ss:$16 sps:$4 sm:$0xff]   ;;  %4675 = vmatprep.subr.bf16.mxu0 %v11991_v15  ;;  %v12064_v15 = vld [vmem:[#allocation11 + $0x188] ss:$16 sps:$4 sm:$0xff]  }
 0x691   :  { %4676 = vmatpush1.bf16.msra.mxu0 %v11989_v12  ;;  %v12061_v12 = vld [vmem:[#allocation11 + $0x180] ss:$16 sps:$4 sm:$0xff]  }
 0x723   :  { %v3755_v16 = vpop.f32.mrb[48].mxu0 }
 0x724   :  { %v3757_v18 = vpop.f32.mrb[49].mxu0 }
 0x725   :  { %v3759_v52 = vpop.f32.mrb[50].mxu0 }
 0x726   :  { %v3760_v11 = vpop.f32.mrb[51].mxu0  ;;  %v11997_v52 = vld [vmem:[#allocation11 + $0x24] ss:$16 sps:$4 sm:$0xff]  }
 0x727   :  { %v12000_v11 = vld [vmem:[#allocation11 + $0x2c] ss:$16 sps:$4 sm:$0xff]   ;;  %4677 = vmatprep.subr.bf16.mxu0 %v11997_v52  ;;  %v12067_v52 = vld [vmem:[#allocation11 + $0x1a0] ss:$16 sps:$4 sm:$0xff]  }
 0x72b   :  { %v3883_v21 = vpop.f32.mrb[52].mxu0 }
 0x72c   :  { %v3885_v53 = vpop.f32.mrb[53].mxu0 }
 0x72d   :  { %v3887_v23 = vpop.f32.mrb[54].mxu0 }
 0x72e   :  { %v3888_v17 = vpop.f32.mrb[55].mxu0  ;;  %v12001_v23 = vld [vmem:[#allocation11 + $0x40] ss:$16 sps:$4 sm:$0xff]  }
 0x72f   :  { %v12004_v17 = vld [vmem:[#allocation11 + $0x48] ss:$16 sps:$4 sm:$0xff]  }
 0x733   :  { %v3819_v13 = vpop.f32.mrb[84].mxu1 }
 0x734   :  { %v4210_v25 = vadd.f32 %v3819_v13, %v3755_v16  ;;  %v3821_v2 = vpop.f32.mrb[85].mxu1  ;;  %v11992_v16 = vld [vmem:[#allocation11 + $0x8] ss:$16 sps:$4 sm:$0xff]   ;;  %v12009_v13 = vld [vmem:[#allocation11 + $0x64] ss:$16 sps:$4 sm:$0xff]  }
 0x735   :  { %v4217_v27 = vadd.f32 %v3821_v2, %v3757_v18  ;;  %v3823_v29 = vpop.f32.mrb[86].mxu1  ;;  %v11994_v18 = vld [vmem:[#allocation11 + $0xc] ss:$16 sps:$4 sm:$0xff]   ;;  %v12007_v2 = vld [vmem:[#allocation11 + $0x60] ss:$16 sps:$4 sm:$0xff]  }
 0x736   :  { %v3824_v30 = vpop.f32.mrb[87].mxu1  ;;  %v4211_v32 = vadd.f32 %v4210_v25, %v3883_v21  ;;  %4716 = vmatprep.subr.bf16.mxu1 %v11994_v18  ;;  %v11995_v21 = vld [vmem:[#allocation11 + $0x20] ss:$16 sps:$4 sm:$0xff]   ;;  %v12012_v25 = vld [vmem:[#allocation11 + $0x6c] ss:$16 sps:$4 sm:$0xff]  }
 0x737   :  { %v4011_v33 = vpop.f32.mrb[56].mxu0  ;;  %v4218_v14 = vadd.f32 %v4217_v27, %v3885_v53  ;;  %4717 = vmatpush1.bf16.msra.mxu1 %v11992_v16  ;;  %v12003_v53 = vld [vmem:[#allocation11 + $0x44] ss:$16 sps:$4 sm:$0xff]   ;;  %4678 = vmatpush1.bf16.msra.mxu0 %v11995_v21  ;;  %v12010_v27 = vld [vmem:[#allocation11 + $0x68] ss:$16 sps:$4 sm:$0xff]  }
 0x738   :  { %v4013_v35 = vpop.f32.mrb[57].mxu0  ;;  %4718 = vmatprep.subr.bf16.mxu1 %v12000_v11  ;;  %4679 = vmatprep.subr.bf16.mxu0 %v12003_v53  ;;  %v12015_v29 = vld [vmem:[#allocation11 + $0x84] ss:$16 sps:$4 sm:$0xff]   ;;  %v12018_v30 = vld [vmem:[#allocation11 + $0x8c] ss:$16 sps:$4 sm:$0xff]  }
 0x739   :  { %v4015_v37 = vpop.f32.mrb[58].mxu0  ;;  %v12069_v16 = vld [vmem:[#allocation11 + $0x1a4] ss:$16 sps:$4 sm:$0xff]   ;;  %v12072_v18 = vld [vmem:[#allocation11 + $0x1ac] ss:$16 sps:$4 sm:$0xff]  }
 0x73a   :  { %v4016_v24 = vpop.f32.mrb[59].mxu0  ;;  %v12019_v37 = vld [vmem:[#allocation11 + $0xa0] ss:$16 sps:$4 sm:$0xff]   ;;  %v12070_v11 = vld [vmem:[#allocation11 + $0x1a8] ss:$16 sps:$4 sm:$0xff]  }
 0x73b   :  { %4680 = vmatpush1.bf16.msra.mxu0 %v12001_v23  ;;  %v12022_v24 = vld [vmem:[#allocation11 + $0xa8] ss:$16 sps:$4 sm:$0xff]   ;;  %v12073_v21 = vld [vmem:[#allocation11 + $0x1c0] ss:$16 sps:$4 sm:$0xff]   ;;  %v12081_v23 = vld [vmem:[#allocation11 + $0x1e4] ss:$16 sps:$4 sm:$0xff]  }
 0x73c   :  { %4681 = vmatprep.subr.bf16.mxu0 %v12009_v13  ;;  %v12076_v53 = vld [vmem:[#allocation11 + $0x1c8] ss:$16 sps:$4 sm:$0xff]   ;;  %v12079_v13 = vld [vmem:[#allocation11 + $0x1e0] ss:$16 sps:$4 sm:$0xff]  }
 0x73f   :  { %v4139_v38 = vpop.f32.mrb[60].mxu0  ;;  %4682 = vmatpush1.bf16.msra.mxu0 %v12007_v2  ;;  %v12087_v2 = vld [vmem:[#allocation13 + $0x4] ss:$8 sps:$4 sm:$0xff]  }
 0x740   :  { %v4141_v39 = vpop.f32.mrb[61].mxu0  ;;  %4683 = vmatprep.subr.bf16.mxu0 %v12015_v29 }
 0x741   :  { %v4143_v34 = vpop.f32.mrb[62].mxu0 }
 0x742   :  { %v4144_v40 = vpop.f32.mrb[63].mxu0  ;;  %v12025_v34 = vld [vmem:[#allocation11 + $0xc0] ss:$16 sps:$4 sm:$0xff]  }
 0x743   :  { %v3947_v41 = vpop.f32.mrb[88].mxu1  ;;  %v12028_v40 = vld [vmem:[#allocation11 + $0xc8] ss:$16 sps:$4 sm:$0xff]  }
 0x744   :  { %v4212_v44 = vadd.f32 %v4211_v32, %v3947_v41  ;;  %v3949_v1 = vpop.f32.mrb[89].mxu1  ;;  %v12013_v32 = vld [vmem:[#allocation11 + $0x80] ss:$16 sps:$4 sm:$0xff]   ;;  %v12033_v41 = vld [vmem:[#allocation11 + $0xe4] ss:$16 sps:$4 sm:$0xff]  }
 0x745   :  { %v4219_v45 = vadd.f32 %v4218_v14, %v3949_v1  ;;  %v3951_v46 = vpop.f32.mrb[90].mxu1  ;;  %v12021_v14 = vld [vmem:[#allocation11 + $0xa4] ss:$16 sps:$4 sm:$0xff]   ;;  %4684 = vmatpush1.bf16.msra.mxu0 %v12013_v32  ;;  %v12031_v1 = vld [vmem:[#allocation11 + $0xe0] ss:$16 sps:$4 sm:$0xff]  }
 0x746   :  { %v3952_v47 = vpop.f32.mrb[91].mxu1  ;;  %v4213_v48 = vadd.f32 %v4212_v44, %v4011_v33  ;;  %v12016_v33 = vld [vmem:[#allocation11 + $0x88] ss:$16 sps:$4 sm:$0xff]   ;;  %4685 = vmatprep.subr.bf16.mxu0 %v12021_v14  ;;  %v12036_v44 = vld [vmem:[#allocation11 + $0xec] ss:$16 sps:$4 sm:$0xff]   ;;  %v13465_v14 = vsub.s32 5, %v13197_v19 }
 0x747   :  { %v4220_v49 = vadd.f32 %v4219_v45, %v4013_v35  ;;  %v12024_v35 = vld [vmem:[#allocation11 + $0xac] ss:$16 sps:$4 sm:$0xff]   ;;  %v12034_v45 = vld [vmem:[#allocation11 + $0xe8] ss:$16 sps:$4 sm:$0xff]   ;;  %v12039_v46 = vld [vmem:[#allocation11 + $0x104] ss:$16 sps:$4 sm:$0xff]  }
 0x748   :  { %v12042_v47 = vld [vmem:[#allocation11 + $0x10c] ss:$16 sps:$4 sm:$0xff]  }
 0x749   :  { %4686 = vmatpush1.bf16.msra.mxu0 %v12019_v37 }
 0x753   :  { %v4075_v50 = vpop.f32.mrb[92].mxu1 }
 0x754   :  { %v4214_v54 = vadd.f32 %v4213_v48, %v4075_v50  ;;  %v4077_v55 = vpop.f32.mrb[93].mxu1  ;;  %v12037_v48 = vld [vmem:[#allocation11 + $0x100] ss:$16 sps:$4 sm:$0xff]   ;;  %v12045_v50 = vld [vmem:[#allocation11 + $0x124] ss:$16 sps:$4 sm:$0xff]  }
 0x755   :  { %v4221_v36 = vadd.f32 %v4220_v49, %v4077_v55  ;;  %v4079_v31 = vpop.f32.mrb[94].mxu1  ;;  %v12040_v49 = vld [vmem:[#allocation11 + $0x108] ss:$16 sps:$4 sm:$0xff]   ;;  %v12043_v55 = vld [vmem:[#allocation11 + $0x120] ss:$16 sps:$4 sm:$0xff]  }
 0x756   :  { %v4080_v56 = vpop.f32.mrb[95].mxu1  ;;  %v4215_v57 = vadd.f32 %v4214_v54, %v4139_v38  ;;  %v12027_v38 = vld [vmem:[#allocation11 + $0xc4] ss:$16 sps:$4 sm:$0xff]   ;;  %v12048_v54 = vld [vmem:[#allocation11 + $0x12c] ss:$16 sps:$4 sm:$0xff]  }
 0x757   :  { %v4222_v58 = vadd.f32 %v4221_v36, %v4141_v39  ;;  %v12030_v39 = vld [vmem:[#allocation11 + $0xcc] ss:$16 sps:$4 sm:$0xff]   ;;  %4687 = vmatprep.subr.bf16.mxu0 %v12027_v38  ;;  %v12046_v36 = vld [vmem:[#allocation11 + $0x128] ss:$16 sps:$4 sm:$0xff]  }
 0x758   :  { %4688 = vmatpush1.bf16.msra.mxu0 %v12025_v34  ;;  %v4270_v34 = vrot.slane %v13439_v0, %v13465_v14 }
 0x759   :  { %4689 = vmatprep.subr.bf16.mxu0 %v12033_v41 }
 0x75c   :  { %4690 = vmatpush1.bf16.msra.mxu0 %v12031_v1 }
 0x75d   :  { %4691 = vmatprep.subr.bf16.mxu0 %v12039_v46 }
 0x760   :  { %4692 = vmatpush1.bf16.msra.mxu0 %v12037_v48  ;;  %v12085_v48 = vld [vmem:[#allocation13] ss:$8 sps:$4 sm:$0xff]  }
 0x761   :  { %4693 = vmatprep.subr.bf16.mxu0 %v12045_v50  ;;  %v12093_v50 = vld [vmem:[#allocation13 + $0x14] ss:$8 sps:$4 sm:$0xff]  }
 0x763   :  { %v4203_v63 = vpop.f32.mrb[96].mxu1 }
 0x764   :  { %v4216_v3 = vadd.f32 %v4215_v57, %v4203_v63  ;;  %v4205_v4 = vpop.f32.mrb[97].mxu1  ;;  %4694 = vmatpush1.bf16.msra.mxu0 %v12043_v55  ;;  %v12091_v55 = vld [vmem:[#allocation13 + $0x10] ss:$8 sps:$4 sm:$0xff]  }
 0x765   :  { %v4223_v8 = vadd.f32 %v4222_v58, %v4205_v4  ;;  %v4207_v5 = vpop.f32.mrb[98].mxu1  ;;  %v12054_v4 = vld [vmem:[#allocation11 + $0x14c] ss:$16 sps:$4 sm:$0xff]  }
 0x766   :  { %v4232_v6 = vadd.f32 %v4227_v43, %v4216_v3  ;;  %v4208_v7 = vpop.f32.mrb[99].mxu1  ;;  %v12051_v3 = vld [vmem:[#allocation11 + $0x144] ss:$16 sps:$4 sm:$0xff]   ;;  %v12052_v5 = vld [vmem:[#allocation11 + $0x148] ss:$16 sps:$4 sm:$0xff]  }
 0x767   :  { %v4233_v9 = vadd.f32 %v4231_v42, %v4223_v8  ;;  %v12049_v8 = vld [vmem:[#allocation11 + $0x140] ss:$16 sps:$4 sm:$0xff]   ;;  %4695 = vmatprep.subr.bf16.mxu0 %v12051_v3  ;;  %v12060_v7 = vld [vmem:[#allocation11 + $0x16c] ss:$16 sps:$4 sm:$0xff]  }
 0x768   :  { %v13444_v51 = vadd.f32 %v13204_v26, %v4232_v6  ;;  %v11998_v26 = vld [vmem:[#allocation11 + $0x28] ss:$16 sps:$4 sm:$0xff]   ;;  %4696 = vmatpush1.bf16.msra.mxu0 %v12049_v8  ;;  %v12057_v6 = vld [vmem:[#allocation11 + $0x164] ss:$16 sps:$4 sm:$0xff]  }
 0x769   :  { %v13447_v60 = vadd.f32 %v13206_v28, %v4233_v9  ;;  %v12006_v28 = vld [vmem:[#allocation11 + $0x4c] ss:$16 sps:$4 sm:$0xff]   ;;  %4719 = vmatpush1.bf16.msra.mxu1 %v11998_v26  ;;  %v12055_v9 = vld [vmem:[#allocation11 + $0x160] ss:$16 sps:$4 sm:$0xff]   ;;  %4697 = vmatprep.subr.bf16.mxu0 %v12057_v6  ;;  %v12075_v26 = vld [vmem:[#allocation11 + $0x1c4] ss:$16 sps:$4 sm:$0xff]  }
 0x76a   :  { %4720 = vmatprep.subr.bf16.mxu1 %v12006_v28  ;;  %v12078_v28 = vld [vmem:[#allocation11 + $0x1cc] ss:$16 sps:$4 sm:$0xff]   ;;  %v12106_v3 = vld [vmem:[#allocation13 + $0x130] ss:$8 sps:$4 sm:$0xff]   ;;  %v12112_v6 = vld [vmem:[#allocation13 + $0x140] ss:$8 sps:$4 sm:$0xff]  }
 0x76b   :  { %v4236_v10 = vadd.f32 %v13447_v60, %v13444_v51  ;;  %v12114_v8 = vld [vmem:[#allocation13 + $0x144] ss:$8 sps:$4 sm:$0xff]  }
 0x76c   :  { %4698 = vmatpush1.bf16.msra.mxu0 %v12055_v9  ;;  %v12120_v9 = vld [vmem:[#allocation13 + $0x154] ss:$8 sps:$4 sm:$0xff]  }
 0x76d   :  { %4237 = vadd.xlane.f32.xlu0 %v4236_v10  ;;  %4721 = vmatpush1.bf16.msra.mxu1 %v12004_v17  ;;  %v12066_v10 = vld [vmem:[#allocation11 + $0x18c] ss:$16 sps:$4 sm:$0xff]  }
 0x76e   :  { %4722 = vmatprep.subr.bf16.mxu1 %v12012_v25  ;;  %v12084_v17 = vld [vmem:[#allocation11 + $0x1ec] ss:$16 sps:$4 sm:$0xff]   ;;  %v12082_v25 = vld [vmem:[#allocation11 + $0x1e8] ss:$16 sps:$4 sm:$0xff]  }
 0x771   :  { %4723 = vmatpush1.bf16.msra.mxu1 %v12010_v27  ;;  %v12090_v27 = vld [vmem:[#allocation13 + $0x104] ss:$8 sps:$4 sm:$0xff]  }
 0x772   :  { %4724 = vmatprep.subr.bf16.mxu1 %v12018_v30 }
 0x775   :  { %4725 = vmatpush1.bf16.msra.mxu1 %v12016_v33  ;;  %v13462_v33 = vsub.s32 4, %v13197_v19 }
 0x776   :  { %4726 = vmatprep.subr.bf16.mxu1 %v12024_v35 }
 0x777   :  { %v4260_v35 = vrot.slane %v13439_v0, %v13462_v33  ;;  %v4256_v37 = vrot.slane %v13435_v61, %v13462_v33 }
 0x779   :  { %4727 = vmatpush1.bf16.msra.mxu1 %v12022_v24 }
 0x77a   :  { %4728 = vmatprep.subr.bf16.mxu1 %v12030_v39 }
 0x77d   :  { %4729 = vmatpush1.bf16.msra.mxu1 %v12028_v40  ;;  %v4266_v40 = vrot.slane %v13435_v61, %v13465_v14 }
 0x77e   :  { %4730 = vmatprep.subr.bf16.mxu1 %v12036_v44 }
 0x781   :  { %4731 = vmatpush1.bf16.msra.mxu1 %v12034_v45 }
 0x782   :  { %4732 = vmatprep.subr.bf16.mxu1 %v12042_v47 }
 0x785   :  { %4733 = vmatpush1.bf16.msra.mxu1 %v12040_v49  ;;  %v12088_v49 = vld [vmem:[#allocation13 + $0x100] ss:$8 sps:$4 sm:$0xff]  }
 0x786   :  { %4734 = vmatprep.subr.bf16.mxu1 %v12048_v54  ;;  %v12096_v54 = vld [vmem:[#allocation13 + $0x114] ss:$8 sps:$4 sm:$0xff]  }
 0x789   :  { %4735 = vmatpush1.bf16.msra.mxu1 %v12046_v36  ;;  %v12094_v36 = vld [vmem:[#allocation13 + $0x110] ss:$8 sps:$4 sm:$0xff]  }
 0x78a   :  { %4736 = vmatprep.subr.bf16.mxu1 %v12054_v4  ;;  %v12111_v4 = vld [vmem:[#allocation13 + $0x44] ss:$8 sps:$4 sm:$0xff]  }
 0x78d   :  { %4737 = vmatpush1.bf16.msra.mxu1 %v12052_v5  ;;  %v12109_v5 = vld [vmem:[#allocation13 + $0x40] ss:$8 sps:$4 sm:$0xff]  }
 0x78e   :  { %4738 = vmatprep.subr.bf16.mxu1 %v12060_v7  ;;  %v12117_v7 = vld [vmem:[#allocation13 + $0x54] ss:$8 sps:$4 sm:$0xff]  }
 0x7fa   :  { %v4238_v31 = vpop.xlane.xlu0 %4237 }
 0x7fb   :  { %v4240_v56 = vmul.f32 0.00390625, %v4238_v31  ;;  %v12099_v31 = vld [vmem:[#allocation13 + $0x24] ss:$8 sps:$4 sm:$0xff]  }
 0x7fd   :  { %v13452_v57 = vsub.f32 %v13444_v51, %v4240_v56  ;;  %v13455_v58 = vsub.f32 %v13447_v60, %v4240_v56  ;;  %v12058_v51 = vld [vmem:[#allocation11 + $0x168] ss:$16 sps:$4 sm:$0xff]   ;;  %v12063_v60 = vld [vmem:[#allocation11 + $0x184] ss:$16 sps:$4 sm:$0xff]  }
 0x7fe   :  { %4739 = vmatpush1.bf16.msra.mxu1 %v12058_v51  ;;  %4699 = vmatprep.subr.bf16.mxu0 %v12063_v60  ;;  %v12102_v56 = vld [vmem:[#allocation13 + $0x124] ss:$8 sps:$4 sm:$0xff]   ;;  %v12115_v51 = vld [vmem:[#allocation13 + $0x50] ss:$8 sps:$4 sm:$0xff]  }
 0x7ff   :  { %v4243_v43 = vmul.f32 %v13452_v57, %v13452_v57  ;;  %v4244_v63 = vmul.f32 %v13455_v58, %v13455_v58  ;;  %4740 = vmatprep.subr.bf16.mxu1 %v12066_v10  ;;  %4700 = vmatpush1.bf16.msra.mxu0 %v12061_v12  ;;  %v12118_v60 = vld [vmem:[#allocation13 + $0x150] ss:$8 sps:$4 sm:$0xff]   ;;  %v12123_v10 = vld [vmem:[#allocation13 + $0x64] ss:$8 sps:$4 sm:$0xff]  }
 0x800   :  { %4701 = vmatprep.subr.bf16.mxu0 %v12069_v16  ;;  %v12126_v12 = vld [vmem:[#allocation13 + $0x164] ss:$8 sps:$4 sm:$0xff]   ;;  %v12124_v16 = vld [vmem:[#allocation13 + $0x160] ss:$8 sps:$4 sm:$0xff]  }
 0x801   :  { %v4245_v42 = vadd.f32 %v4244_v63, %v4243_v43  ;;  %v12105_v43 = vld [vmem:[#allocation13 + $0x34] ss:$8 sps:$4 sm:$0xff]  }
 0x802   :  { %4741 = vmatpush1.bf16.msra.mxu1 %v12064_v15  ;;  %v12108_v63 = vld [vmem:[#allocation13 + $0x134] ss:$8 sps:$4 sm:$0xff]   ;;  %v12121_v15 = vld [vmem:[#allocation13 + $0x60] ss:$8 sps:$4 sm:$0xff]  }
 0x803   :  { %4246 = vadd.xlane.f32.xlu1 %v4245_v42  ;;  %4742 = vmatprep.subr.bf16.mxu1 %v12072_v18  ;;  %v12103_v42 = vld [vmem:[#allocation13 + $0x30] ss:$8 sps:$4 sm:$0xff]   ;;  %v12129_v18 = vld [vmem:[#allocation13 + $0x74] ss:$8 sps:$4 sm:$0xff]  }
 0x804   :  { %4702 = vmatpush1.bf16.msra.mxu0 %v12067_v52  ;;  %v12132_v52 = vld [vmem:[#allocation13 + $0x174] ss:$8 sps:$4 sm:$0xff]  }
 0x805   :  { %4703 = vmatprep.subr.bf16.mxu0 %v12075_v26  ;;  %v12135_v26 = vld [vmem:[#allocation13 + $0x84] ss:$8 sps:$4 sm:$0xff]  }
 0x806   :  { %4743 = vmatpush1.bf16.msra.mxu1 %v12070_v11  ;;  %v12127_v11 = vld [vmem:[#allocation13 + $0x70] ss:$8 sps:$4 sm:$0xff]  }
 0x807   :  { %4744 = vmatprep.subr.bf16.mxu1 %v12078_v28  ;;  %v12133_v28 = vld [vmem:[#allocation13 + $0x80] ss:$8 sps:$4 sm:$0xff]  }
 0x808   :  { %4704 = vmatpush1.bf16.msra.mxu0 %v12073_v21  ;;  %v12130_v21 = vld [vmem:[#allocation13 + $0x170] ss:$8 sps:$4 sm:$0xff]  }
 0x809   :  { %4705 = vmatprep.subr.bf16.mxu0 %v12081_v23  ;;  %v12136_v23 = vld [vmem:[#allocation13 + $0x180] ss:$8 sps:$4 sm:$0xff]  }
 0x80a   :  { %4745 = vmatpush1.bf16.msra.mxu1 %v12076_v53  ;;  %v12138_v53 = vld [vmem:[#allocation13 + $0x184] ss:$8 sps:$4 sm:$0xff]  }
 0x80b   :  { %4746 = vmatprep.subr.bf16.mxu1 %v12084_v17  ;;  %v12141_v17 = vld [vmem:[#allocation13 + $0x94] ss:$8 sps:$4 sm:$0xff]  }
 0x80c   :  { %4706 = vmatpush1.bf16.msra.mxu0 %v12079_v13  ;;  %v12144_v13 = vld [vmem:[#allocation13 + $0x194] ss:$8 sps:$4 sm:$0xff]  }
 0x80d   :  { %5157 = vmatprep.subr.bf16.mxu0 %v12087_v2  ;;  %v12142_v2 = vld [vmem:[#allocation13 + $0x190] ss:$8 sps:$4 sm:$0xff]  }
 0x80e   :  { %4747 = vmatpush1.bf16.msra.mxu1 %v12082_v25  ;;  %v12139_v25 = vld [vmem:[#allocation13 + $0x90] ss:$8 sps:$4 sm:$0xff]  }
 0x80f   :  { %5198 = vmatprep.subr.bf16.mxu1 %v12090_v27  ;;  %v12147_v27 = vld [vmem:[#allocation13 + $0xa4] ss:$8 sps:$4 sm:$0xff]  }
 0x890   :  { %v4247_v29 = vpop.xlane.xlu1 %4246 }
 0x891   :  { %v4248_v30 = vmul.f32 0.00390625, %v4247_v29  ;;  %v12150_v29 = vld [vmem:[#allocation13 + $0x1a4] ss:$8 sps:$4 sm:$0xff]  }
 0x893   :  { %v4249_v32 = vadd.f32 1e-05, %v4248_v30  ;;  %v12145_v30 = vld [vmem:[#allocation13 + $0xa0] ss:$8 sps:$4 sm:$0xff]  }
 0x895   :  { %12685 = vrsqrt.f32 %v4249_v32  ;;  %v12148_v32 = vld [vmem:[#allocation13 + $0x1a0] ss:$8 sps:$4 sm:$0xff]  }
 0x89f   :  { %v12686_v24 = vpop.eup %12685 }
 0x8a0   :  { %v4251_v38 = vmul.f32 %v12686_v24, %v13452_v57  ;;  %v4252_v39 = vmul.f32 %v12686_v24, %v13455_v58  ;;  %v12097_v57 = vld [vmem:[#allocation13 + $0x20] ss:$8 sps:$4 sm:$0xff]   ;;  %v12151_v24 = vld [vmem:[#allocation13 + $0xb0] ss:$8 sps:$4 sm:$0xff]  }
 0x8a1   :  { %v12100_v58 = vld [vmem:[#allocation13 + $0x120] ss:$8 sps:$4 sm:$0xff]  }
 0x8a2   :  { %v4262_v41 = vmul.f32 %v4260_v35, %v4252_v39  ;;  %v4261_v44 = vmul.f32 %v4256_v37, %v4251_v38  ;;  %v12153_v35 = vld [vmem:[#allocation13 + $0xb4] ss:$8 sps:$4 sm:$0xff]   ;;  %v12154_v38 = vld [vmem:[#allocation13 + $0x1b0] ss:$8 sps:$4 sm:$0xff]   ;;  %v12159_v39 = vld [vmem:[#allocation13 + $0xc4] ss:$8 sps:$4 sm:$0xff]  }
 0x8a3   :  { %v12156_v37 = vld [vmem:[#allocation13 + $0x1b4] ss:$8 sps:$4 sm:$0xff]  }
 0x8a4   :  { %v13477_v1 = vadd.f32 %v4270_v34, %v4262_v41  ;;  %v13479_v45 = vadd.f32 %v4266_v40, %v4261_v44  ;;  %v12162_v34 = vld [vmem:[#allocation13 + $0x1c4] ss:$8 sps:$4 sm:$0xff]   ;;  %v12157_v40 = vld [vmem:[#allocation13 + $0xc0] ss:$8 sps:$4 sm:$0xff]   ;;  %v12165_v44 = vld [vmem:[#allocation13 + $0xd4] ss:$8 sps:$4 sm:$0xff]  }
 0x8a5   :  { %v12160_v41 = vld [vmem:[#allocation13 + $0x1c0] ss:$8 sps:$4 sm:$0xff]  }
 0x8a6   :  { %v4274_v46 = vpack.c.bf16 %v13477_v1, %v13477_v1  ;;  %v4273_v47 = vpack.c.bf16 %v13479_v45, %v13479_v45 }
 0x8a8   :  { %4707 = vmatprep.mubr.bf16.mxu0 %v4274_v46  ;;  %4748 = vmatprep.mubr.bf16.mxu1 %v4274_v46  ;;  %v12168_v46 = vld [vmem:[#allocation13 + $0x1d4] ss:$8 sps:$4 sm:$0xff]  }
 0x8a9   :  { %4708 = vmatmul.mubr.bf16.vlgmr.msra.gmra.mrb[64].mxu0 %v4273_v47  ;;  %4749 = vmatmul.mubr.bf16.vlgmr.msra.gmra.mrb[100].mxu1 %v4273_v47  ;;  %v12163_v47 = vld [vmem:[#allocation13 + $0xd0] ss:$8 sps:$4 sm:$0xff]  }
 0x8aa   :  { %5158 = vmatpush1.bf16.msra.mxu0 %v12085_v48  ;;  %5199 = vmatpush1.bf16.msra.mxu1 %v12088_v49  ;;  %v12166_v48 = vld [vmem:[#allocation13 + $0x1d0] ss:$8 sps:$4 sm:$0xff]   ;;  %v12171_v49 = vld [vmem:[#allocation13 + $0xe4] ss:$8 sps:$4 sm:$0xff]  }
 0x8ab   :  { %5159 = vmatprep.subr.bf16.mxu0 %v12093_v50  ;;  %5200 = vmatprep.subr.bf16.mxu1 %v12096_v54  ;;  %v12174_v50 = vld [vmem:[#allocation13 + $0x1e4] ss:$8 sps:$4 sm:$0xff]   ;;  %v12169_v54 = vld [vmem:[#allocation13 + $0xe0] ss:$8 sps:$4 sm:$0xff]  }
 0x8ae   :  { %5160 = vmatpush1.bf16.msra.mxu0 %v12091_v55  ;;  %5201 = vmatpush1.bf16.msra.mxu1 %v12094_v36  ;;  %v12172_v55 = vld [vmem:[#allocation13 + $0x1e0] ss:$8 sps:$4 sm:$0xff]   ;;  %v12177_v36 = vld [vmem:[#allocation13 + $0xf4] ss:$8 sps:$4 sm:$0xff]  }
 0x8af   :  { %5161 = vmatprep.subr.bf16.mxu0 %v12099_v31  ;;  %5202 = vmatprep.subr.bf16.mxu1 %v12102_v56  ;;  %v12180_v31 = vld [vmem:[#allocation13 + $0x1f4] ss:$8 sps:$4 sm:$0xff]   ;;  %v12175_v56 = vld [vmem:[#allocation13 + $0xf0] ss:$8 sps:$4 sm:$0xff]  }
 0x8b2   :  { %5162 = vmatpush1.bf16.msra.mxu0 %v12097_v57  ;;  %5203 = vmatpush1.bf16.msra.mxu1 %v12100_v58  ;;  %v12178_v57 = vld [vmem:[#allocation13 + $0x1f0] ss:$8 sps:$4 sm:$0xff]   ;;  %v13486_v58 = vsub.s32 2, %v13197_v19 }
 0x8b3   :  { %5163 = vmatprep.subr.bf16.mxu0 %v12105_v43  ;;  %5204 = vmatprep.subr.bf16.mxu1 %v12108_v63  ;;  %v177_v43 = vld [vmem:[#allocation17 + $0x10] sm:$0xff]  ;;  %v178_v63 = vld [vmem:[#allocation17 + $0x18] sm:$0xff] }
 0x8b6   :  { %5164 = vmatpush1.bf16.msra.mxu0 %v12103_v42  ;;  %5205 = vmatpush1.bf16.msra.mxu1 %v12106_v3  ;;  %v4342_v42 = vrot.slane %v13435_v61, %v13486_v58  ;;  %v4350_v3 = vrot.slane %v177_v43, %v13486_v58  ;;  %v12186_v43 = vld [vmem:[#allocation7 + $0x324] ss:$8 sps:$4 sm:$0xff]  }
 0x8b7   :  { %5165 = vmatprep.subr.bf16.mxu0 %v12111_v4  ;;  %5206 = vmatprep.subr.bf16.mxu1 %v12114_v8  ;;  %v4346_v4 = vrot.slane %v13439_v0, %v13486_v58  ;;  %v4354_v8 = vrot.slane %v178_v63, %v13486_v58  ;;  %v12181_v63 = vld [vmem:[#allocation7 + $0x300] ss:$8 sps:$4 sm:$0xff]  }
 0x8ba   :  { %5166 = vmatpush1.bf16.msra.mxu0 %v12109_v5  ;;  %5207 = vmatpush1.bf16.msra.mxu1 %v12112_v6 }
 0x8bb   :  { %5167 = vmatprep.subr.bf16.mxu0 %v12117_v7  ;;  %5208 = vmatprep.subr.bf16.mxu1 %v12120_v9 }
 0x8be   :  { %5168 = vmatpush1.bf16.msra.mxu0 %v12115_v51  ;;  %5209 = vmatpush1.bf16.msra.mxu1 %v12118_v60 }
 0x8bf   :  { %5169 = vmatprep.subr.bf16.mxu0 %v12123_v10  ;;  %5210 = vmatprep.subr.bf16.mxu1 %v12126_v12 }
 0x8c2   :  { %5170 = vmatpush1.bf16.msra.mxu0 %v12121_v15  ;;  %5211 = vmatpush1.bf16.msra.mxu1 %v12124_v16 }
 0x8c3   :  { %5171 = vmatprep.subr.bf16.mxu0 %v12129_v18  ;;  %5212 = vmatprep.subr.bf16.mxu1 %v12132_v52 }
 0x8c6   :  { %5172 = vmatpush1.bf16.msra.mxu0 %v12127_v11  ;;  %5213 = vmatpush1.bf16.msra.mxu1 %v12130_v21 }
 0x8c7   :  { %5173 = vmatprep.subr.bf16.mxu0 %v12135_v26  ;;  %5214 = vmatprep.subr.bf16.mxu1 %v12138_v53 }
 0x8ca   :  { %5174 = vmatpush1.bf16.msra.mxu0 %v12133_v28  ;;  %5215 = vmatpush1.bf16.msra.mxu1 %v12136_v23 }
 0x8cb   :  { %5175 = vmatprep.subr.bf16.mxu0 %v12141_v17  ;;  %5216 = vmatprep.subr.bf16.mxu1 %v12144_v13 }
 0x8ce   :  { %5176 = vmatpush1.bf16.msra.mxu0 %v12139_v25  ;;  %5217 = vmatpush1.bf16.msra.mxu1 %v12142_v2  ;;  %v13495_v25 = vsub.s32 3, %v13197_v19 }
 0x8cf   :  { %5177 = vmatprep.subr.bf16.mxu0 %v12147_v27  ;;  %5218 = vmatprep.subr.bf16.mxu1 %v12150_v29 }
 0x8d0   :  { %v4832_v2 = vrot.slane %v13435_v61, %v13495_v25  ;;  %v4836_v27 = vrot.slane %v13439_v0, %v13495_v25 }
 0x8d2   :  { %5178 = vmatpush1.bf16.msra.mxu0 %v12145_v30  ;;  %5219 = vmatpush1.bf16.msra.mxu1 %v12148_v32 }
 0x8d3   :  { %5179 = vmatprep.subr.bf16.mxu0 %v12153_v35  ;;  %5220 = vmatprep.subr.bf16.mxu1 %v12156_v37 }
 0x8d6   :  { %5180 = vmatpush1.bf16.msra.mxu0 %v12151_v24  ;;  %5221 = vmatpush1.bf16.msra.mxu1 %v12154_v38 }
 0x8d7   :  { %5181 = vmatprep.subr.bf16.mxu0 %v12159_v39  ;;  %5222 = vmatprep.subr.bf16.mxu1 %v12162_v34 }
 0x8da   :  { %5182 = vmatpush1.bf16.msra.mxu0 %v12157_v40  ;;  %5223 = vmatpush1.bf16.msra.mxu1 %v12160_v41 }
 0x8db   :  { %5183 = vmatprep.subr.bf16.mxu0 %v12165_v44  ;;  %5224 = vmatprep.subr.bf16.mxu1 %v12168_v46 }
 0x8de   :  { %5184 = vmatpush1.bf16.msra.mxu0 %v12163_v47  ;;  %5225 = vmatpush1.bf16.msra.mxu1 %v12166_v48 }
 0x8df   :  { %5185 = vmatprep.subr.bf16.mxu0 %v12171_v49  ;;  %5226 = vmatprep.subr.bf16.mxu1 %v12174_v50 }
 0x8e2   :  { %5186 = vmatpush1.bf16.msra.mxu0 %v12169_v54  ;;  %5227 = vmatpush1.bf16.msra.mxu1 %v12172_v55 }
 0x8e3   :  { %5187 = vmatprep.subr.bf16.mxu0 %v12177_v36  ;;  %5228 = vmatprep.subr.bf16.mxu1 %v12180_v31 }
 0x8e6   :  { %5188 = vmatpush1.bf16.msra.mxu0 %v12175_v56  ;;  %5229 = vmatpush1.bf16.msra.mxu1 %v12178_v57  ;;  %v12183_v57 = vld [vmem:[#allocation7 + $0x304] ss:$8 sps:$4 sm:$0xff]  }
 0x8e7   :  { %5565 = vmatprep.subr.bf16.mxu0 %v12183_v57  ;;  %5625 = vmatprep.subr.bf16.mxu1 %v12186_v43  ;;  %v12235_v57 = vld [vmem:[#allocation7 + $0x410] ss:$8 sps:$4 sm:$0xff]  }
 0x8e8   :  { %v12238_v43 = vld [vmem:[#allocation7 + $0x430] ss:$8 sps:$4 sm:$0xff]  }
 0x97c   :  { %v4709_v5 = vpop.f32.mrb[64].mxu0  ;;  %v4750_v6 = vpop.f32.mrb[100].mxu1 }
 0x97d   :  { %v4710_v7 = vadd.f32 %v4709_v5, %v4342_v42  ;;  %v4751_v9 = vadd.f32 %v4750_v6, %v4350_v3  ;;  %v4711_v51 = vpop.f32.mrb[65].mxu0  ;;  %v4752_v60 = vpop.f32.mrb[101].mxu1  ;;  %v12184_v42 = vld [vmem:[#allocation7 + $0x320] ss:$8 sps:$4 sm:$0xff]   ;;  %v12187_v3 = vld [vmem:[#allocation7 + $0x310] ss:$8 sps:$4 sm:$0xff]  }
 0x97e   :  { %v4712_v10 = vadd.f32 %v4711_v51, %v4346_v4  ;;  %v4753_v12 = vadd.f32 %v4752_v60, %v4354_v8  ;;  %v4713_v15 = vpop.f32.mrb[66].mxu0  ;;  %v4754_v16 = vpop.f32.mrb[102].mxu1  ;;  %v12190_v4 = vld [vmem:[#allocation7 + $0x330] ss:$8 sps:$4 sm:$0xff]   ;;  %v12195_v8 = vld [vmem:[#allocation7 + $0x344] ss:$8 sps:$4 sm:$0xff]  }
 0x97f   :  { %v4757_v18 = vmax.f32 %v4710_v7, 0.0  ;;  %v4759_v52 = vmax.f32 %v4751_v9, 0.0  ;;  %v4714_v11 = vpop.f32.mrb[67].mxu0  ;;  %v4755_v21 = vpop.f32.mrb[103].mxu1  ;;  %v12198_v5 = vld [vmem:[#allocation7 + $0x364] ss:$8 sps:$4 sm:$0xff]  }
 0x980   :  { %v4758_v26 = vmax.f32 %v4712_v10, 0.0  ;;  %v4760_v53 = vmax.f32 %v4753_v12, 0.0  ;;  %v13504_v51 = vsub.s32 6, %v13197_v19  ;;  %v13507_v60 = vsub.s32 7, %v13197_v19 }
 0x981   :  { %v4761_v17 = vpack.c.bf16 %v4757_v18, %v4757_v18  ;;  %v4763_v13 = vpack.c.bf16 %v4759_v52, %v4759_v52 }
 0x982   :  { %v4762_v28 = vpack.c.bf16 %v4758_v26, %v4758_v26  ;;  %v4764_v23 = vpack.c.bf16 %v4760_v53, %v4760_v53  ;;  %v5260_v10 = vrot.slane %v13435_v61, %v13504_v51  ;;  %v5264_v12 = vrot.slane %v13439_v0, %v13504_v51 }
 0x983   :  { %v5270_v16 = vrot.slane %v13435_v61, %v13507_v60  ;;  %v5274_v18 = vrot.slane %v13439_v0, %v13507_v60  ;;  %v12193_v61 = vld [vmem:[#allocation7 + $0x340] ss:$8 sps:$4 sm:$0xff]   ;;  %v12201_v0 = vld [vmem:[#allocation7 + $0x354] ss:$8 sps:$4 sm:$0xff]  }
 0x984   :  { %5189 = vmatprep.mubr.bf16.mxu0 %v4762_v28  ;;  %5230 = vmatprep.mubr.bf16.mxu1 %v4764_v23 }
 0x985   :  { %5190 = vmatmul.mubr.bf16.vlgmr.msra.gmra.mrb[68].mxu0 %v4761_v17  ;;  %5231 = vmatmul.mubr.bf16.vlgmr.msra.gmra.mrb[104].mxu1 %v4763_v13  ;;  %v12196_v17 = vld [vmem:[#allocation7 + $0x360] ss:$8 sps:$4 sm:$0xff]   ;;  %v12204_v13 = vld [vmem:[#allocation7 + $0x374] ss:$8 sps:$4 sm:$0xff]  }
 0x986   :  { %5566 = vmatpush1.bf16.xpose.msra.mxu0 %v12181_v63  ;;  %5626 = vmatpush1.bf16.xpose.msra.mxu1 %v12184_v42  ;;  %v12243_v63 = vld [vmem:[#allocation7 + $0x444] ss:$8 sps:$4 sm:$0xff]  }
 0x987   :  { %v12246_v42 = vld [vmem:[#allocation7 + $0x464] ss:$8 sps:$4 sm:$0xff]  }
 0xa58   :  { %v5191_v29 = vpop.f32.mrb[68].mxu0  ;;  %v5232_v30 = vpop.f32.mrb[104].mxu1 }
 0xa59   :  { %v5192_v32 = vadd.f32 %v5191_v29, %v4832_v2  ;;  %v5193_v35 = vpop.f32.mrb[69].mxu0  ;;  %v5234_v37 = vpop.f32.mrb[105].mxu1  ;;  %v12199_v2 = vld [vmem:[#allocation7 + $0x350] ss:$8 sps:$4 sm:$0xff]   ;;  %v12207_v29 = vld [vmem:[#allocation7 + $0x384] ss:$8 sps:$4 sm:$0xff]  }
 0xa5a   :  { %v5194_v24 = vadd.f32 %v5193_v35, %v4836_v27  ;;  %v5195_v38 = vpop.f32.mrb[70].mxu0  ;;  %v5236_v39 = vpop.f32.mrb[106].mxu1  ;;  %v12202_v27 = vld [vmem:[#allocation7 + $0x370] ss:$8 sps:$4 sm:$0xff]   ;;  %v12208_v35 = vld [vmem:[#allocation7 + $0x3a0] ss:$8 sps:$4 sm:$0xff]  }
 0xa5b   :  { %v5233_v34 = vadd.f32 %v5232_v30, %v5192_v32  ;;  %v5196_v40 = vpop.f32.mrb[71].mxu0  ;;  %v5237_v41 = vpop.f32.mrb[107].mxu1  ;;  %v12210_v30 = vld [vmem:[#allocation7 + $0x3a4] ss:$8 sps:$4 sm:$0xff]   ;;  %v12205_v32 = vld [vmem:[#allocation7 + $0x380] ss:$8 sps:$4 sm:$0xff]  }
 0xa5c   :  { %v5235_v44 = vadd.f32 %v5234_v37, %v5194_v24  ;;  %v12213_v37 = vld [vmem:[#allocation7 + $0x394] ss:$8 sps:$4 sm:$0xff]   ;;  %v12211_v38 = vld [vmem:[#allocation7 + $0x390] ss:$8 sps:$4 sm:$0xff]   ;;  %v12222_v40 = vld [vmem:[#allocation7 + $0x3e4] ss:$8 sps:$4 sm:$0xff]  }
 0xa5d   :  { %v5239_v46 = vadd.f32 %v5233_v34, %v13479_v45  ;;  %v12189_v45 = vld [vmem:[#allocation7 + $0x314] ss:$8 sps:$4 sm:$0xff]   ;;  %v12214_v39 = vld [vmem:[#allocation7 + $0x3b0] ss:$8 sps:$4 sm:$0xff]   ;;  %v12219_v34 = vld [vmem:[#allocation7 + $0x3c4] ss:$8 sps:$4 sm:$0xff]  }
 0xa5e   :  { %v5240_v47 = vadd.f32 %v5235_v44, %v13477_v1  ;;  %v12192_v1 = vld [vmem:[#allocation7 + $0x334] ss:$8 sps:$4 sm:$0xff]   ;;  %5567 = vmatprep.subr.bf16.mxu0 %v12189_v45  ;;  %v12217_v41 = vld [vmem:[#allocation7 + $0x3c0] ss:$8 sps:$4 sm:$0xff]  }
 0xa5f   :  { %5627 = vmatprep.subr.bf16.mxu1 %v12192_v1  ;;  %5568 = vmatpush1.bf16.xpose.msra.mxu0 %v12187_v3  ;;  %v12216_v24 = vld [vmem:[#allocation7 + $0x3b4] ss:$8 sps:$4 sm:$0xff]   ;;  %v12220_v44 = vld [vmem:[#allocation7 + $0x3e0] ss:$8 sps:$4 sm:$0xff]  }
 0xa60   :  { %v5241_v48 = vadd.f32 %v5240_v47, %v5239_v46  ;;  %5628 = vmatpush1.bf16.xpose.msra.mxu1 %v12190_v4  ;;  %5685 = vmatprep.subr.bf16.mxu0 %v12195_v8  ;;  %v12241_v45 = vld [vmem:[#allocation7 + $0x440] ss:$8 sps:$4 sm:$0xff]   ;;  %v12249_v3 = vld [vmem:[#allocation7 + $0x454] ss:$8 sps:$4 sm:$0xff]   ;;  %v12247_v8 = vld [vmem:[#allocation7 + $0x450] ss:$8 sps:$4 sm:$0xff]  }
 0xa61   :  { %5745 = vmatprep.subr.bf16.mxu1 %v12198_v5  ;;  %v12244_v1 = vld [vmem:[#allocation7 + $0x460] ss:$8 sps:$4 sm:$0xff]   ;;  %v12252_v4 = vld [vmem:[#allocation7 + $0x474] ss:$8 sps:$4 sm:$0xff]   ;;  %v12250_v5 = vld [vmem:[#allocation7 + $0x470] ss:$8 sps:$4 sm:$0xff]  }
 0xa62   :  { %5242 = vadd.xlane.f32.xlu0 %v5241_v48  ;;  %v12223_v48 = vld [vmem:[#allocation7 + $0x3d0] ss:$8 sps:$4 sm:$0xff]  }
 0xaef   :  { %v5243_v49 = vpop.xlane.xlu0 %5242 }
 0xaf0   :  { %v5244_v50 = vmul.f32 0.00390625, %v5243_v49  ;;  %v12226_v49 = vld [vmem:[#allocation7 + $0x3f0] ss:$8 sps:$4 sm:$0xff]  }
 0xaf2   :  { %v5245_v54 = vsub.f32 %v5239_v46, %v5244_v50  ;;  %v5246_v55 = vsub.f32 %v5240_v47, %v5244_v50  ;;  %v12225_v46 = vld [vmem:[#allocation7 + $0x3d4] ss:$8 sps:$4 sm:$0xff]   ;;  %v12231_v50 = vld [vmem:[#allocation7 + $0x404] ss:$8 sps:$4 sm:$0xff]  }
 0xaf3   :  { %v12228_v47 = vld [vmem:[#allocation7 + $0x3f4] ss:$8 sps:$4 sm:$0xff]  }
 0xaf4   :  { %v5247_v36 = vmul.f32 %v5245_v54, %v5245_v54  ;;  %v5248_v31 = vmul.f32 %v5246_v55, %v5246_v55 }
 0xaf6   :  { %v5249_v56 = vadd.f32 %v5248_v31, %v5247_v36  ;;  %v12232_v36 = vld [vmem:[#allocation7 + $0x420] ss:$8 sps:$4 sm:$0xff]   ;;  %v12237_v31 = vld [vmem:[#allocation7 + $0x414] ss:$8 sps:$4 sm:$0xff]  }
 0xaf8   :  { %5250 = vadd.xlane.f32.xlu1 %v5249_v56  ;;  %v12240_v56 = vld [vmem:[#allocation7 + $0x434] ss:$8 sps:$4 sm:$0xff]  }
 0xb85   :  { %v5251_v6 = vpop.xlane.xlu1 %5250 }
 0xb86   :  { %v5252_v7 = vmul.f32 0.00390625, %v5251_v6  ;;  %v12255_v6 = vld [vmem:[#allocation7 + $0x484] ss:$8 sps:$4 sm:$0xff]  }
 0xb88   :  { %v5253_v9 = vadd.f32 1e-05, %v5252_v7  ;;  %v12258_v7 = vld [vmem:[#allocation7 + $0x4a4] ss:$8 sps:$4 sm:$0xff]  }
 0xb8a   :  { %12687 = vrsqrt.f32 %v5253_v9  ;;  %v12253_v9 = vld [vmem:[#allocation7 + $0x480] ss:$8 sps:$4 sm:$0xff]  }
 0xb94   :  { %v12688_v15 = vpop.eup %12687 }
 0xb95   :  { %v5255_v52 = vmul.f32 %v12688_v15, %v5245_v54  ;;  %v5256_v11 = vmul.f32 %v12688_v15, %v5246_v55  ;;  %v12234_v54 = vld [vmem:[#allocation7 + $0x424] ss:$8 sps:$4 sm:$0xff]   ;;  %v12229_v55 = vld [vmem:[#allocation7 + $0x400] ss:$8 sps:$4 sm:$0xff]   ;;  %v12264_v15 = vld [vmem:[#allocation7 + $0x4b4] ss:$8 sps:$4 sm:$0xff]  }
 0xb97   :  { %v5265_v21 = vmul.f32 %v5260_v10, %v5255_v52  ;;  %v5266_v26 = vmul.f32 %v5264_v12, %v5256_v11  ;;  %v12256_v10 = vld [vmem:[#allocation7 + $0x4a0] ss:$8 sps:$4 sm:$0xff]   ;;  %v12261_v12 = vld [vmem:[#allocation7 + $0x494] ss:$8 sps:$4 sm:$0xff]   ;;  %v12267_v52 = vld [vmem:[#allocation7 + $0x4c4] ss:$8 sps:$4 sm:$0xff]  }
 0xb98   :  { %v12270_v11 = vld [vmem:[#allocation7 + $0x4e4] ss:$8 sps:$4 sm:$0xff]  }
 0xb99   :  { %v13517_v53 = vadd.f32 %v5270_v16, %v5265_v21  ;;  %v13519_v19 = vadd.f32 %v5274_v18, %v5266_v26  ;;  %v12259_v16 = vld [vmem:[#allocation7 + $0x490] ss:$8 sps:$4 sm:$0xff]   ;;  %v12265_v21 = vld [vmem:[#allocation7 + $0x4c0] ss:$8 sps:$4 sm:$0xff]  }
 0xb9a   :  { %v12262_v18 = vld [vmem:[#allocation7 + $0x4b0] ss:$8 sps:$4 sm:$0xff]   ;;  %v12268_v26 = vld [vmem:[#allocation7 + $0x4e0] ss:$8 sps:$4 sm:$0xff]  }
 0xb9b   :  { %v13523_v28 = vpack.c.bf16 %v13517_v53, %v13517_v53  ;;  %v13527_v23 = vpack.c.bf16 %v13519_v19, %v13519_v19 }
 0xb9d   :  { %5597 = vmatprep.mubr.bf16.mxu0 %v13527_v23  ;;  %5657 = vmatprep.mubr.bf16.mxu1 %v13527_v23 }
 0xb9e   :  { %5598 = vmatmul.mubr.bf16.vlgmr.msra.gmra.mrb[72].mxu0 %v13523_v28  ;;  %5658 = vmatmul.mubr.bf16.vlgmr.msra.gmra.mrb[108].mxu1 %v13523_v28 }
 0xb9f   :  { %5686 = vmatpush1.bf16.xpose.msra.mxu0 %v12193_v61  ;;  %5746 = vmatpush1.bf16.xpose.msra.mxu1 %v12196_v17  ;;  %v12273_v61 = vld [vmem:[#allocation7 + $0x4d4] ss:$8 sps:$4 sm:$0xff]  }
 0xba0   :  { %5717 = vmatprep.mubr.bf16.mxu0 %v13527_v23  ;;  %5777 = vmatprep.mubr.bf16.mxu1 %v13527_v23  ;;  %v12276_v17 = vld [vmem:[#allocation7 + $0x4f4] ss:$8 sps:$4 sm:$0xff]  }
 0xba1   :  { %5687 = vmatprep.subr.bf16.mxu0 %v12201_v0  ;;  %5747 = vmatprep.subr.bf16.mxu1 %v12204_v13  ;;  %v12271_v0 = vld [vmem:[#allocation7 + $0x4d0] ss:$8 sps:$4 sm:$0xff]  }
 0xba2   :  { %v12274_v13 = vld [vmem:[#allocation7 + $0x4f0] ss:$8 sps:$4 sm:$0xff]  }
 0xba7   :  { %5688 = vmatpush1.bf16.xpose.msra.mxu0 %v12199_v2  ;;  %5748 = vmatpush1.bf16.xpose.msra.mxu1 %v12202_v27  ;;  %v12279_v2 = vld [vmem:[#allocation7 + $0x504] ss:$8 sps:$4 sm:$0xff]  }
 0xba8   :  { %5805 = vmatprep.subr.bf16.mxu0 %v12207_v29  ;;  %5865 = vmatprep.subr.bf16.mxu1 %v12210_v30  ;;  %v12282_v27 = vld [vmem:[#allocation7 + $0x524] ss:$8 sps:$4 sm:$0xff]   ;;  %v12277_v29 = vld [vmem:[#allocation7 + $0x500] ss:$8 sps:$4 sm:$0xff]  }
 0xba9   :  { %v12280_v30 = vld [vmem:[#allocation7 + $0x520] ss:$8 sps:$4 sm:$0xff]  }
 0xbae   :  { %5718 = vmatmul.mubr.bf16.vlgmr.msra.gmra.mrb[76].mxu0 %v13523_v28  ;;  %5778 = vmatmul.mubr.bf16.vlgmr.msra.gmra.mrb[112].mxu1 %v13523_v28 }
 0xbaf   :  { %5806 = vmatpush1.bf16.xpose.msra.mxu0 %v12205_v32  ;;  %5837 = vmatprep.mubr.bf16.mxu0 %v13527_v23  ;;  %v12285_v32 = vld [vmem:[#allocation7 + $0x514] ss:$8 sps:$4 sm:$0xff]  }
 0xbb0   :  { %5866 = vmatpush1.bf16.xpose.msra.mxu1 %v12208_v35  ;;  %5897 = vmatprep.mubr.bf16.mxu1 %v13527_v23  ;;  %v12288_v35 = vld [vmem:[#allocation7 + $0x534] ss:$8 sps:$4 sm:$0xff]  }
 0xbb1   :  { %5807 = vmatprep.subr.bf16.mxu0 %v12213_v37  ;;  %5867 = vmatprep.subr.bf16.mxu1 %v12216_v24  ;;  %v12283_v37 = vld [vmem:[#allocation7 + $0x510] ss:$8 sps:$4 sm:$0xff]  }
 0xbb2   :  { %v12286_v24 = vld [vmem:[#allocation7 + $0x530] ss:$8 sps:$4 sm:$0xff]  }
 0xbb7   :  { %5808 = vmatpush1.bf16.xpose.msra.mxu0 %v12211_v38  ;;  %v12291_v38 = vld [vmem:[#allocation7 + $0x544] ss:$8 sps:$4 sm:$0xff]  }
 0xbb8   :  { %5868 = vmatpush1.bf16.xpose.msra.mxu1 %v12214_v39  ;;  %5925 = vmatprep.subr.bf16.mxu0 %v12219_v34  ;;  %v12294_v39 = vld [vmem:[#allocation7 + $0x564] ss:$8 sps:$4 sm:$0xff]   ;;  %v12289_v34 = vld [vmem:[#allocation7 + $0x540] ss:$8 sps:$4 sm:$0xff]  }
 0xbb9   :  { %5985 = vmatprep.subr.bf16.mxu1 %v12222_v40  ;;  %v12292_v40 = vld [vmem:[#allocation7 + $0x560] ss:$8 sps:$4 sm:$0xff]  }
 0xbbe   :  { %5838 = vmatmul.mubr.bf16.vlgmr.msra.gmra.mrb[80].mxu0 %v13523_v28 }
 0xbbf   :  { %5898 = vmatmul.mubr.bf16.vlgmr.msra.gmra.mrb[116].mxu1 %v13523_v28  ;;  %5926 = vmatpush1.bf16.xpose.msra.mxu0 %v12217_v41  ;;  %v12297_v41 = vld [vmem:[#allocation7 + $0x554] ss:$8 sps:$4 sm:$0xff]  }
 0xbc0   :  { %5957 = vmatprep.mubr.bf16.mxu0 %v13527_v23  ;;  %5986 = vmatpush1.bf16.xpose.msra.mxu1 %v12220_v44  ;;  %v12300_v44 = vld [vmem:[#allocation7 + $0x574] ss:$8 sps:$4 sm:$0xff]  }
 0xbc1   :  { %6017 = vmatprep.mubr.bf16.mxu1 %v13527_v23  ;;  %5927 = vmatprep.subr.bf16.mxu0 %v12225_v46  ;;  %v12295_v46 = vld [vmem:[#allocation7 + $0x550] ss:$8 sps:$4 sm:$0xff]  }
 0xbc2   :  { %5987 = vmatprep.subr.bf16.mxu1 %v12228_v47  ;;  %v12298_v47 = vld [vmem:[#allocation7 + $0x570] ss:$8 sps:$4 sm:$0xff]  }
 0xbc7   :  { %5928 = vmatpush1.bf16.xpose.msra.mxu0 %v12223_v48  ;;  %v12303_v48 = vld [vmem:[#allocation7 + $0x584] ss:$8 sps:$4 sm:$0xff]  }
 0xbc8   :  { %5988 = vmatpush1.bf16.xpose.msra.mxu1 %v12226_v49  ;;  %6045 = vmatprep.subr.bf16.mxu0 %v12231_v50  ;;  %v12306_v49 = vld [vmem:[#allocation7 + $0x5a4] ss:$8 sps:$4 sm:$0xff]   ;;  %v12301_v50 = vld [vmem:[#allocation7 + $0x580] ss:$8 sps:$4 sm:$0xff]  }
 0xbc9   :  { %6105 = vmatprep.subr.bf16.mxu1 %v12234_v54  ;;  %v12304_v54 = vld [vmem:[#allocation7 + $0x5a0] ss:$8 sps:$4 sm:$0xff]  }
 0xbce   :  { %5958 = vmatmul.mubr.bf16.vlgmr.msra.gmra.mrb[84].mxu0 %v13523_v28 }
 0xbcf   :  { %6018 = vmatmul.mubr.bf16.vlgmr.msra.gmra.mrb[120].mxu1 %v13523_v28  ;;  %6046 = vmatpush1.bf16.xpose.msra.mxu0 %v12229_v55  ;;  %v12309_v55 = vld [vmem:[#allocation7 + $0x594] ss:$8 sps:$4 sm:$0xff]  }
 0xbd0   :  { %6077 = vmatprep.mubr.bf16.mxu0 %v13527_v23  ;;  %6106 = vmatpush1.bf16.xpose.msra.mxu1 %v12232_v36  ;;  %v12312_v36 = vld [vmem:[#allocation7 + $0x5b4] ss:$8 sps:$4 sm:$0xff]  }
 0xbd1   :  { %6137 = vmatprep.mubr.bf16.mxu1 %v13527_v23  ;;  %6047 = vmatprep.subr.bf16.mxu0 %v12237_v31  ;;  %v12307_v31 = vld [vmem:[#allocation7 + $0x590] ss:$8 sps:$4 sm:$0xff]  }
 0xbd2   :  { %6107 = vmatprep.subr.bf16.mxu1 %v12240_v56  ;;  %v12310_v56 = vld [vmem:[#allocation7 + $0x5b0] ss:$8 sps:$4 sm:$0xff]  }
 0xbd7   :  { %6048 = vmatpush1.bf16.xpose.msra.mxu0 %v12235_v57  ;;  %v12315_v57 = vld [vmem:[#allocation7 + $0x5c4] ss:$8 sps:$4 sm:$0xff]  }
 0xbd8   :  { %6108 = vmatpush1.bf16.xpose.msra.mxu1 %v12238_v43  ;;  %6165 = vmatprep.subr.bf16.mxu0 %v12243_v63  ;;  %v12318_v43 = vld [vmem:[#allocation7 + $0x5e4] ss:$8 sps:$4 sm:$0xff]   ;;  %v12313_v63 = vld [vmem:[#allocation7 + $0x5c0] ss:$8 sps:$4 sm:$0xff]  }
 0xbd9   :  { %6225 = vmatprep.subr.bf16.mxu1 %v12246_v42  ;;  %v12316_v42 = vld [vmem:[#allocation7 + $0x5e0] ss:$8 sps:$4 sm:$0xff]  }
 0xbde   :  { %6078 = vmatmul.mubr.bf16.vlgmr.msra.gmra.mrb[88].mxu0 %v13523_v28 }
 0xbdf   :  { %6138 = vmatmul.mubr.bf16.vlgmr.msra.gmra.mrb[124].mxu1 %v13523_v28  ;;  %6166 = vmatpush1.bf16.xpose.msra.mxu0 %v12241_v45  ;;  %v12321_v45 = vld [vmem:[#allocation7 + $0x5d4] ss:$8 sps:$4 sm:$0xff]  }
 0xbe0   :  { %6197 = vmatprep.mubr.bf16.mxu0 %v13527_v23  ;;  %6226 = vmatpush1.bf16.xpose.msra.mxu1 %v12244_v1  ;;  %v12324_v1 = vld [vmem:[#allocation7 + $0x5f4] ss:$8 sps:$4 sm:$0xff]  }
 0xbe1   :  { %6257 = vmatprep.mubr.bf16.mxu1 %v13527_v23  ;;  %6167 = vmatprep.subr.bf16.mxu0 %v12249_v3  ;;  %v12319_v3 = vld [vmem:[#allocation7 + $0x5d0] ss:$8 sps:$4 sm:$0xff]  }
 0xbe2   :  { %6227 = vmatprep.subr.bf16.mxu1 %v12252_v4  ;;  %v12322_v4 = vld [vmem:[#allocation7 + $0x5f0] ss:$8 sps:$4 sm:$0xff]  }
 0xbe7   :  { %6168 = vmatpush1.bf16.xpose.msra.mxu0 %v12247_v8 }
 0xbe8   :  { %6228 = vmatpush1.bf16.xpose.msra.mxu1 %v12250_v5  ;;  %6285 = vmatprep.subr.bf16.mxu0 %v12255_v6 }
 0xbe9   :  { %6345 = vmatprep.subr.bf16.mxu1 %v12258_v7 }
 0xbee   :  { %6198 = vmatmul.mubr.bf16.vlgmr.msra.gmra.mrb[92].mxu0 %v13523_v28 }
 0xbef   :  { %6258 = vmatmul.mubr.bf16.vlgmr.msra.gmra.mrb[128].mxu1 %v13523_v28  ;;  %6286 = vmatpush1.bf16.xpose.msra.mxu0 %v12253_v9 }
 0xbf0   :  { %6317 = vmatprep.mubr.bf16.mxu0 %v13527_v23  ;;  %6346 = vmatpush1.bf16.xpose.msra.mxu1 %v12256_v10 }
 0xbf1   :  { %6377 = vmatprep.mubr.bf16.mxu1 %v13527_v23  ;;  %6287 = vmatprep.subr.bf16.mxu0 %v12261_v12 }
 0xbf2   :  { %6347 = vmatprep.subr.bf16.mxu1 %v12264_v15 }
 0xbf7   :  { %6288 = vmatpush1.bf16.xpose.msra.mxu0 %v12259_v16 }
 0xbf8   :  { %6348 = vmatpush1.bf16.xpose.msra.mxu1 %v12262_v18  ;;  %6405 = vmatprep.subr.bf16.mxu0 %v12267_v52 }
 0xbf9   :  { %6465 = vmatprep.subr.bf16.mxu1 %v12270_v11 }
 0xbfe   :  { %6318 = vmatmul.mubr.bf16.vlgmr.msra.gmra.mrb[96].mxu0 %v13523_v28 }
 0xbff   :  { %6378 = vmatmul.mubr.bf16.vlgmr.msra.gmra.mrb[132].mxu1 %v13523_v28  ;;  %6406 = vmatpush1.bf16.xpose.msra.mxu0 %v12265_v21 }
 0xc00   :  { %6437 = vmatprep.mubr.bf16.mxu0 %v13527_v23  ;;  %6466 = vmatpush1.bf16.xpose.msra.mxu1 %v12268_v26 }
 0xc01   :  { %6497 = vmatprep.mubr.bf16.mxu1 %v13527_v23  ;;  %6407 = vmatprep.subr.bf16.mxu0 %v12273_v61 }
 0xc02   :  { %6467 = vmatprep.subr.bf16.mxu1 %v12276_v17 }
 0xc07   :  { %6408 = vmatpush1.bf16.xpose.msra.mxu0 %v12271_v0 }
 0xc08   :  { %6468 = vmatpush1.bf16.xpose.msra.mxu1 %v12274_v13  ;;  %6525 = vmatprep.subr.bf16.mxu0 %v12279_v2 }
 0xc09   :  { %6585 = vmatprep.subr.bf16.mxu1 %v12282_v27 }
 0xc0e   :  { %6438 = vmatmul.mubr.bf16.vlgmr.msra.gmra.mrb[100].mxu0 %v13523_v28 }
 0xc0f   :  { %6498 = vmatmul.mubr.bf16.vlgmr.msra.gmra.mrb[136].mxu1 %v13523_v28  ;;  %6526 = vmatpush1.bf16.xpose.msra.mxu0 %v12277_v29 }
 0xc10   :  { %6557 = vmatprep.mubr.bf16.mxu0 %v13527_v23  ;;  %6586 = vmatpush1.bf16.xpose.msra.mxu1 %v12280_v30 }
 0xc11   :  { %6617 = vmatprep.mubr.bf16.mxu1 %v13527_v23  ;;  %6527 = vmatprep.subr.bf16.mxu0 %v12285_v32 }
 0xc12   :  { %6587 = vmatprep.subr.bf16.mxu1 %v12288_v35 }
 0xc17   :  { %6528 = vmatpush1.bf16.xpose.msra.mxu0 %v12283_v37 }
 0xc18   :  { %6588 = vmatpush1.bf16.xpose.msra.mxu1 %v12286_v24  ;;  %6645 = vmatprep.subr.bf16.mxu0 %v12291_v38 }
 0xc19   :  { %6705 = vmatprep.subr.bf16.mxu1 %v12294_v39 }
 0xc1e   :  { %6558 = vmatmul.mubr.bf16.vlgmr.msra.gmra.mrb[104].mxu0 %v13523_v28 }
 0xc1f   :  { %6618 = vmatmul.mubr.bf16.vlgmr.msra.gmra.mrb[140].mxu1 %v13523_v28  ;;  %6646 = vmatpush1.bf16.xpose.msra.mxu0 %v12289_v34 }
 0xc20   :  { %6677 = vmatprep.mubr.bf16.mxu0 %v13527_v23  ;;  %6706 = vmatpush1.bf16.xpose.msra.mxu1 %v12292_v40 }
 0xc21   :  { %6737 = vmatprep.mubr.bf16.mxu1 %v13527_v23  ;;  %6647 = vmatprep.subr.bf16.mxu0 %v12297_v41  ;;  %v10996_v41 = vld [vmem:[#allocation8 + $0x20] ss:$0 sm:$0xff] }
 0xc22   :  { %6707 = vmatprep.subr.bf16.mxu1 %v12300_v44  ;;  %v10997_v44 = vld [vmem:[#allocation8 + $0x21] ss:$0 sm:$0xff] }
 0xc27   :  { %6648 = vmatpush1.bf16.xpose.msra.mxu0 %v12295_v46 }
 0xc28   :  { %6708 = vmatpush1.bf16.xpose.msra.mxu1 %v12298_v47  ;;  %6765 = vmatprep.subr.bf16.mxu0 %v12303_v48  ;;  %v10988_v47 = vld [vmem:[#allocation8 + $0x18] ss:$0 sm:$0xff] }
 0xc29   :  { %6825 = vmatprep.subr.bf16.mxu1 %v12306_v49 }
 0xc2e   :  { %6678 = vmatmul.mubr.bf16.vlgmr.msra.gmra.mrb[108].mxu0 %v13523_v28 }
 0xc2f   :  { %6738 = vmatmul.mubr.bf16.vlgmr.msra.gmra.mrb[144].mxu1 %v13523_v28  ;;  %6766 = vmatpush1.bf16.xpose.msra.mxu0 %v12301_v50 }
 0xc30   :  { %6797 = vmatprep.mubr.bf16.mxu0 %v13527_v23  ;;  %6826 = vmatpush1.bf16.xpose.msra.mxu1 %v12304_v54  ;;  %v10989_v54 = vld [vmem:[#allocation8 + $0x19] ss:$0 sm:$0xff] }
 0xc31   :  { %6857 = vmatprep.mubr.bf16.mxu1 %v13527_v23  ;;  %6767 = vmatprep.subr.bf16.mxu0 %v12309_v55 }
 0xc32   :  { %6827 = vmatprep.subr.bf16.mxu1 %v12312_v36 }
 0xc37   :  { %6768 = vmatpush1.bf16.xpose.msra.mxu0 %v12307_v31 }
 0xc38   :  { %6828 = vmatpush1.bf16.xpose.msra.mxu1 %v12310_v56  ;;  %6885 = vmatprep.subr.bf16.mxu0 %v12315_v57 }
 0xc39   :  { %6945 = vmatprep.subr.bf16.mxu1 %v12318_v43 }
 0xc3e   :  { %6798 = vmatmul.mubr.bf16.vlgmr.msra.gmra.mrb[112].mxu0 %v13523_v28 }
 0xc3f   :  { %6858 = vmatmul.mubr.bf16.vlgmr.msra.gmra.mrb[148].mxu1 %v13523_v28  ;;  %6886 = vmatpush1.bf16.xpose.msra.mxu0 %v12313_v63 }
 0xc40   :  { %6917 = vmatprep.mubr.bf16.mxu0 %v13527_v23  ;;  %6946 = vmatpush1.bf16.xpose.msra.mxu1 %v12316_v42 }
 0xc41   :  { %6977 = vmatprep.mubr.bf16.mxu1 %v13527_v23  ;;  %6887 = vmatprep.subr.bf16.mxu0 %v12321_v45  ;;  %v10998_v45 = vld [vmem:[#allocation8 + $0x22] ss:$0 sm:$0xff] }
 0xc42   :  { %6947 = vmatprep.subr.bf16.mxu1 %v12324_v1  ;;  %v10999_v1 = vld [vmem:[#allocation8 + $0x23] ss:$0 sm:$0xff] }
 0xc47   :  { %6888 = vmatpush1.bf16.xpose.msra.mxu0 %v12319_v3 }
 0xc48   :  { %6948 = vmatpush1.bf16.xpose.msra.mxu1 %v12322_v4  ;;  %11570 = vmatprep.subr.mxu0 %v13006_v62  ;;  %v10990_v4 = vld [vmem:[#allocation8 + $0x1a] ss:$0 sm:$0xff] }
 0xc49   :  { %11575 = vmatprep.subr.mxu1 %v13006_v62 }
 0xc4e   :  { %6918 = vmatmul.mubr.bf16.vlgmr.msra.gmra.mrb[116].mxu0 %v13523_v28 }
 0xc4f   :  { %6978 = vmatmul.mubr.bf16.vlgmr.msra.gmra.mrb[152].mxu1 %v13523_v28  ;;  %11572 = vmatprep.mubr.msk.f32.mxu0 %vm13007_vm0, %v13006_v62 }
 0xc50   :  { %11577 = vmatprep.mubr.msk.f32.mxu1 %vm13007_vm0, %v13006_v62 }
 0xc71   :  { %v5599_v23 = vpop.f32.mrb[72].mxu0  ;;  %v5659_v8 = vpop.f32.mrb[108].mxu1 }
 0xc72   :  { %v5601_v5 = vpop.f32.mrb[73].mxu0  ;;  %v5661_v6 = vpop.f32.mrb[109].mxu1  ;;  %v5600_v43 = vadd.f32 %v10988_v47, %v5599_v23  ;;  %v5660_v42 = vadd.f32 %v10989_v54, %v5659_v8  ;;  %v10991_v8 = vld [vmem:[#allocation8 + $0x1b] ss:$0 sm:$0xff] }
 0xc73   :  { %v5602_v7 = vpop.f32.mrb[74].mxu0  ;;  %v5662_v9 = vpop.f32.mrb[110].mxu1 }
 0xc74   :  { %v5603_v10 = vpop.f32.mrb[75].mxu0  ;;  %v5663_v12 = vpop.f32.mrb[111].mxu1 }
 0xc81   :  { %v5719_v15 = vpop.f32.mrb[76].mxu0  ;;  %v13583_v16 = vpop.f32.mrb[112].mxu1 }
 0xc82   :  { %v5721_v18 = vpop.f32.mrb[77].mxu0  ;;  %v5781_v52 = vpop.f32.mrb[113].mxu1 }
 0xc83   :  { %v5722_v28 = vpop.f32.mrb[78].mxu0  ;;  %v5782_v11 = vpop.f32.mrb[114].mxu1  ;;  %v5720_v52 = vadd.f32 %v10990_v4, %v5719_v15  ;;  %v11000_v15 = vld [vmem:[#allocation8 + $0x24] ss:$0 sm:$0xff] }
 0xc84   :  { %v5723_v21 = vpop.f32.mrb[79].mxu0  ;;  %v5783_v26 = vpop.f32.mrb[115].mxu1  ;;  %v5780_v11 = vadd.f32 %v10991_v8, %v13583_v16  ;;  %v10993_v16 = vld [vmem:[#allocation8 + $0x1d] ss:$0 sm:$0xff] }
 0xc85   :  { %v11001_v21 = vld [vmem:[#allocation8 + $0x25] ss:$0 sm:$0xff] }
 0xc91   :  { %v13585_v61 = vpop.f32.mrb[80].mxu0 }
 0xc92   :  { %v13587_v17 = vpop.f32.mrb[116].mxu1  ;;  %v5841_v0 = vpop.f32.mrb[81].mxu0 }
 0xc93   :  { %v5901_v13 = vpop.f32.mrb[117].mxu1  ;;  %v5842_v2 = vpop.f32.mrb[82].mxu0  ;;  %v10992_v0 = vld [vmem:[#allocation8 + $0x1c] ss:$0 sm:$0xff] }
 0xc94   :  { %v5902_v27 = vpop.f32.mrb[118].mxu1  ;;  %v5843_v29 = vpop.f32.mrb[83].mxu0 }
 0xc95   :  { %v5903_v30 = vpop.f32.mrb[119].mxu1 }
 0xca1   :  { %v13589_v32 = vpop.f32.mrb[84].mxu0 }
 0xca2   :  { %v13591_v35 = vpop.f32.mrb[120].mxu1  ;;  %v5961_v37 = vpop.f32.mrb[85].mxu0 }
 0xca3   :  { %v6021_v24 = vpop.f32.mrb[121].mxu1  ;;  %v5962_v38 = vpop.f32.mrb[86].mxu0 }
 0xca4   :  { %v6022_v39 = vpop.f32.mrb[122].mxu1  ;;  %v5963_v34 = vpop.f32.mrb[87].mxu0 }
 0xca5   :  { %v6023_v40 = vpop.f32.mrb[123].mxu1  ;;  %v5840_v39 = vadd.f32 %v10992_v0, %v13585_v61  ;;  %v11002_v61 = vld [vmem:[#allocation8 + $0x26] ss:$0 sm:$0xff] }
 0xca6   :  { %v5900_v40 = vadd.f32 %v10993_v16, %v13587_v17  ;;  %v10995_v17 = vld [vmem:[#allocation8 + $0x1f] ss:$0 sm:$0xff] }
 0xcb1   :  { %v6079_v46 = vpop.f32.mrb[88].mxu0 }
 0xcb2   :  { %v6080_v48 = vadd.f32 %v10996_v41, %v6079_v46  ;;  %v6139_v49 = vpop.f32.mrb[124].mxu1  ;;  %v6081_v50 = vpop.f32.mrb[89].mxu0  ;;  %v11003_v41 = vld [vmem:[#allocation8 + $0x27] ss:$0 sm:$0xff]  ;;  %v10994_v46 = vld [vmem:[#allocation8 + $0x1e] ss:$0 sm:$0xff] }
 0xcb3   :  { %v6140_v55 = vadd.f32 %v10997_v44, %v6139_v49  ;;  %v6141_v36 = vpop.f32.mrb[125].mxu1  ;;  %v6082_v31 = vpop.f32.mrb[90].mxu0 }
 0xcb4   :  { %v6142_v56 = vpop.f32.mrb[126].mxu1  ;;  %v6083_v57 = vpop.f32.mrb[91].mxu0  ;;  %11571 = vmatpush3.xpose.msk.msra.mxu0 %vm2368_vm1, %v6080_v48 }
 0xcb5   :  { %v6143_v63 = vpop.f32.mrb[127].mxu1  ;;  %11576 = vmatpush3.xpose.msk.msra.mxu1 %vm2368_vm1, %v6140_v55  ;;  %11580 = vmatprep.subr.mxu0 %v13006_v62  ;;  %v5960_v56 = vadd.f32 %v10994_v46, %v13589_v32  ;;  %v11004_v32 = vld [vmem:[#allocation8 + $0x28] ss:$0 sm:$0xff] }
 0xcb6   :  { %11585 = vmatprep.subr.mxu1 %v13006_v62  ;;  %v11005_v63 = vld [vmem:[#allocation8 + $0x29] ss:$0 sm:$0xff] }
 0xcb7   :  { %11573 = vmatmul.mubr.msk.f32.vlgmr.msra.gmra.mrb[120].mxu0 %vm2368_vm1, %v5600_v43  ;;  %v6020_v43 = vadd.f32 %v10995_v17, %v13591_v35 }
 0xcb8   :  { %11578 = vmatmul.mubr.msk.f32.vlgmr.msra.gmra.mrb[156].mxu1 %vm2368_vm1, %v5660_v42  ;;  %11582 = vmatprep.mubr.msk.f32.mxu0 %vm13007_vm0, %v13006_v62 }
 0xcb9   :  { %11587 = vmatprep.mubr.msk.f32.mxu1 %vm13007_vm0, %v13006_v62 }
 0xcc1   :  { %v6199_v3 = vpop.f32.mrb[92].mxu0 }
 0xcc2   :  { %v6200_v23 = vadd.f32 %v10998_v45, %v6199_v3  ;;  %v6259_v5 = vpop.f32.mrb[128].mxu1  ;;  %v6201_v6 = vpop.f32.mrb[93].mxu0 }
 0xcc3   :  { %v6260_v7 = vadd.f32 %v10999_v1, %v6259_v5  ;;  %v6261_v9 = vpop.f32.mrb[129].mxu1  ;;  %v6202_v10 = vpop.f32.mrb[94].mxu0 }
 0xcc4   :  { %v6262_v12 = vpop.f32.mrb[130].mxu1  ;;  %v6203_v18 = vpop.f32.mrb[95].mxu0  ;;  %11581 = vmatpush3.xpose.msk.msra.mxu0 %vm2368_vm1, %v6200_v23 }
 0xcc5   :  { %v6263_v28 = vpop.f32.mrb[131].mxu1  ;;  %11586 = vmatpush3.xpose.msk.msra.mxu1 %vm2368_vm1, %v6260_v7  ;;  %11590 = vmatprep.subr.mxu0 %v13006_v62 }
 0xcc6   :  { %11595 = vmatprep.subr.mxu1 %v13006_v62 }
 0xcc7   :  { %11583 = vmatmul.mubr.msk.f32.vlgmr.msra.gmra.mrb[122].mxu0 %vm2368_vm1, %v5720_v52 }
 0xcc8   :  { %11588 = vmatmul.mubr.msk.f32.vlgmr.msra.gmra.mrb[158].mxu1 %vm2368_vm1, %v5780_v11  ;;  %11592 = vmatprep.mubr.msk.f32.mxu0 %vm13007_vm0, %v13006_v62 }
 0xcc9   :  { %11597 = vmatprep.mubr.msk.f32.mxu1 %vm13007_vm0, %v13006_v62 }
 0xcd1   :  { %v6319_v26 = vpop.f32.mrb[96].mxu0 }
 0xcd2   :  { %v6320_v13 = vadd.f32 %v11000_v15, %v6319_v26  ;;  %v6379_v2 = vpop.f32.mrb[132].mxu1  ;;  %v6321_v27 = vpop.f32.mrb[97].mxu0 }
 0xcd3   :  { %v6380_v29 = vadd.f32 %v11001_v21, %v6379_v2  ;;  %v6381_v30 = vpop.f32.mrb[133].mxu1  ;;  %v6322_v37 = vpop.f32.mrb[98].mxu0 }
 0xcd4   :  { %v6382_v24 = vpop.f32.mrb[134].mxu1  ;;  %v6323_v38 = vpop.f32.mrb[99].mxu0  ;;  %11591 = vmatpush3.xpose.msk.msra.mxu0 %vm2368_vm1, %v6320_v13 }
 0xcd5   :  { %v6383_v34 = vpop.f32.mrb[135].mxu1  ;;  %11596 = vmatpush3.xpose.msk.msra.mxu1 %vm2368_vm1, %v6380_v29  ;;  %11600 = vmatprep.subr.mxu0 %v13006_v62 }
 0xcd6   :  { %11605 = vmatprep.subr.mxu1 %v13006_v62 }
 0xcd7   :  { %11593 = vmatmul.mubr.msk.f32.vlgmr.msra.gmra.mrb[124].mxu0 %vm2368_vm1, %v5840_v39 }
 0xcd8   :  { %11598 = vmatmul.mubr.msk.f32.vlgmr.msra.gmra.mrb[160].mxu1 %vm2368_vm1, %v5900_v40  ;;  %11602 = vmatprep.mubr.msk.f32.mxu0 %vm13007_vm0, %v13006_v62 }
 0xcd9   :  { %11607 = vmatprep.mubr.msk.f32.mxu1 %vm13007_vm0, %v13006_v62 }
 0xce1   :  { %v6439_v44 = vpop.f32.mrb[100].mxu0 }
 0xce2   :  { %v6440_v47 = vadd.f32 %v11002_v61, %v6439_v44  ;;  %v6499_v48 = vpop.f32.mrb[136].mxu1  ;;  %v6441_v49 = vpop.f32.mrb[101].mxu0 }
 0xce3   :  { %v6500_v50 = vadd.f32 %v11003_v41, %v6499_v48  ;;  %v6501_v54 = vpop.f32.mrb[137].mxu1  ;;  %v6442_v55 = vpop.f32.mrb[102].mxu0 }
 0xce4   :  { %v6502_v36 = vpop.f32.mrb[138].mxu1  ;;  %v6443_v31 = vpop.f32.mrb[103].mxu0  ;;  %11601 = vmatpush3.xpose.msk.msra.mxu0 %vm2368_vm1, %v6440_v47 }
 0xce5   :  { %v6503_v57 = vpop.f32.mrb[139].mxu1  ;;  %11606 = vmatpush3.xpose.msk.msra.mxu1 %vm2368_vm1, %v6500_v50  ;;  %11610 = vmatprep.subr.mxu0 %v13006_v62 }
 0xce6   :  { %11615 = vmatprep.subr.mxu1 %v13006_v62 }
 0xce7   :  { %11603 = vmatmul.mubr.msk.f32.vlgmr.msra.gmra.mrb[126].mxu0 %vm2368_vm1, %v5960_v56 }
 0xce8   :  { %11608 = vmatmul.mubr.msk.f32.vlgmr.msra.gmra.mrb[162].mxu1 %vm2368_vm1, %v6020_v43  ;;  %11612 = vmatprep.mubr.msk.f32.mxu0 %vm13007_vm0, %v13006_v62 }
 0xce9   :  { %11617 = vmatprep.mubr.msk.f32.mxu1 %vm13007_vm0, %v13006_v62 }
 0xcf1   :  { %v6559_v42 = vpop.f32.mrb[104].mxu0 }
 0xcf2   :  { %v6560_v45 = vadd.f32 %v11004_v32, %v6559_v42  ;;  %v6619_v1 = vpop.f32.mrb[140].mxu1  ;;  %v6561_v3 = vpop.f32.mrb[105].mxu0 }
 0xcf3   :  { %v6620_v4 = vadd.f32 %v11005_v63, %v6619_v1  ;;  %v6621_v35 = vpop.f32.mrb[141].mxu1  ;;  %v6562_v23 = vpop.f32.mrb[106].mxu0 }
 0xcf4   :  { %v6622_v5 = vpop.f32.mrb[142].mxu1  ;;  %v6563_v6 = vpop.f32.mrb[107].mxu0  ;;  %11611 = vmatpush3.msra.mxu0 %v6560_v45 }
 0xcf5   :  { %v6623_v8 = vpop.f32.mrb[143].mxu1  ;;  %11616 = vmatpush3.msra.mxu1 %v6620_v4  ;;  %11620 = vmatprep.subr.mxu0 %v13006_v62 }
 0xcf6   :  { %11625 = vmatprep.subr.mxu1 %v13006_v62 }
 0xd01   :  { %v13640_v7 = vpop.f32.mrb[108].mxu0 }
 0xd02   :  { %v13642_v9 = vpop.f32.mrb[144].mxu1  ;;  %v6681_v10 = vpop.f32.mrb[109].mxu0 }
 0xd03   :  { %v6741_v12 = vpop.f32.mrb[145].mxu1  ;;  %v6682_v18 = vpop.f32.mrb[110].mxu0 }
 0xd04   :  { %v6742_v52 = vpop.f32.mrb[146].mxu1  ;;  %v6683_v28 = vpop.f32.mrb[111].mxu0 }
 0xd05   :  { %v6743_v11 = vpop.f32.mrb[147].mxu1 }
 0xd11   :  { %v13644_v15 = vpop.f32.mrb[112].mxu0 }
 0xd12   :  { %v13646_v21 = vpop.f32.mrb[148].mxu1  ;;  %v6801_v26 = vpop.f32.mrb[113].mxu0 }
 0xd13   :  { %v6861_v0 = vpop.f32.mrb[149].mxu1  ;;  %v6802_v13 = vpop.f32.mrb[114].mxu0 }
 0xd14   :  { %v6862_v2 = vpop.f32.mrb[150].mxu1  ;;  %v6803_v27 = vpop.f32.mrb[115].mxu0 }
 0xd15   :  { %v6863_v16 = vpop.f32.mrb[151].mxu1 }
 0xd21   :  { %v13648_v29 = vpop.f32.mrb[116].mxu0 }
 0xd22   :  { %v13650_v30 = vpop.f32.mrb[152].mxu1  ;;  %v6921_v37 = vpop.f32.mrb[117].mxu0 }
 0xd23   :  { %v6981_v24 = vpop.f32.mrb[153].mxu1  ;;  %v6922_v38 = vpop.f32.mrb[118].mxu0 }
 0xd24   :  { %v6982_v39 = vpop.f32.mrb[154].mxu1  ;;  %v6923_v34 = vpop.f32.mrb[119].mxu0 }
 0xd25   :  { %v6983_v40 = vpop.f32.mrb[155].mxu1 }
 0xd8a   :  { %v7057_v61 = vpop.f32.mrb[120].mxu0 }
 0xd8b   :  { %v7593_v41 = vmul.f32 0.17677669, %v7057_v61  ;;  %v7133_v44 = vpop.f32.mrb[156].mxu1  ;;  %v11574_v46 = vpop.f32.mrb[121].mxu0 }
 0xd8c   :  { %v7594_v47 = vmul.f32 0.17677669, %v7133_v44  ;;  %v11579_v48 = vpop.f32.mrb[157].mxu1 }
 0xd8d   :  { %v7601_v49 = vsel %vm2985_vm2, %v7593_v41, -inf }
 0xd8e   :  { %v7604_v17 = vsel %vm2985_vm2, %v7594_v47, -inf  ;;  %7602 = vmax.xlane.f32.xlu0 %v7601_v49 }
 0xd8f   :  { %7605 = vmax.xlane.f32.xlu1 %v7604_v17 }
 0xd9a   :  { %v7209_v50 = vpop.f32.mrb[122].mxu0 }
 0xd9b   :  { %v7595_v54 = vmul.f32 0.17677669, %v7209_v50  ;;  %v7285_v55 = vpop.f32.mrb[158].mxu1  ;;  %v11584_v36 = vpop.f32.mrb[123].mxu0 }
 0xd9c   :  { %v7596_v31 = vmul.f32 0.17677669, %v7285_v55  ;;  %v11589_v56 = vpop.f32.mrb[159].mxu1 }
 0xd9d   :  { %v7607_v57 = vsel %vm2985_vm2, %v7595_v54, -inf }
 0xd9e   :  { %v7610_v43 = vsel %vm2985_vm2, %v7596_v31, -inf  ;;  %7608 = vmax.xlane.f32.xlu0 %v7607_v57 }
 0xd9f   :  { %7611 = vmax.xlane.f32.xlu1 %v7610_v43 }
 0xdaa   :  { %v7361_v32 = vpop.f32.mrb[124].mxu0 }
 0xdab   :  { %v7597_v63 = vmul.f32 0.17677669, %v7361_v32  ;;  %v7437_v42 = vpop.f32.mrb[160].mxu1  ;;  %v11594_v45 = vpop.f32.mrb[125].mxu0 }
 0xdac   :  { %v7598_v1 = vmul.f32 0.17677669, %v7437_v42  ;;  %v11599_v3 = vpop.f32.mrb[161].mxu1 }
 0xdad   :  { %v7613_v4 = vsel %vm2985_vm2, %v7597_v63, -inf }
 0xdae   :  { %v7616_v35 = vsel %vm2985_vm2, %v7598_v1, -inf  ;;  %7614 = vmax.xlane.f32.xlu0 %v7613_v4 }
 0xdaf   :  { %7617 = vmax.xlane.f32.xlu1 %v7616_v35 }
 0xdba   :  { %v7513_v23 = vpop.f32.mrb[126].mxu0 }
 0xdbb   :  { %v7599_v5 = vmul.f32 0.17677669, %v7513_v23  ;;  %v7589_v6 = vpop.f32.mrb[162].mxu1  ;;  %v11604_v8 = vpop.f32.mrb[127].mxu0 }
 0xdbc   :  { %v7600_v10 = vmul.f32 0.17677669, %v7589_v6  ;;  %v11609_v12 = vpop.f32.mrb[163].mxu1 }
 0xdbd   :  { %v7619_v18 = vsel %vm2985_vm2, %v7599_v5, -inf }
 0xdbe   :  { %v7622_v52 = vsel %vm2985_vm2, %v7600_v10, -inf  ;;  %7620 = vmax.xlane.f32.xlu0 %v7619_v18  ;;  %v11007_v18 = vld [vmem:[#allocation8 + $0x2b] ss:$0 sm:$0xff] }
 0xdbf   :  { %7623 = vmax.xlane.f32.xlu1 %v7622_v52 }
 0xe1b   :  { %v7603_v28 = vpop.xlane.xlu0 %7602 }
 0xe1c   :  { %v7606_v11 = vpop.xlane.xlu1 %7605  ;;  %v7625_v26 = vsub.f32 %v7593_v41, %v7603_v28 }
 0xe1d   :  { %v7626_v0 = vsub.f32 %v7594_v47, %v7606_v11 }
 0xe1e   :  { %v7633_v13 = vmul.f32 1.442695, %v7625_v26 }
 0xe1f   :  { %v7635_v2 = vmul.f32 1.442695, %v7626_v0  ;;  %v6740_v0 = vadd.f32 %v11007_v18, %v13642_v9  ;;  %v12343_v18 = vld [vmem:[#allocation10 + $0x150] ss:$8 sps:$4 sm:$0xff]  }
 0xe20   :  { %12689 = vpow2.f32 %v7633_v13 }
 0xe21   :  { %12691 = vpow2.f32 %v7635_v2 }
 0xe2a   :  { %v12690_v27 = vpop.eup %12689 }
 0xe2b   :  { %v12692_v16 = vpop.eup %12691  ;;  %v7609_v37 = vpop.xlane.xlu0 %7608  ;;  %v7649_v24 = vsel %vm2985_vm2, %v12690_v27, 0.0 }
 0xe2c   :  { %v7612_v38 = vpop.xlane.xlu1 %7611  ;;  %v7627_v39 = vsub.f32 %v7595_v54, %v7609_v37  ;;  %v7652_v34 = vsel %vm2985_vm2, %v12692_v16, 0.0  ;;  %7650 = vadd.xlane.f32.xlu0 %v7649_v24 }
 0xe2d   :  { %v7628_v40 = vsub.f32 %v7596_v31, %v7612_v38  ;;  %7653 = vadd.xlane.f32.xlu1 %v7652_v34 }
 0xe2e   :  { %v7637_v61 = vmul.f32 1.442695, %v7627_v39 }
 0xe2f   :  { %v7639_v44 = vmul.f32 1.442695, %v7628_v40 }
 0xe30   :  { %12693 = vpow2.f32 %v7637_v61  ;;  %v11011_v61 = vld [vmem:[#allocation8 + $0x2f] ss:$0 sm:$0xff] }
 0xe31   :  { %12695 = vpow2.f32 %v7639_v44 }
 0xe3a   :  { %v12694_v41 = vpop.eup %12693 }
 0xe3b   :  { %v13662_v46 = vpop.eup %12695  ;;  %v7615_v47 = vpop.xlane.xlu0 %7614  ;;  %v7655_v48 = vsel %vm2985_vm2, %v12694_v41, 0.0 }
 0xe3c   :  { %v7618_v49 = vpop.xlane.xlu1 %7617  ;;  %v7629_v17 = vsub.f32 %v7597_v63, %v7615_v47  ;;  %v7658_v50 = vsel %vm2985_vm2, %v13662_v46, 0.0  ;;  %7656 = vadd.xlane.f32.xlu0 %v7655_v48  ;;  %v12327_v48 = vld [vmem:[#allocation10 + $0x104] ss:$8 sps:$4 sm:$0xff]  }
 0xe3d   :  { %v7630_v54 = vsub.f32 %v7598_v1, %v7618_v49  ;;  %7659 = vadd.xlane.f32.xlu1 %v7658_v50  ;;  %v6980_v49 = vadd.f32 %v11011_v61, %v13650_v30  ;;  %v12325_v30 = vld [vmem:[#allocation10 + $0x100] ss:$8 sps:$4 sm:$0xff]  }
 0xe3e   :  { %v7641_v55 = vmul.f32 1.442695, %v7629_v17  ;;  %v12330_v17 = vld [vmem:[#allocation10 + $0x124] ss:$8 sps:$4 sm:$0xff]  }
 0xe3f   :  { %v7643_v36 = vmul.f32 1.442695, %v7630_v54 }
 0xe40   :  { %12697 = vpow2.f32 %v7641_v55 }
 0xe41   :  { %12699 = vpow2.f32 %v7643_v36 }
 0xe4a   :  { %v13667_v31 = vpop.eup %12697 }
 0xe4b   :  { %v13669_v56 = vpop.eup %12699  ;;  %v7621_v57 = vpop.xlane.xlu0 %7620  ;;  %v7661_v43 = vsel %vm2985_vm2, %v13667_v31, 0.0 }
 0xe4c   :  { %v7624_v32 = vpop.xlane.xlu1 %7623  ;;  %v7631_v63 = vsub.f32 %v7599_v5, %v7621_v57  ;;  %v7664_v42 = vsel %vm2985_vm2, %v13669_v56, 0.0  ;;  %7662 = vadd.xlane.f32.xlu0 %v7661_v43  ;;  %v12336_v43 = vld [vmem:[#allocation10 + $0x134] ss:$8 sps:$4 sm:$0xff]  }
 0xe4d   :  { %v7632_v45 = vsub.f32 %v7600_v10, %v7624_v32  ;;  %7665 = vadd.xlane.f32.xlu1 %v7664_v42  ;;  %v11006_v10 = vld [vmem:[#allocation8 + $0x2a] ss:$0 sm:$0xff]  ;;  %v12339_v42 = vld [vmem:[#allocation10 + $0x144] ss:$8 sps:$4 sm:$0xff]  }
 0xe4e   :  { %v7645_v1 = vmul.f32 1.442695, %v7631_v63  ;;  %v6680_v11 = vadd.f32 %v11006_v10, %v13640_v7  ;;  %v11008_v7 = vld [vmem:[#allocation8 + $0x2c] ss:$0 sm:$0xff]  ;;  %v12331_v32 = vld [vmem:[#allocation10 + $0x110] ss:$8 sps:$4 sm:$0xff]  }
 0xe4f   :  { %v7647_v3 = vmul.f32 1.442695, %v7632_v45  ;;  %v6800_v24 = vadd.f32 %v11008_v7, %v13644_v15  ;;  %v11010_v15 = vld [vmem:[#allocation8 + $0x2e] ss:$0 sm:$0xff]  ;;  %v12334_v63 = vld [vmem:[#allocation10 + $0x130] ss:$8 sps:$4 sm:$0xff]  }
 0xe50   :  { %12701 = vpow2.f32 %v7645_v1  ;;  %v12342_v45 = vld [vmem:[#allocation10 + $0x164] ss:$8 sps:$4 sm:$0xff]  }
 0xe51   :  { %12703 = vpow2.f32 %v7647_v3  ;;  %v12337_v3 = vld [vmem:[#allocation10 + $0x140] ss:$8 sps:$4 sm:$0xff]  }
 0xe5a   :  { %v13675_v4 = vpop.eup %12701 }
 0xe5b   :  { %v13677_v35 = vpop.eup %12703  ;;  %v7667_v23 = vsel %vm2985_vm2, %v13675_v4, 0.0 }
 0xe5c   :  { %v7670_v5 = vsel %vm2985_vm2, %v13677_v35, 0.0  ;;  %7668 = vadd.xlane.f32.xlu0 %v7667_v23 }
 0xe5d   :  { %7671 = vadd.xlane.f32.xlu1 %v7670_v5  ;;  %v12340_v5 = vld [vmem:[#allocation10 + $0x160] ss:$8 sps:$4 sm:$0xff]  }
 0xeb9   :  { %v7651_v6 = vpop.xlane.xlu0 %7650 }
 0xeba   :  { %v7654_v8 = vpop.xlane.xlu1 %7653  ;;  %12705 = vrcp.f32 %v7651_v6  ;;  %v12345_v6 = vld [vmem:[#allocation10 + $0x154] ss:$8 sps:$4 sm:$0xff]  }
 0xebb   :  { %12707 = vrcp.f32 %v7654_v8 }
 0xec4   :  { %v12706_v12 = vpop.eup %12705 }
 0xec5   :  { %v12708_v52 = vpop.eup %12707  ;;  %v7681_v28 = vmul.f32 %v12706_v12, %v12690_v27  ;;  %v11009_v27 = vld [vmem:[#allocation8 + $0x2d] ss:$0 sm:$0xff] }
 0xec6   :  { %v7682_v26 = vmul.f32 %v12708_v52, %v12692_v16  ;;  %v6860_v39 = vadd.f32 %v11009_v27, %v13646_v21  ;;  %v12348_v12 = vld [vmem:[#allocation10 + $0x174] ss:$8 sps:$4 sm:$0xff]   ;;  %v12346_v52 = vld [vmem:[#allocation10 + $0x170] ss:$8 sps:$4 sm:$0xff]  }
 0xec7   :  { %11613 = vmatmul.mubr.msk.f32.vlgmr.msra.gmra.mrb[128].mxu0 %vm2985_vm2, %v7681_v28  ;;  %v12351_v28 = vld [vmem:[#allocation10 + $0x184] ss:$8 sps:$4 sm:$0xff]   ;;  %v12357_v27 = vld [vmem:[#allocation10 + $0x194] ss:$8 sps:$4 sm:$0xff]  }
 0xec8   :  { %11618 = vmatmul.mubr.msk.f32.vlgmr.msra.gmra.mrb[164].mxu1 %vm2985_vm2, %v7682_v26  ;;  %11621 = vmatpush3.msra.mxu0 %v6680_v11  ;;  %v12354_v11 = vld [vmem:[#allocation10 + $0x1a4] ss:$8 sps:$4 sm:$0xff]  }
 0xec9   :  { %11626 = vmatpush3.msra.mxu1 %v6740_v0  ;;  %v7657_v13 = vpop.xlane.xlu0 %7656  ;;  %11622 = vmatprep.mubr.msk.f32.mxu0 %vm13007_vm0, %v13006_v62  ;;  %v12349_v0 = vld [vmem:[#allocation10 + $0x180] ss:$8 sps:$4 sm:$0xff]  }
 0xeca   :  { %v7660_v2 = vpop.xlane.xlu1 %7659  ;;  %12709 = vrcp.f32 %v7657_v13  ;;  %11627 = vmatprep.mubr.msk.f32.mxu1 %vm13007_vm0, %v13006_v62  ;;  %11630 = vmatprep.subr.mxu0 %v13006_v62 }
 0xecb   :  { %12711 = vrcp.f32 %v7660_v2  ;;  %11635 = vmatprep.subr.mxu1 %v13006_v62 }
 0xed4   :  { %v12710_v9 = vpop.eup %12709 }
 0xed5   :  { %v12712_v16 = vpop.eup %12711  ;;  %v7683_v37 = vmul.f32 %v12710_v9, %v12694_v41  ;;  %v12352_v9 = vld [vmem:[#allocation10 + $0x1a0] ss:$8 sps:$4 sm:$0xff]  }
 0xed6   :  { %v7684_v38 = vmul.f32 %v12712_v16, %v13662_v46  ;;  %v6920_v46 = vadd.f32 %v11010_v15, %v13648_v29 }
 0xed7   :  { %11623 = vmatmul.mubr.msk.f32.vlgmr.msra.gmra.mrb[130].mxu0 %vm2985_vm2, %v7683_v37 }
 0xed8   :  { %11628 = vmatmul.mubr.msk.f32.vlgmr.msra.gmra.mrb[166].mxu1 %vm2985_vm2, %v7684_v38  ;;  %11631 = vmatpush3.msra.mxu0 %v6800_v24  ;;  %v12360_v24 = vld [vmem:[#allocation10 + $0x1b4] ss:$8 sps:$4 sm:$0xff]   ;;  %v12355_v38 = vld [vmem:[#allocation10 + $0x190] ss:$8 sps:$4 sm:$0xff]  }
 0xed9   :  { %11636 = vmatpush3.msra.mxu1 %v6860_v39  ;;  %v7663_v34 = vpop.xlane.xlu0 %7662  ;;  %11632 = vmatprep.mubr.msk.f32.mxu0 %vm13007_vm0, %v13006_v62  ;;  %v12358_v39 = vld [vmem:[#allocation10 + $0x1b0] ss:$8 sps:$4 sm:$0xff]  }
 0xeda   :  { %v7666_v40 = vpop.xlane.xlu1 %7665  ;;  %12713 = vrcp.f32 %v7663_v34  ;;  %11637 = vmatprep.mubr.msk.f32.mxu1 %vm13007_vm0, %v13006_v62  ;;  %11640 = vmatprep.subr.mxu0 %v13006_v62  ;;  %v12363_v34 = vld [vmem:[#allocation10 + $0x1c4] ss:$8 sps:$4 sm:$0xff]  }
 0xedb   :  { %12715 = vrcp.f32 %v7666_v40  ;;  %11645 = vmatprep.subr.mxu1 %v13006_v62  ;;  %v12366_v40 = vld [vmem:[#allocation10 + $0x1e4] ss:$8 sps:$4 sm:$0xff]  }
 0xee4   :  { %v12714_v21 = vpop.eup %12713 }
 0xee5   :  { %v12716_v44 = vpop.eup %12715  ;;  %v7685_v41 = vmul.f32 %v12714_v21, %v13667_v31  ;;  %v12328_v31 = vld [vmem:[#allocation10 + $0x120] ss:$8 sps:$4 sm:$0xff]  }
 0xee6   :  { %v7686_v47 = vmul.f32 %v12716_v44, %v13669_v56  ;;  %v12333_v56 = vld [vmem:[#allocation10 + $0x114] ss:$8 sps:$4 sm:$0xff]   ;;  %v12361_v21 = vld [vmem:[#allocation10 + $0x1c0] ss:$8 sps:$4 sm:$0xff]  }
 0xee7   :  { %11633 = vmatmul.mubr.msk.f32.vlgmr.msra.gmra.mrb[132].mxu0 %vm2985_vm2, %v7685_v41 }
 0xee8   :  { %11638 = vmatmul.mubr.msk.f32.vlgmr.msra.gmra.mrb[168].mxu1 %vm2985_vm2, %v7686_v47  ;;  %11641 = vmatpush3.msra.mxu0 %v6920_v46  ;;  %v12364_v46 = vld [vmem:[#allocation10 + $0x1e0] ss:$8 sps:$4 sm:$0xff]   ;;  %v12369_v47 = vld [vmem:[#allocation10 + $0x1d4] ss:$8 sps:$4 sm:$0xff]  }
 0xee9   :  { %11646 = vmatpush3.msra.mxu1 %v6980_v49  ;;  %v7669_v50 = vpop.xlane.xlu0 %7668  ;;  %11642 = vmatprep.mubr.msk.f32.mxu0 %vm13007_vm0, %v13006_v62 }
 0xeea   :  { %v7672_v54 = vpop.xlane.xlu1 %7671  ;;  %12717 = vrcp.f32 %v7669_v50  ;;  %11647 = vmatprep.mubr.msk.f32.mxu1 %vm13007_vm0, %v13006_v62  ;;  %8337 = vmatprep.subr.bf16.mxu0 %v12327_v48  ;;  %v12367_v50 = vld [vmem:[#allocation10 + $0x1d0] ss:$8 sps:$4 sm:$0xff]  }
 0xeeb   :  { %12719 = vrcp.f32 %v7672_v54  ;;  %8401 = vmatprep.subr.bf16.mxu1 %v12330_v17  ;;  %v12372_v17 = vld [vmem:[#allocation10 + $0x1f4] ss:$8 sps:$4 sm:$0xff]   ;;  %v12370_v54 = vld [vmem:[#allocation10 + $0x1f0] ss:$8 sps:$4 sm:$0xff]  }
 0xef4   :  { %v12718_v29 = vpop.eup %12717 }
 0xef5   :  { %v12720_v55 = vpop.eup %12719  ;;  %v7687_v36 = vmul.f32 %v12718_v29, %v13675_v4 }
 0xef6   :  { %v7688_v57 = vmul.f32 %v12720_v55, %v13677_v35 }
 0xef7   :  { %11643 = vmatmul.mubr.msk.f32.vlgmr.msra.gmra.mrb[134].mxu0 %vm2985_vm2, %v7687_v36 }
 0xef8   :  { %11648 = vmatmul.mubr.msk.f32.vlgmr.msra.gmra.mrb[170].mxu1 %vm2985_vm2, %v7688_v57  ;;  %8338 = vmatpush1.bf16.msra.mxu0 %v12325_v30 }
 0xef9   :  { %8402 = vmatpush1.bf16.msra.mxu1 %v12328_v31  ;;  %8339 = vmatprep.subr.bf16.mxu0 %v12333_v56 }
 0xefa   :  { %8403 = vmatprep.subr.bf16.mxu1 %v12336_v43  ;;  %8369 = vmatprep.mubr.bf16.mxu0 %v13008_v22 }
 0xefb   :  { %8433 = vmatprep.mubr.bf16.mxu1 %v13008_v22 }
 0xefc   :  { %8340 = vmatpush1.bf16.msra.mxu0 %v12331_v32 }
 0xefd   :  { %8404 = vmatpush1.bf16.msra.mxu1 %v12334_v63  ;;  %8465 = vmatprep.subr.bf16.mxu0 %v12339_v42 }
 0xefe   :  { %8529 = vmatprep.subr.bf16.mxu1 %v12342_v45 }
 0xf9a   :  { %v7758_v1 = vpop.f32.mrb[128].mxu0 }
 0xf9b   :  { %v8273_v4 = vpack.c.bf16 %v7758_v1, %v7758_v1  ;;  %v7831_v35 = vpop.f32.mrb[164].mxu1  ;;  %v11614_v23 = vpop.f32.mrb[129].mxu0 }
 0xf9c   :  { %v8274_v8 = vpack.c.bf16 %v7831_v35, %v7831_v35  ;;  %v11619_v10 = vpop.f32.mrb[165].mxu1 }
 0xf9d   :  { %11136 = vmatmul.mubr.msk.bf16.vlgmr.msra.gmra.mrb[136].mxu0 %vm2368_vm1, %v8273_v4 }
 0xf9e   :  { %11141 = vmatmul.mubr.msk.bf16.vlgmr.msra.gmra.mrb[172].mxu1 %vm2368_vm1, %v8274_v8  ;;  %8466 = vmatpush1.bf16.msra.mxu0 %v12337_v3 }
 0xf9f   :  { %8530 = vmatpush1.bf16.msra.mxu1 %v12340_v5  ;;  %8467 = vmatprep.subr.bf16.mxu0 %v12345_v6 }
 0xfa0   :  { %8531 = vmatprep.subr.bf16.mxu1 %v12348_v12  ;;  %8497 = vmatprep.mubr.bf16.mxu0 %v13008_v22 }
 0xfa1   :  { %8561 = vmatprep.mubr.bf16.mxu1 %v13008_v22 }
 0xfa2   :  { %8468 = vmatpush1.bf16.msra.mxu0 %v12343_v18 }
 0xfa3   :  { %8532 = vmatpush1.bf16.msra.mxu1 %v12346_v52  ;;  %8593 = vmatprep.subr.bf16.mxu0 %v12351_v28 }
 0xfa4   :  { %8657 = vmatprep.subr.bf16.mxu1 %v12354_v11 }
 0xfaa   :  { %v7904_v26 = vpop.f32.mrb[130].mxu0 }
 0xfab   :  { %v8275_v13 = vpack.c.bf16 %v7904_v26, %v7904_v26  ;;  %v7977_v2 = vpop.f32.mrb[166].mxu1  ;;  %v11624_v7 = vpop.f32.mrb[131].mxu0 }
 0xfac   :  { %v8276_v16 = vpack.c.bf16 %v7977_v2, %v7977_v2  ;;  %v11629_v37 = vpop.f32.mrb[167].mxu1 }
 0xfad   :  { %11146 = vmatmul.mubr.msk.bf16.vlgmr.msra.gmra.mrb[140].mxu0 %vm2368_vm1, %v8275_v13 }
 0xfae   :  { %11151 = vmatmul.mubr.msk.bf16.vlgmr.msra.gmra.mrb[176].mxu1 %vm2368_vm1, %v8276_v16  ;;  %8594 = vmatpush1.bf16.msra.mxu0 %v12349_v0 }
 0xfaf   :  { %8658 = vmatpush1.bf16.msra.mxu1 %v12352_v9  ;;  %8595 = vmatprep.subr.bf16.mxu0 %v12357_v27 }
 0xfb0   :  { %8659 = vmatprep.subr.bf16.mxu1 %v12360_v24  ;;  %8625 = vmatprep.mubr.bf16.mxu0 %v13008_v22 }
 0xfb1   :  { %8689 = vmatprep.mubr.bf16.mxu1 %v13008_v22 }
 0xfb2   :  { %8596 = vmatpush1.bf16.msra.mxu0 %v12355_v38 }
 0xfb3   :  { %8660 = vmatpush1.bf16.msra.mxu1 %v12358_v39  ;;  %8721 = vmatprep.subr.bf16.mxu0 %v12363_v34 }
 0xfb4   :  { %8785 = vmatprep.subr.bf16.mxu1 %v12366_v40  ;;  %v13734_v40 = vld [vmem:[#allocation17 + $0x20] sm:$0xff] }
 0xfba   :  { %v8050_v15 = vpop.f32.mrb[132].mxu0 }
 0xfbb   :  { %v8277_v61 = vpack.c.bf16 %v8050_v15, %v8050_v15  ;;  %v8123_v44 = vpop.f32.mrb[168].mxu1  ;;  %v11634_v41 = vpop.f32.mrb[133].mxu0  ;;  %v13736_v15 = vld [vmem:[#allocation17 + $0x28] sm:$0xff] }
 0xfbc   :  { %v8278_v48 = vpack.c.bf16 %v8123_v44, %v8123_v44  ;;  %v11639_v49 = vpop.f32.mrb[169].mxu1  ;;  %v8843_v41 = vrot.slane %v13734_v40, %v13200_v20 }
 0xfbd   :  { %11156 = vmatmul.mubr.msk.bf16.vlgmr.msra.gmra.mrb[144].mxu0 %vm2368_vm1, %v8277_v61  ;;  %v8847_v49 = vrot.slane %v13736_v15, %v13200_v20  ;;  %v12375_v20 = vld [vmem:[#allocation11 + $0x204] ss:$16 sps:$4 sm:$0xff]  }
 0xfbe   :  { %11161 = vmatmul.mubr.msk.bf16.vlgmr.msra.gmra.mrb[180].mxu1 %vm2368_vm1, %v8278_v48  ;;  %8722 = vmatpush1.bf16.msra.mxu0 %v12361_v21 }
 0xfbf   :  { %8786 = vmatpush1.bf16.msra.mxu1 %v12364_v46  ;;  %8723 = vmatprep.subr.bf16.mxu0 %v12369_v47 }
 0xfc0   :  { %8787 = vmatprep.subr.bf16.mxu1 %v12372_v17  ;;  %8753 = vmatprep.mubr.bf16.mxu0 %v13008_v22 }
 0xfc1   :  { %8817 = vmatprep.mubr.bf16.mxu1 %v13008_v22 }
 0xfc2   :  { %8724 = vmatpush1.bf16.msra.mxu0 %v12367_v50 }
 0xfc3   :  { %8788 = vmatpush1.bf16.msra.mxu1 %v12370_v54  ;;  %9291 = vmatprep.subr.bf16.mxu0 %v12375_v20  ;;  %v12447_v20 = vld [vmem:[#allocation11 + $0x384] ss:$16 sps:$4 sm:$0xff]  }
 0xfca   :  { %v8196_v29 = vpop.f32.mrb[134].mxu0 }
 0xfcb   :  { %v8279_v30 = vpack.c.bf16 %v8196_v29, %v8196_v29  ;;  %v8269_v55 = vpop.f32.mrb[170].mxu1  ;;  %v11644_v36 = vpop.f32.mrb[135].mxu0 }
 0xfcc   :  { %v8280_v31 = vpack.c.bf16 %v8269_v55, %v8269_v55  ;;  %v11649_v56 = vpop.f32.mrb[171].mxu1 }
 0xfcd   :  { %11166 = vmatmul.mubr.msk.bf16.vlgmr.msra.gmra.mrb[148].mxu0 %vm2368_vm1, %v8279_v30 }
 0xfce   :  { %11171 = vmatmul.mubr.msk.bf16.vlgmr.msra.gmra.mrb[184].mxu1 %vm2368_vm1, %v8280_v31 }
0x1070   :  { %v8371_v57 = vpop.f32.mrb[136].mxu0 }
0x1071   :  { %v8435_v43 = vpop.f32.mrb[172].mxu1  ;;  %v8373_v32 = vpop.f32.mrb[137].mxu0 }
0x1072   :  { %v8826_v63 = vadd.f32 %v8435_v43, %v8371_v57  ;;  %v8437_v42 = vpop.f32.mrb[173].mxu1  ;;  %v8375_v45 = vpop.f32.mrb[138].mxu0 }
0x1073   :  { %v8833_v1 = vadd.f32 %v8437_v42, %v8373_v32  ;;  %v8439_v22 = vpop.f32.mrb[174].mxu1  ;;  %v8376_v3 = vpop.f32.mrb[139].mxu0  ;;  %v12373_v32 = vld [vmem:[#allocation11 + $0x200] ss:$16 sps:$4 sm:$0xff]   ;;  %v12378_v42 = vld [vmem:[#allocation11 + $0x20c] ss:$16 sps:$4 sm:$0xff]  }
0x1074   :  { %v8440_v4 = vpop.f32.mrb[175].mxu1  ;;  %v12381_v45 = vld [vmem:[#allocation11 + $0x224] ss:$16 sps:$4 sm:$0xff]   ;;  %9332 = vmatprep.subr.bf16.mxu1 %v12378_v42  ;;  %9292 = vmatpush1.bf16.msra.mxu0 %v12373_v32  ;;  %v12379_v22 = vld [vmem:[#allocation11 + $0x220] ss:$16 sps:$4 sm:$0xff]  }
0x1075   :  { %9293 = vmatprep.subr.bf16.mxu0 %v12381_v45  ;;  %v12387_v3 = vld [vmem:[#allocation11 + $0x244] ss:$16 sps:$4 sm:$0xff]   ;;  %v12385_v4 = vld [vmem:[#allocation11 + $0x240] ss:$16 sps:$4 sm:$0xff]   ;;  %v12442_v32 = vld [vmem:[#allocation11 + $0x368] ss:$16 sps:$4 sm:$0xff]  }
0x1076   :  { %v12445_v42 = vld [vmem:[#allocation11 + $0x380] ss:$16 sps:$4 sm:$0xff]   ;;  %v12448_v45 = vld [vmem:[#allocation11 + $0x388] ss:$16 sps:$4 sm:$0xff]  }
0x1078   :  { %9294 = vmatpush1.bf16.msra.mxu0 %v12379_v22  ;;  %v12456_v22 = vld [vmem:[#allocation11 + $0x3ac] ss:$16 sps:$4 sm:$0xff]  }
0x1079   :  { %9295 = vmatprep.subr.bf16.mxu0 %v12387_v3  ;;  %v12454_v3 = vld [vmem:[#allocation11 + $0x3a8] ss:$16 sps:$4 sm:$0xff]  }
0x107c   :  { %9296 = vmatpush1.bf16.msra.mxu0 %v12385_v4  ;;  %v12459_v4 = vld [vmem:[#allocation11 + $0x3c4] ss:$16 sps:$4 sm:$0xff]  }
0x1080   :  { %v8499_v35 = vpop.f32.mrb[140].mxu0 }
0x1081   :  { %v8827_v23 = vadd.f32 %v8826_v63, %v8499_v35  ;;  %v8563_v5 = vpop.f32.mrb[176].mxu1  ;;  %v8501_v6 = vpop.f32.mrb[141].mxu0  ;;  %v12376_v63 = vld [vmem:[#allocation11 + $0x208] ss:$16 sps:$4 sm:$0xff]  }
0x1082   :  { %v8834_v8 = vadd.f32 %v8833_v1, %v8501_v6  ;;  %v8565_v10 = vpop.f32.mrb[177].mxu1  ;;  %v8503_v12 = vpop.f32.mrb[142].mxu0  ;;  %v12384_v1 = vld [vmem:[#allocation11 + $0x22c] ss:$16 sps:$4 sm:$0xff]   ;;  %9333 = vmatpush1.bf16.msra.mxu1 %v12376_v63  ;;  %v12388_v35 = vld [vmem:[#allocation11 + $0x248] ss:$16 sps:$4 sm:$0xff]  }
0x1083   :  { %v8828_v18 = vadd.f32 %v8827_v23, %v8563_v5  ;;  %v8567_v52 = vpop.f32.mrb[178].mxu1  ;;  %v8504_v28 = vpop.f32.mrb[143].mxu0  ;;  %9334 = vmatprep.subr.bf16.mxu1 %v12384_v1  ;;  %v12393_v23 = vld [vmem:[#allocation11 + $0x264] ss:$16 sps:$4 sm:$0xff]   ;;  %v12396_v5 = vld [vmem:[#allocation11 + $0x26c] ss:$16 sps:$4 sm:$0xff]  }
0x1084   :  { %v8835_v11 = vadd.f32 %v8834_v8, %v8565_v10  ;;  %v8568_v26 = vpop.f32.mrb[179].mxu1  ;;  %v12391_v6 = vld [vmem:[#allocation11 + $0x260] ss:$16 sps:$4 sm:$0xff]   ;;  %9297 = vmatprep.subr.bf16.mxu0 %v12393_v23  ;;  %v12394_v8 = vld [vmem:[#allocation11 + $0x268] ss:$16 sps:$4 sm:$0xff]  }
0x1085   :  { %v12399_v10 = vld [vmem:[#allocation11 + $0x284] ss:$16 sps:$4 sm:$0xff]   ;;  %v12402_v12 = vld [vmem:[#allocation11 + $0x28c] ss:$16 sps:$4 sm:$0xff]   ;;  %9298 = vmatpush1.bf16.msra.mxu0 %v12391_v6  ;;  %v12400_v52 = vld [vmem:[#allocation11 + $0x288] ss:$16 sps:$4 sm:$0xff]  }
0x1086   :  { %9299 = vmatprep.subr.bf16.mxu0 %v12399_v10  ;;  %v12405_v28 = vld [vmem:[#allocation11 + $0x2a4] ss:$16 sps:$4 sm:$0xff]   ;;  %v12403_v26 = vld [vmem:[#allocation11 + $0x2a0] ss:$16 sps:$4 sm:$0xff]   ;;  %v12450_v63 = vld [vmem:[#allocation11 + $0x38c] ss:$16 sps:$4 sm:$0xff]  }
0x1087   :  { %v12453_v1 = vld [vmem:[#allocation11 + $0x3a4] ss:$16 sps:$4 sm:$0xff]   ;;  %v12462_v23 = vld [vmem:[#allocation11 + $0x3cc] ss:$16 sps:$4 sm:$0xff]   ;;  %v12466_v10 = vld [vmem:[#allocation11 + $0x3e8] ss:$16 sps:$4 sm:$0xff]  }
0x1088   :  { %v12468_v6 = vld [vmem:[#allocation11 + $0x3ec] ss:$16 sps:$4 sm:$0xff]  }
0x1090   :  { %v8627_v0 = vpop.f32.mrb[144].mxu0 }
0x1091   :  { %v8829_v13 = vadd.f32 %v8828_v18, %v8627_v0  ;;  %v8691_v2 = vpop.f32.mrb[180].mxu1  ;;  %v8629_v7 = vpop.f32.mrb[145].mxu0  ;;  %v12397_v18 = vld [vmem:[#allocation11 + $0x280] ss:$16 sps:$4 sm:$0xff]   ;;  %v12406_v0 = vld [vmem:[#allocation11 + $0x2a8] ss:$16 sps:$4 sm:$0xff]  }
0x1092   :  { %v8836_v9 = vadd.f32 %v8835_v11, %v8629_v7  ;;  %v8693_v27 = vpop.f32.mrb[181].mxu1  ;;  %v8631_v16 = vpop.f32.mrb[146].mxu0  ;;  %v12408_v11 = vld [vmem:[#allocation11 + $0x2ac] ss:$16 sps:$4 sm:$0xff]   ;;  %9300 = vmatpush1.bf16.msra.mxu0 %v12397_v18  ;;  %v12409_v7 = vld [vmem:[#allocation11 + $0x2c0] ss:$16 sps:$4 sm:$0xff]  }
0x1093   :  { %v8830_v37 = vadd.f32 %v8829_v13, %v8691_v2  ;;  %v8695_v24 = vpop.f32.mrb[182].mxu1  ;;  %v8632_v38 = vpop.f32.mrb[147].mxu0  ;;  %9301 = vmatprep.subr.bf16.mxu0 %v12405_v28  ;;  %v12411_v13 = vld [vmem:[#allocation11 + $0x2c4] ss:$16 sps:$4 sm:$0xff]   ;;  %v12414_v2 = vld [vmem:[#allocation11 + $0x2cc] ss:$16 sps:$4 sm:$0xff]  }
0x1094   :  { %v8837_v39 = vadd.f32 %v8836_v9, %v8693_v27  ;;  %v8696_v34 = vpop.f32.mrb[183].mxu1  ;;  %v12412_v9 = vld [vmem:[#allocation11 + $0x2c8] ss:$16 sps:$4 sm:$0xff]   ;;  %v12417_v27 = vld [vmem:[#allocation11 + $0x2e4] ss:$16 sps:$4 sm:$0xff]  }
0x1095   :  { %v12420_v16 = vld [vmem:[#allocation11 + $0x2ec] ss:$16 sps:$4 sm:$0xff]   ;;  %v12418_v24 = vld [vmem:[#allocation11 + $0x2e8] ss:$16 sps:$4 sm:$0xff]   ;;  %v12423_v38 = vld [vmem:[#allocation11 + $0x304] ss:$16 sps:$4 sm:$0xff]  }
0x1096   :  { %9302 = vmatpush1.bf16.msra.mxu0 %v12403_v26  ;;  %v12421_v34 = vld [vmem:[#allocation11 + $0x300] ss:$16 sps:$4 sm:$0xff]   ;;  %v12474_v18 = vld [vmem:[#allocation13 + $0x304] ss:$8 sps:$4 sm:$0xff]   ;;  %v8875_v26 = vrot.slane %v13736_v15, %v13495_v25 }
0x1097   :  { %9303 = vmatprep.subr.bf16.mxu0 %v12411_v13 }
0x109a   :  { %9304 = vmatpush1.bf16.msra.mxu0 %v12409_v7 }
0x109b   :  { %9305 = vmatprep.subr.bf16.mxu0 %v12417_v27  ;;  %v8881_v27 = vrot.slane %v13734_v40, %v13462_v33 }
0x10a0   :  { %v8755_v21 = vpop.f32.mrb[148].mxu0 }
0x10a1   :  { %v8831_v61 = vadd.f32 %v8830_v37, %v8755_v21  ;;  %v8819_v44 = vpop.f32.mrb[184].mxu1  ;;  %v8757_v46 = vpop.f32.mrb[149].mxu0  ;;  %v12415_v37 = vld [vmem:[#allocation11 + $0x2e0] ss:$16 sps:$4 sm:$0xff]   ;;  %v12424_v21 = vld [vmem:[#allocation11 + $0x308] ss:$16 sps:$4 sm:$0xff]  }
0x10a2   :  { %v8838_v47 = vadd.f32 %v8837_v39, %v8757_v46  ;;  %v8821_v48 = vpop.f32.mrb[185].mxu1  ;;  %v8759_v17 = vpop.f32.mrb[150].mxu0  ;;  %v12426_v39 = vld [vmem:[#allocation11 + $0x30c] ss:$16 sps:$4 sm:$0xff]   ;;  %9306 = vmatpush1.bf16.msra.mxu0 %v12415_v37  ;;  %v12430_v46 = vld [vmem:[#allocation11 + $0x328] ss:$16 sps:$4 sm:$0xff]  }
0x10a3   :  { %v8832_v50 = vadd.f32 %v8831_v61, %v8819_v44  ;;  %v8823_v54 = vpop.f32.mrb[186].mxu1  ;;  %v8760_v29 = vpop.f32.mrb[151].mxu0  ;;  %9307 = vmatprep.subr.bf16.mxu0 %v12423_v38  ;;  %v12429_v61 = vld [vmem:[#allocation11 + $0x324] ss:$16 sps:$4 sm:$0xff]   ;;  %v12432_v44 = vld [vmem:[#allocation11 + $0x32c] ss:$16 sps:$4 sm:$0xff]  }
0x10a4   :  { %v8839_v30 = vadd.f32 %v8838_v47, %v8821_v48  ;;  %v8824_v55 = vpop.f32.mrb[187].mxu1 }
0x10a5   :  { %v8848_v36 = vadd.f32 %v8843_v41, %v8832_v50  ;;  %v12427_v41 = vld [vmem:[#allocation11 + $0x320] ss:$16 sps:$4 sm:$0xff]   ;;  %v12438_v55 = vld [vmem:[#allocation11 + $0x34c] ss:$16 sps:$4 sm:$0xff]  }
0x10a6   :  { %v8849_v31 = vadd.f32 %v8847_v49, %v8839_v30  ;;  %9308 = vmatpush1.bf16.msra.mxu0 %v12421_v34  ;;  %v12435_v30 = vld [vmem:[#allocation11 + $0x344] ss:$16 sps:$4 sm:$0xff]   ;;  %v12469_v34 = vld [vmem:[#allocation13 + $0x200] ss:$8 sps:$4 sm:$0xff]  }
0x10a7   :  { %v13743_v56 = vadd.f32 %v8848_v36, %v13517_v53  ;;  %v12382_v53 = vld [vmem:[#allocation11 + $0x228] ss:$16 sps:$4 sm:$0xff]   ;;  %9309 = vmatprep.subr.bf16.mxu0 %v12429_v61  ;;  %v12433_v36 = vld [vmem:[#allocation11 + $0x340] ss:$16 sps:$4 sm:$0xff]   ;;  %v12477_v61 = vld [vmem:[#allocation13 + $0x214] ss:$8 sps:$4 sm:$0xff]  }
0x10a8   :  { %v13746_v57 = vadd.f32 %v8849_v31, %v13519_v19  ;;  %v12390_v19 = vld [vmem:[#allocation11 + $0x24c] ss:$16 sps:$4 sm:$0xff]   ;;  %9335 = vmatpush1.bf16.msra.mxu1 %v12382_v53  ;;  %v12436_v31 = vld [vmem:[#allocation11 + $0x348] ss:$16 sps:$4 sm:$0xff]   ;;  %v12451_v53 = vld [vmem:[#allocation11 + $0x3a0] ss:$16 sps:$4 sm:$0xff]  }
0x10a9   :  { %9336 = vmatprep.subr.bf16.mxu1 %v12390_v19  ;;  %v12457_v19 = vld [vmem:[#allocation11 + $0x3c0] ss:$16 sps:$4 sm:$0xff]  }
0x10aa   :  { %v8852_v43 = vadd.f32 %v13746_v57, %v13743_v56  ;;  %9310 = vmatpush1.bf16.msra.mxu0 %v12427_v41  ;;  %v12478_v41 = vld [vmem:[#allocation13 + $0x310] ss:$8 sps:$4 sm:$0xff]  }
0x10ab   :  { %9311 = vmatprep.subr.bf16.mxu0 %v12435_v30  ;;  %v12495_v30 = vld [vmem:[#allocation13 + $0x244] ss:$8 sps:$4 sm:$0xff]  }
0x10ac   :  { %8853 = vadd.xlane.f32.xlu0 %v8852_v43  ;;  %9337 = vmatpush1.bf16.msra.mxu1 %v12388_v35  ;;  %v12444_v43 = vld [vmem:[#allocation11 + $0x36c] ss:$16 sps:$4 sm:$0xff]   ;;  %v12460_v35 = vld [vmem:[#allocation11 + $0x3c8] ss:$16 sps:$4 sm:$0xff]  }
0x10ad   :  { %9338 = vmatprep.subr.bf16.mxu1 %v12396_v5  ;;  %v12465_v5 = vld [vmem:[#allocation11 + $0x3e4] ss:$16 sps:$4 sm:$0xff]  }
0x10ae   :  { %9312 = vmatpush1.bf16.msra.mxu0 %v12433_v36  ;;  %v12493_v36 = vld [vmem:[#allocation13 + $0x240] ss:$8 sps:$4 sm:$0xff]  }
0x10b0   :  { %9339 = vmatpush1.bf16.msra.mxu1 %v12394_v8  ;;  %v12463_v8 = vld [vmem:[#allocation11 + $0x3e0] ss:$16 sps:$4 sm:$0xff]  }
0x10b1   :  { %9340 = vmatprep.subr.bf16.mxu1 %v12402_v12  ;;  %v12471_v12 = vld [vmem:[#allocation13 + $0x204] ss:$8 sps:$4 sm:$0xff]  }
0x10b4   :  { %9341 = vmatpush1.bf16.msra.mxu1 %v12400_v52 }
0x10b5   :  { %9342 = vmatprep.subr.bf16.mxu1 %v12408_v11 }
0x10b8   :  { %9343 = vmatpush1.bf16.msra.mxu1 %v12406_v0  ;;  %v8871_v0 = vrot.slane %v13734_v40, %v13495_v25 }
0x10b9   :  { %9344 = vmatprep.subr.bf16.mxu1 %v12414_v2 }
0x10bc   :  { %9345 = vmatpush1.bf16.msra.mxu1 %v12412_v9  ;;  %v8885_v9 = vrot.slane %v13736_v15, %v13462_v33  ;;  %v12475_v33 = vld [vmem:[#allocation13 + $0x210] ss:$8 sps:$4 sm:$0xff]  }
0x10bd   :  { %9346 = vmatprep.subr.bf16.mxu1 %v12420_v16 }
0x10c0   :  { %9347 = vmatpush1.bf16.msra.mxu1 %v12418_v24 }
0x10c1   :  { %9348 = vmatprep.subr.bf16.mxu1 %v12426_v39 }
0x10c4   :  { %9349 = vmatpush1.bf16.msra.mxu1 %v12424_v21  ;;  %v12472_v21 = vld [vmem:[#allocation13 + $0x300] ss:$8 sps:$4 sm:$0xff]  }
0x10c5   :  { %9350 = vmatprep.subr.bf16.mxu1 %v12432_v44  ;;  %v12480_v44 = vld [vmem:[#allocation13 + $0x314] ss:$8 sps:$4 sm:$0xff]  }
0x10c8   :  { %9351 = vmatpush1.bf16.msra.mxu1 %v12430_v46  ;;  %v12483_v46 = vld [vmem:[#allocation13 + $0x224] ss:$8 sps:$4 sm:$0xff]  }
0x10c9   :  { %9352 = vmatprep.subr.bf16.mxu1 %v12438_v55  ;;  %v12498_v55 = vld [vmem:[#allocation13 + $0x344] ss:$8 sps:$4 sm:$0xff]  }
0x10cc   :  { %9353 = vmatpush1.bf16.msra.mxu1 %v12436_v31  ;;  %v12496_v31 = vld [vmem:[#allocation13 + $0x340] ss:$8 sps:$4 sm:$0xff]  }
0x10cd   :  { %9354 = vmatprep.subr.bf16.mxu1 %v12444_v43  ;;  %v12504_v43 = vld [vmem:[#allocation13 + $0x354] ss:$8 sps:$4 sm:$0xff]  }
0x10d0   :  { %9355 = vmatpush1.bf16.msra.mxu1 %v12442_v32  ;;  %v12502_v32 = vld [vmem:[#allocation13 + $0x350] ss:$8 sps:$4 sm:$0xff]  }
0x10d1   :  { %9356 = vmatprep.subr.bf16.mxu1 %v12450_v63  ;;  %v12510_v63 = vld [vmem:[#allocation13 + $0x364] ss:$8 sps:$4 sm:$0xff]  }
0x10d4   :  { %9357 = vmatpush1.bf16.msra.mxu1 %v12448_v45  ;;  %v12508_v45 = vld [vmem:[#allocation13 + $0x360] ss:$8 sps:$4 sm:$0xff]  }
0x10d5   :  { %9358 = vmatprep.subr.bf16.mxu1 %v12456_v22  ;;  %v12516_v22 = vld [vmem:[#allocation13 + $0x374] ss:$8 sps:$4 sm:$0xff]  }
0x10d8   :  { %9359 = vmatpush1.bf16.msra.mxu1 %v12454_v3  ;;  %v12514_v3 = vld [vmem:[#allocation13 + $0x370] ss:$8 sps:$4 sm:$0xff]  }
0x10d9   :  { %9360 = vmatprep.subr.bf16.mxu1 %v12462_v23  ;;  %v12520_v23 = vld [vmem:[#allocation13 + $0x380] ss:$8 sps:$4 sm:$0xff]  }
0x10dc   :  { %9361 = vmatpush1.bf16.msra.mxu1 %v12460_v35  ;;  %v12517_v35 = vld [vmem:[#allocation13 + $0x280] ss:$8 sps:$4 sm:$0xff]  }
0x10dd   :  { %9362 = vmatprep.subr.bf16.mxu1 %v12468_v6  ;;  %v12528_v6 = vld [vmem:[#allocation13 + $0x394] ss:$8 sps:$4 sm:$0xff]  }
0x10e0   :  { %9363 = vmatpush1.bf16.msra.mxu1 %v12466_v10  ;;  %v12526_v10 = vld [vmem:[#allocation13 + $0x390] ss:$8 sps:$4 sm:$0xff]  }
0x10e1   :  { %9815 = vmatprep.subr.bf16.mxu1 %v12474_v18  ;;  %v12534_v18 = vld [vmem:[#allocation13 + $0x3a4] ss:$8 sps:$4 sm:$0xff]  }
0x1139   :  { %v8854_v47 = vpop.xlane.xlu0 %8853 }
0x113a   :  { %v8855_v48 = vmul.f32 0.00390625, %v8854_v47  ;;  %v12486_v47 = vld [vmem:[#allocation13 + $0x324] ss:$8 sps:$4 sm:$0xff]  }
0x113c   :  { %v13751_v49 = vsub.f32 %v13743_v56, %v8855_v48  ;;  %v13754_v17 = vsub.f32 %v13746_v57, %v8855_v48  ;;  %v12441_v56 = vld [vmem:[#allocation11 + $0x364] ss:$16 sps:$4 sm:$0xff]   ;;  %v12439_v57 = vld [vmem:[#allocation11 + $0x360] ss:$16 sps:$4 sm:$0xff]  }
0x113d   :  { %9313 = vmatprep.subr.bf16.mxu0 %v12441_v56  ;;  %v12481_v48 = vld [vmem:[#allocation13 + $0x220] ss:$8 sps:$4 sm:$0xff]   ;;  %v12501_v56 = vld [vmem:[#allocation13 + $0x254] ss:$8 sps:$4 sm:$0xff]  }
0x113e   :  { %v8858_v50 = vmul.f32 %v13751_v49, %v13751_v49  ;;  %v8859_v54 = vmul.f32 %v13754_v17, %v13754_v17  ;;  %9314 = vmatpush1.bf16.msra.mxu0 %v12439_v57  ;;  %v12499_v57 = vld [vmem:[#allocation13 + $0x250] ss:$8 sps:$4 sm:$0xff]  }
0x113f   :  { %9315 = vmatprep.subr.bf16.mxu0 %v12447_v20  ;;  %v12507_v20 = vld [vmem:[#allocation13 + $0x264] ss:$8 sps:$4 sm:$0xff]  }
0x1140   :  { %v8860_v29 = vadd.f32 %v8859_v54, %v8858_v50  ;;  %v12492_v50 = vld [vmem:[#allocation13 + $0x334] ss:$8 sps:$4 sm:$0xff]   ;;  %v12487_v54 = vld [vmem:[#allocation13 + $0x230] ss:$8 sps:$4 sm:$0xff]  }
0x1142   :  { %8861 = vadd.xlane.f32.xlu1 %v8860_v29  ;;  %9316 = vmatpush1.bf16.msra.mxu0 %v12445_v42  ;;  %v12490_v29 = vld [vmem:[#allocation13 + $0x330] ss:$8 sps:$4 sm:$0xff]   ;;  %v12505_v42 = vld [vmem:[#allocation13 + $0x260] ss:$8 sps:$4 sm:$0xff]  }
0x1143   :  { %9317 = vmatprep.subr.bf16.mxu0 %v12453_v1  ;;  %v12513_v1 = vld [vmem:[#allocation13 + $0x274] ss:$8 sps:$4 sm:$0xff]  }
0x1146   :  { %9318 = vmatpush1.bf16.msra.mxu0 %v12451_v53  ;;  %v12511_v53 = vld [vmem:[#allocation13 + $0x270] ss:$8 sps:$4 sm:$0xff]  }
0x1147   :  { %9319 = vmatprep.subr.bf16.mxu0 %v12459_v4  ;;  %v12522_v4 = vld [vmem:[#allocation13 + $0x384] ss:$8 sps:$4 sm:$0xff]  }
0x114a   :  { %9320 = vmatpush1.bf16.msra.mxu0 %v12457_v19  ;;  %v12519_v19 = vld [vmem:[#allocation13 + $0x284] ss:$8 sps:$4 sm:$0xff]  }
0x114b   :  { %9321 = vmatprep.subr.bf16.mxu0 %v12465_v5  ;;  %v12525_v5 = vld [vmem:[#allocation13 + $0x294] ss:$8 sps:$4 sm:$0xff]  }
0x114e   :  { %9322 = vmatpush1.bf16.msra.mxu0 %v12463_v8  ;;  %v12523_v8 = vld [vmem:[#allocation13 + $0x290] ss:$8 sps:$4 sm:$0xff]  }
0x114f   :  { %9774 = vmatprep.subr.bf16.mxu0 %v12471_v12  ;;  %v12531_v12 = vld [vmem:[#allocation13 + $0x2a4] ss:$8 sps:$4 sm:$0xff]  }
0x11cf   :  { %v8862_v52 = vpop.xlane.xlu1 %8861 }
0x11d0   :  { %v8863_v28 = vmul.f32 0.00390625, %v8862_v52  ;;  %v12529_v52 = vld [vmem:[#allocation13 + $0x2a0] ss:$8 sps:$4 sm:$0xff]  }
0x11d2   :  { %v8864_v11 = vadd.f32 1e-05, %v8863_v28  ;;  %v12532_v28 = vld [vmem:[#allocation13 + $0x3a0] ss:$8 sps:$4 sm:$0xff]  }
0x11d4   :  { %12721 = vrsqrt.f32 %v8864_v11  ;;  %v12537_v11 = vld [vmem:[#allocation13 + $0x2b4] ss:$8 sps:$4 sm:$0xff]  }
0x11de   :  { %v12722_v13 = vpop.eup %12721 }
0x11df   :  { %v8866_v2 = vmul.f32 %v12722_v13, %v13751_v49  ;;  %v8867_v7 = vmul.f32 %v12722_v13, %v13754_v17  ;;  %v12484_v49 = vld [vmem:[#allocation13 + $0x320] ss:$8 sps:$4 sm:$0xff]   ;;  %v12489_v17 = vld [vmem:[#allocation13 + $0x234] ss:$8 sps:$4 sm:$0xff]   ;;  %v12538_v13 = vld [vmem:[#allocation13 + $0x3b0] ss:$8 sps:$4 sm:$0xff]  }
0x11e1   :  { %v8877_v16 = vmul.f32 %v8875_v26, %v8867_v7  ;;  %v8876_v37 = vmul.f32 %v8871_v0, %v8866_v2  ;;  %v12540_v26 = vld [vmem:[#allocation13 + $0x3b4] ss:$8 sps:$4 sm:$0xff]   ;;  %v12535_v0 = vld [vmem:[#allocation13 + $0x2b0] ss:$8 sps:$4 sm:$0xff]   ;;  %v12543_v2 = vld [vmem:[#allocation13 + $0x2c4] ss:$8 sps:$4 sm:$0xff]  }
0x11e2   :  { %v12546_v7 = vld [vmem:[#allocation13 + $0x3c4] ss:$8 sps:$4 sm:$0xff]  }
0x11e3   :  { %v13770_v24 = vadd.f32 %v8885_v9, %v8877_v16  ;;  %v13772_v38 = vadd.f32 %v8881_v27, %v8876_v37  ;;  %v12541_v9 = vld [vmem:[#allocation13 + $0x2c0] ss:$8 sps:$4 sm:$0xff]   ;;  %v12549_v16 = vld [vmem:[#allocation13 + $0x2d4] ss:$8 sps:$4 sm:$0xff]  }
0x11e4   :  { %v12544_v27 = vld [vmem:[#allocation13 + $0x3c0] ss:$8 sps:$4 sm:$0xff]   ;;  %v12552_v37 = vld [vmem:[#allocation13 + $0x3d4] ss:$8 sps:$4 sm:$0xff]  }
0x11e5   :  { %v8889_v25 = vpack.c.bf16 %v13770_v24, %v13770_v24  ;;  %v8888_v39 = vpack.c.bf16 %v13772_v38, %v13772_v38 }
0x11e7   :  { %9323 = vmatprep.mubr.bf16.mxu0 %v8889_v25  ;;  %9364 = vmatprep.mubr.bf16.mxu1 %v8889_v25  ;;  %v12547_v25 = vld [vmem:[#allocation13 + $0x2d0] ss:$8 sps:$4 sm:$0xff]  }
0x11e8   :  { %9324 = vmatmul.mubr.bf16.vlgmr.msra.gmra.mrb[152].mxu0 %v8888_v39  ;;  %9365 = vmatmul.mubr.bf16.vlgmr.msra.gmra.mrb[188].mxu1 %v8888_v39  ;;  %v12550_v39 = vld [vmem:[#allocation13 + $0x3d0] ss:$8 sps:$4 sm:$0xff]  }
0x11e9   :  { %9775 = vmatpush1.bf16.msra.mxu0 %v12469_v34  ;;  %9816 = vmatpush1.bf16.msra.mxu1 %v12472_v21  ;;  %v12555_v34 = vld [vmem:[#allocation13 + $0x2e4] ss:$8 sps:$4 sm:$0xff]  }
0x11ea   :  { %9776 = vmatprep.subr.bf16.mxu0 %v12477_v61  ;;  %9817 = vmatprep.subr.bf16.mxu1 %v12480_v44  ;;  %v12558_v21 = vld [vmem:[#allocation13 + $0x3e4] ss:$8 sps:$4 sm:$0xff]   ;;  %v12553_v61 = vld [vmem:[#allocation13 + $0x2e0] ss:$8 sps:$4 sm:$0xff]  }
0x11eb   :  { %v12556_v44 = vld [vmem:[#allocation13 + $0x3e0] ss:$8 sps:$4 sm:$0xff]  }
0x11ed   :  { %9777 = vmatpush1.bf16.msra.mxu0 %v12475_v33  ;;  %9818 = vmatpush1.bf16.msra.mxu1 %v12478_v41  ;;  %v12561_v33 = vld [vmem:[#allocation13 + $0x2f4] ss:$8 sps:$4 sm:$0xff]  }
0x11ee   :  { %9778 = vmatprep.subr.bf16.mxu0 %v12483_v46  ;;  %9819 = vmatprep.subr.bf16.mxu1 %v12486_v47  ;;  %v12564_v41 = vld [vmem:[#allocation13 + $0x3f4] ss:$8 sps:$4 sm:$0xff]   ;;  %v12559_v46 = vld [vmem:[#allocation13 + $0x2f0] ss:$8 sps:$4 sm:$0xff]  }
0x11ef   :  { %v12562_v47 = vld [vmem:[#allocation13 + $0x3f0] ss:$8 sps:$4 sm:$0xff]  }
0x11f1   :  { %9779 = vmatpush1.bf16.msra.mxu0 %v12481_v48  ;;  %9820 = vmatpush1.bf16.msra.mxu1 %v12484_v49  ;;  %v13778_v48 = vld [vmem:[#allocation17 + $0x30] sm:$0xff]  ;;  %v182_v49 = vld [vmem:[#allocation17 + $0x38] sm:$0xff] }
0x11f2   :  { %9780 = vmatprep.subr.bf16.mxu0 %v12489_v17  ;;  %9821 = vmatprep.subr.bf16.mxu1 %v12492_v50  ;;  %v8958_v17 = vrot.slane %v13734_v40, %v13433_v59  ;;  %v8966_v50 = vrot.slane %v13778_v48, %v13433_v59 }
0x11f5   :  { %9781 = vmatpush1.bf16.msra.mxu0 %v12487_v54  ;;  %9822 = vmatpush1.bf16.msra.mxu1 %v12490_v29  ;;  %v8962_v54 = vrot.slane %v13736_v15, %v13433_v59  ;;  %v8970_v29 = vrot.slane %v182_v49, %v13433_v59  ;;  %v12580_v49 = vld [vmem:[#allocation14 + $0x78] ss:$12 sps:$4 sm:$0xff]  }
0x11f6   :  { %9782 = vmatprep.subr.bf16.mxu0 %v12495_v30  ;;  %9823 = vmatprep.subr.bf16.mxu1 %v12498_v55 }
0x11f9   :  { %9783 = vmatpush1.bf16.msra.mxu0 %v12493_v36  ;;  %9824 = vmatpush1.bf16.msra.mxu1 %v12496_v31 }
0x11fa   :  { %9784 = vmatprep.subr.bf16.mxu0 %v12501_v56  ;;  %9825 = vmatprep.subr.bf16.mxu1 %v12504_v43 }
0x11fd   :  { %9785 = vmatpush1.bf16.msra.mxu0 %v12499_v57  ;;  %9826 = vmatpush1.bf16.msra.mxu1 %v12502_v32 }
0x11fe   :  { %9786 = vmatprep.subr.bf16.mxu0 %v12507_v20  ;;  %9827 = vmatprep.subr.bf16.mxu1 %v12510_v63 }
0x1201   :  { %9787 = vmatpush1.bf16.msra.mxu0 %v12505_v42  ;;  %9828 = vmatpush1.bf16.msra.mxu1 %v12508_v45 }
0x1202   :  { %9788 = vmatprep.subr.bf16.mxu0 %v12513_v1  ;;  %9829 = vmatprep.subr.bf16.mxu1 %v12516_v22 }
0x1205   :  { %9789 = vmatpush1.bf16.msra.mxu0 %v12511_v53  ;;  %9830 = vmatpush1.bf16.msra.mxu1 %v12514_v3 }
0x1206   :  { %9790 = vmatprep.subr.bf16.mxu0 %v12519_v19  ;;  %9831 = vmatprep.subr.bf16.mxu1 %v12522_v4 }
0x1209   :  { %9791 = vmatpush1.bf16.msra.mxu0 %v12517_v35  ;;  %9832 = vmatpush1.bf16.msra.mxu1 %v12520_v23  ;;  %v9449_v23 = vrot.slane %v13734_v40, %v13486_v58 }
0x120a   :  { %9792 = vmatprep.subr.bf16.mxu0 %v12525_v5  ;;  %9833 = vmatprep.subr.bf16.mxu1 %v12528_v6  ;;  %v9453_v5 = vrot.slane %v13736_v15, %v13486_v58  ;;  %v12567_v58 = vld [vmem:[#allocation14 + $0x4] ss:$12 sps:$4 sm:$0xff]  }
0x120d   :  { %9793 = vmatpush1.bf16.msra.mxu0 %v12523_v8  ;;  %9834 = vmatpush1.bf16.msra.mxu1 %v12526_v10 }
0x120e   :  { %9794 = vmatprep.subr.bf16.mxu0 %v12531_v12  ;;  %9835 = vmatprep.subr.bf16.mxu1 %v12534_v18 }
0x1211   :  { %9795 = vmatpush1.bf16.msra.mxu0 %v12529_v52  ;;  %9836 = vmatpush1.bf16.msra.mxu1 %v12532_v28 }
0x1212   :  { %9796 = vmatprep.subr.bf16.mxu0 %v12537_v11  ;;  %9837 = vmatprep.subr.bf16.mxu1 %v12540_v26 }
0x1215   :  { %9797 = vmatpush1.bf16.msra.mxu0 %v12535_v0  ;;  %9838 = vmatpush1.bf16.msra.mxu1 %v12538_v13 }
0x1216   :  { %9798 = vmatprep.subr.bf16.mxu0 %v12543_v2  ;;  %9839 = vmatprep.subr.bf16.mxu1 %v12546_v7 }
0x1219   :  { %9799 = vmatpush1.bf16.msra.mxu0 %v12541_v9  ;;  %9840 = vmatpush1.bf16.msra.mxu1 %v12544_v27 }
0x121a   :  { %9800 = vmatprep.subr.bf16.mxu0 %v12549_v16  ;;  %9841 = vmatprep.subr.bf16.mxu1 %v12552_v37  ;;  %v12565_v16 = vld [vmem:[#allocation14] ss:$12 sps:$4 sm:$0xff]   ;;  %v12570_v37 = vld [vmem:[#allocation14 + $0x1c] ss:$12 sps:$4 sm:$0xff]  }
0x121d   :  { %9801 = vmatpush1.bf16.msra.mxu0 %v12547_v25  ;;  %9842 = vmatpush1.bf16.msra.mxu1 %v12550_v39  ;;  %v12568_v25 = vld [vmem:[#allocation14 + $0x18] ss:$12 sps:$4 sm:$0xff]   ;;  %v12573_v39 = vld [vmem:[#allocation14 + $0x34] ss:$12 sps:$4 sm:$0xff]  }
0x121e   :  { %9802 = vmatprep.subr.bf16.mxu0 %v12555_v34  ;;  %9843 = vmatprep.subr.bf16.mxu1 %v12558_v21  ;;  %v12592_v34 = vld [vmem:[#allocation14 + $0xc8] ss:$12 sps:$4 sm:$0xff]  }
0x121f   :  { %v12593_v21 = vld [vmem:[#allocation14 + $0x8] ss:$12 sps:$4 sm:$0xff]  }
0x1221   :  { %9803 = vmatpush1.bf16.msra.mxu0 %v12553_v61  ;;  %9844 = vmatpush1.bf16.msra.mxu1 %v12556_v44  ;;  %v12571_v61 = vld [vmem:[#allocation14 + $0x30] ss:$12 sps:$4 sm:$0xff]   ;;  %v12597_v44 = vld [vmem:[#allocation14 + $0xe0] ss:$12 sps:$4 sm:$0xff]  }
0x1222   :  { %9804 = vmatprep.subr.bf16.mxu0 %v12561_v33  ;;  %9845 = vmatprep.subr.bf16.mxu1 %v12564_v41  ;;  %v12576_v33 = vld [vmem:[#allocation14 + $0x4c] ss:$12 sps:$4 sm:$0xff]   ;;  %v12579_v41 = vld [vmem:[#allocation14 + $0x64] ss:$12 sps:$4 sm:$0xff]  }
0x1225   :  { %9805 = vmatpush1.bf16.msra.mxu0 %v12559_v46  ;;  %9846 = vmatpush1.bf16.msra.mxu1 %v12562_v47  ;;  %v12577_v46 = vld [vmem:[#allocation14 + $0x60] ss:$12 sps:$4 sm:$0xff]   ;;  %v12582_v47 = vld [vmem:[#allocation14 + $0x7c] ss:$12 sps:$4 sm:$0xff]  }
0x1226   :  { %10228 = vmatprep.subr.bf16.mxu0 %v12567_v58  ;;  %11437 = vmatprep.subr.bf16.mxu1 %v12592_v34 }
0x12bb   :  { %v9325_v30 = vpop.f32.mrb[152].mxu0  ;;  %v9366_v55 = vpop.f32.mrb[188].mxu1 }
0x12bc   :  { %v9326_v36 = vadd.f32 %v9325_v30, %v8958_v17  ;;  %v9367_v31 = vadd.f32 %v9366_v55, %v8966_v50  ;;  %v9327_v56 = vpop.f32.mrb[153].mxu0  ;;  %v9368_v43 = vpop.f32.mrb[189].mxu1  ;;  %v12585_v17 = vld [vmem:[#allocation14 + $0x94] ss:$12 sps:$4 sm:$0xff]   ;;  %v12583_v50 = vld [vmem:[#allocation14 + $0x90] ss:$12 sps:$4 sm:$0xff]  }
0x12bd   :  { %v9328_v57 = vadd.f32 %v9327_v56, %v8962_v54  ;;  %v9369_v32 = vadd.f32 %v9368_v43, %v8970_v29  ;;  %v9329_v20 = vpop.f32.mrb[154].mxu0  ;;  %v9370_v63 = vpop.f32.mrb[190].mxu1  ;;  %v12588_v54 = vld [vmem:[#allocation14 + $0xac] ss:$12 sps:$4 sm:$0xff]   ;;  %v12586_v29 = vld [vmem:[#allocation14 + $0xa8] ss:$12 sps:$4 sm:$0xff]  }
0x12be   :  { %v9373_v42 = vmax.f32 %v9326_v36, 0.0  ;;  %v9375_v45 = vmax.f32 %v9367_v31, 0.0  ;;  %v9330_v1 = vpop.f32.mrb[155].mxu0  ;;  %v9371_v22 = vpop.f32.mrb[191].mxu1  ;;  %v12591_v30 = vld [vmem:[#allocation14 + $0xc4] ss:$12 sps:$4 sm:$0xff]  }
0x12bf   :  { %v9374_v53 = vmax.f32 %v9328_v57, 0.0  ;;  %v9376_v3 = vmax.f32 %v9369_v32, 0.0  ;;  %v12589_v55 = vld [vmem:[#allocation14 + $0xc0] ss:$12 sps:$4 sm:$0xff]   ;;  %v12596_v36 = vld [vmem:[#allocation14 + $0xdc] ss:$12 sps:$4 sm:$0xff]  }
0x12c0   :  { %v9377_v35 = vpack.c.bf16 %v9373_v42, %v9373_v42  ;;  %v9379_v59 = vpack.c.bf16 %v9375_v45, %v9375_v45  ;;  %v12594_v31 = vld [vmem:[#allocation14 + $0xd8] ss:$12 sps:$4 sm:$0xff]   ;;  %v12601_v45 = vld [vmem:[#allocation14 + $0xf4] ss:$12 sps:$4 sm:$0xff]   ;;  %v12599_v22 = vld [vmem:[#allocation14 + $0xf0] ss:$12 sps:$4 sm:$0xff]  }
0x12c1   :  { %v9378_v19 = vpack.c.bf16 %v9374_v53, %v9374_v53  ;;  %v9380_v4 = vpack.c.bf16 %v9376_v3, %v9376_v3  ;;  %v12602_v1 = vld [vmem:[#allocation14 + $0xf8] ss:$12 sps:$4 sm:$0xff]  }
0x12c2   :  { %v12603_v53 = vld [vmem:[#allocation14 + $0x38] ss:$12 sps:$4 sm:$0xff]  }
0x12c3   :  { %9806 = vmatprep.mubr.bf16.mxu0 %v9378_v19  ;;  %9847 = vmatprep.mubr.bf16.mxu1 %v9380_v4  ;;  %v12606_v3 = vld [vmem:[#allocation14 + $0x10c] ss:$12 sps:$4 sm:$0xff]   ;;  %v12607_v19 = vld [vmem:[#allocation14 + $0x110] ss:$12 sps:$4 sm:$0xff]   ;;  %v12604_v4 = vld [vmem:[#allocation14 + $0x108] ss:$12 sps:$4 sm:$0xff]  }
0x12c4   :  { %9807 = vmatmul.mubr.bf16.vlgmr.msra.gmra.mrb[156].mxu0 %v9377_v35  ;;  %9848 = vmatmul.mubr.bf16.vlgmr.msra.gmra.mrb[192].mxu1 %v9379_v59  ;;  %v12608_v35 = vld [vmem:[#allocation14 + $0x50] ss:$12 sps:$4 sm:$0xff]  }
0x12c5   :  { %10229 = vmatpush1.bf16.msra.mxu0 %v12565_v16  ;;  %11438 = vmatpush3.bf16.msra.mxu1 %v12593_v21  ;;  %v12611_v59 = vld [vmem:[#allocation14 + $0x124] ss:$12 sps:$4 sm:$0xff]  }
0x12c6   :  { %10230 = vmatprep.subr.bf16.mxu0 %v12570_v37  ;;  %11439 = vmatprep.subr.bf16.mxu1 %v12597_v44  ;;  %v9881_v37 = vrot.slane %v13736_v15, %v13465_v14  ;;  %v9887_v44 = vrot.slane %v13734_v40, %v13504_v51 }
0x12c9   :  { %10231 = vmatpush1.bf16.msra.mxu0 %v12568_v25  ;;  %v9877_v25 = vrot.slane %v13734_v40, %v13465_v14  ;;  %v12632_v14 = vld [vmem:[#allocation16 + $0x48] sm:$0xff]   ;;  %v12636_v40 = vld [vmem:[#allocation16 + $0x10] sm:$0xff]  }
0x12ca   :  { %10232 = vmatprep.subr.bf16.mxu0 %v12573_v39 }
0x12cd   :  { %10233 = vmatpush1.bf16.msra.mxu0 %v12571_v61  ;;  %v9891_v61 = vrot.slane %v13736_v15, %v13504_v51  ;;  %v12634_v15 = vld [vmem:[#allocation16 + $0x88] sm:$0xff]   ;;  %v12635_v51 = vld [vmem:[#allocation16 + $0x50] sm:$0xff]  }
0x12ce   :  { %10234 = vmatprep.subr.bf16.mxu0 %v12576_v33 }
0x1397   :  { %v9808_v6 = vpop.f32.mrb[156].mxu0  ;;  %v9849_v8 = vpop.f32.mrb[192].mxu1 }
0x1398   :  { %v9809_v10 = vadd.f32 %v9808_v6, %v9449_v23  ;;  %v9810_v12 = vpop.f32.mrb[157].mxu0  ;;  %v9851_v18 = vpop.f32.mrb[193].mxu1  ;;  %v12612_v23 = vld [vmem:[#allocation14 + $0x128] ss:$12 sps:$4 sm:$0xff]  }
0x1399   :  { %v9811_v52 = vadd.f32 %v9810_v12, %v9453_v5  ;;  %v9812_v28 = vpop.f32.mrb[158].mxu0  ;;  %v9853_v11 = vpop.f32.mrb[194].mxu1  ;;  %v12609_v5 = vld [vmem:[#allocation14 + $0x120] ss:$12 sps:$4 sm:$0xff]   ;;  %v12613_v6 = vld [vmem:[#allocation14 + $0x68] ss:$12 sps:$4 sm:$0xff]  }
0x139a   :  { %v9850_v26 = vadd.f32 %v9849_v8, %v9809_v10  ;;  %v9813_v0 = vpop.f32.mrb[159].mxu0  ;;  %v9854_v13 = vpop.f32.mrb[195].mxu1  ;;  %v12616_v8 = vld [vmem:[#allocation14 + $0x13c] ss:$12 sps:$4 sm:$0xff]   ;;  %v12617_v10 = vld [vmem:[#allocation14 + $0x140] ss:$12 sps:$4 sm:$0xff]  }
0x139b   :  { %v9852_v2 = vadd.f32 %v9851_v18, %v9811_v52  ;;  %v12614_v12 = vld [vmem:[#allocation14 + $0x138] ss:$12 sps:$4 sm:$0xff]   ;;  %v12618_v18 = vld [vmem:[#allocation14 + $0x80] ss:$12 sps:$4 sm:$0xff]   ;;  %v12619_v52 = vld [vmem:[#allocation14 + $0x150] ss:$12 sps:$4 sm:$0xff]  }
0x139c   :  { %v9856_v7 = vadd.f32 %v9850_v26, %v13772_v38  ;;  %v12574_v38 = vld [vmem:[#allocation14 + $0x48] ss:$12 sps:$4 sm:$0xff]   ;;  %v12622_v11 = vld [vmem:[#allocation14 + $0x158] ss:$12 sps:$4 sm:$0xff]   ;;  %v12627_v13 = vld [vmem:[#allocation14 + $0x170] ss:$12 sps:$4 sm:$0xff]  }
0x139d   :  { %v9857_v9 = vadd.f32 %v9852_v2, %v13770_v24  ;;  %v12598_v24 = vld [vmem:[#allocation14 + $0x20] ss:$12 sps:$4 sm:$0xff]   ;;  %10235 = vmatpush1.bf16.msra.mxu0 %v12574_v38  ;;  %v12623_v26 = vld [vmem:[#allocation14 + $0x98] ss:$12 sps:$4 sm:$0xff]   ;;  %v12624_v2 = vld [vmem:[#allocation14 + $0x168] ss:$12 sps:$4 sm:$0xff]  }
0x139e   :  { %11440 = vmatpush3.bf16.msra.mxu1 %v12598_v24  ;;  %10236 = vmatprep.subr.bf16.mxu0 %v12579_v41  ;;  %v12621_v28 = vld [vmem:[#allocation14 + $0x154] ss:$12 sps:$4 sm:$0xff]   ;;  %v12626_v0 = vld [vmem:[#allocation14 + $0x16c] ss:$12 sps:$4 sm:$0xff]  }
0x139f   :  { %v9858_v27 = vadd.f32 %v9857_v9, %v9856_v7  ;;  %11441 = vmatprep.subr.bf16.mxu1 %v12602_v1  ;;  %v12651_v1 = vld [vmem:[#allocation16 + $0x38] sm:$0xff]  }
0x13a1   :  { %9859 = vadd.xlane.f32.xlu0 %v9858_v27  ;;  %10237 = vmatpush1.bf16.msra.mxu0 %v12577_v46 }
0x13a2   :  { %10238 = vmatprep.subr.bf16.mxu0 %v12582_v47  ;;  %11442 = vmatpush3.bf16.msra.mxu1 %v12603_v53  ;;  %v12727_v53 = vld [vmem:[#allocation17 + $0x20] sm:$0xff] }
0x13a3   :  { %11443 = vmatprep.subr.bf16.mxu1 %v12607_v19  ;;  %v12728_v19 = vld [vmem:[#allocation17 + $0x28] sm:$0xff] }
0x13a5   :  { %10239 = vmatpush1.bf16.msra.mxu0 %v12580_v49  ;;  %v12630_v49 = vld [vmem:[#allocation16] sm:$0xff]  }
0x13a6   :  { %10240 = vmatprep.subr.bf16.mxu0 %v12585_v17  ;;  %11444 = vmatpush3.bf16.msra.mxu1 %v12608_v35  ;;  %v12631_v17 = vld [vmem:[#allocation16 + $0x80] sm:$0xff]  }
0x13a7   :  { %11445 = vmatprep.subr.bf16.mxu1 %v12612_v23  ;;  %v9971_v23 = vrot.slane %v13778_v48, %v13507_v60 }
0x13a9   :  { %10241 = vmatpush1.bf16.msra.mxu0 %v12583_v50  ;;  %v12633_v50 = vld [vmem:[#allocation16 + $0x8] sm:$0xff]  }
0x13aa   :  { %10242 = vmatprep.subr.bf16.mxu0 %v12588_v54  ;;  %11446 = vmatpush3.bf16.msra.mxu1 %v12613_v6  ;;  %v12637_v54 = vld [vmem:[#allocation16 + $0x90] sm:$0xff]  }
0x13ab   :  { %11447 = vmatprep.subr.bf16.mxu1 %v12617_v10 }
0x13ad   :  { %10243 = vmatpush1.bf16.msra.mxu0 %v12586_v29  ;;  %v12638_v29 = vld [vmem:[#allocation16 + $0x58] sm:$0xff]  }
0x13ae   :  { %10244 = vmatprep.subr.bf16.mxu0 %v12591_v30  ;;  %11448 = vmatpush3.bf16.msra.mxu1 %v12618_v18  ;;  %v12639_v30 = vld [vmem:[#allocation16 + $0x18] sm:$0xff]  }
0x13af   :  { %11449 = vmatprep.subr.bf16.mxu1 %v12622_v11 }
0x13b1   :  { %10245 = vmatpush1.bf16.msra.mxu0 %v12589_v55  ;;  %v12640_v55 = vld [vmem:[#allocation16 + $0x98] sm:$0xff]  }
0x13b2   :  { %10246 = vmatprep.subr.bf16.mxu0 %v12596_v36  ;;  %11450 = vmatpush3.bf16.msra.mxu1 %v12623_v26  ;;  %v12641_v36 = vld [vmem:[#allocation16 + $0x60] sm:$0xff]  }
0x13b3   :  { %11451 = vmatprep.subr.bf16.mxu1 %v12627_v13 }
0x13b5   :  { %10247 = vmatpush1.bf16.msra.mxu0 %v12594_v31  ;;  %v12642_v31 = vld [vmem:[#allocation16 + $0x20] sm:$0xff]  }
0x13b6   :  { %10248 = vmatprep.subr.bf16.mxu0 %v12601_v45  ;;  %v12650_v45 = vld [vmem:[#allocation16 + $0x78] sm:$0xff]  }
0x13b9   :  { %10249 = vmatpush1.bf16.msra.mxu0 %v12599_v22  ;;  %v12652_v22 = vld [vmem:[#allocation16 + $0xb8] sm:$0xff]  }
0x13ba   :  { %10250 = vmatprep.subr.bf16.mxu0 %v12606_v3  ;;  %v9963_v3 = vrot.slane %v12727_v53, %v13507_v60 }
0x13bd   :  { %10251 = vmatpush1.bf16.msra.mxu0 %v12604_v4  ;;  %v9967_v4 = vrot.slane %v12728_v19, %v13507_v60 }
0x13be   :  { %10252 = vmatprep.subr.bf16.mxu0 %v12611_v59 }
0x13c1   :  { %10253 = vmatpush1.bf16.msra.mxu0 %v12609_v5 }
0x13c2   :  { %10254 = vmatprep.subr.bf16.mxu0 %v12616_v8 }
0x13c5   :  { %10255 = vmatpush1.bf16.msra.mxu0 %v12614_v12 }
0x13c6   :  { %10256 = vmatprep.subr.bf16.mxu0 %v12621_v28 }
0x13c9   :  { %10257 = vmatpush1.bf16.msra.mxu0 %v12619_v52 }
0x13ca   :  { %10258 = vmatprep.subr.bf16.mxu0 %v12626_v0 }
0x13cd   :  { %10259 = vmatpush1.bf16.msra.mxu0 %v12624_v2 }
0x13ce   :  { %11650 = vmatprep.subr.bf16.mxu0 %v13006_v62 }
0x142e   :  { %v9860_v56 = vpop.xlane.xlu0 %9859 }
0x142f   :  { %v9861_v43 = vmul.f32 0.00390625, %v9860_v56  ;;  %v12643_v56 = vld [vmem:[#allocation16 + $0xa0] sm:$0xff]  }
0x1431   :  { %v13793_v57 = vsub.f32 %v9856_v7, %v9861_v43  ;;  %v13795_v32 = vsub.f32 %v9857_v9, %v9861_v43  ;;  %v12628_v7 = vld [vmem:[#allocation14 + $0xb0] ss:$12 sps:$4 sm:$0xff]   ;;  %v12629_v9 = vld [vmem:[#allocation16 + $0x40] sm:$0xff]   ;;  %v12644_v43 = vld [vmem:[#allocation16 + $0x68] sm:$0xff]  }
0x1432   :  { %11452 = vmatpush3.bf16.msra.mxu1 %v12628_v7 }
0x1433   :  { %v9864_v20 = vmul.f32 %v13793_v57, %v13793_v57  ;;  %v9865_v63 = vmul.f32 %v13795_v32, %v13795_v32  ;;  %11459 = vmatprep.subr.bf16.mxu1 %v12629_v9 }
0x1435   :  { %v9866_v42 = vadd.f32 %v9865_v63, %v9864_v20  ;;  %v12647_v20 = vld [vmem:[#allocation16 + $0x70] sm:$0xff]  }
0x1436   :  { %v12648_v63 = vld [vmem:[#allocation16 + $0x30] sm:$0xff]  }
0x1437   :  { %9867 = vadd.xlane.f32.xlu1 %v9866_v42  ;;  %v12649_v42 = vld [vmem:[#allocation16 + $0xb0] sm:$0xff]  }
0x14c4   :  { %v9868_v27 = vpop.xlane.xlu1 %9867 }
0x14c5   :  { %v9869_v16 = vmul.f32 0.00390625, %v9868_v27  ;;  %v11348_v27 = vld [vmem:[#allocation17 + $0x40] ss:$0 sm:$0xff] }
0x14c7   :  { %v9870_v58 = vadd.f32 1e-05, %v9869_v16 }
0x14c9   :  { %12723 = vrsqrt.f32 %v9870_v58 }
0x14d3   :  { %v12724_v39 = vpop.eup %12723 }
0x14d4   :  { %v9872_v34 = vmul.f32 %v12724_v39, %v13793_v57  ;;  %v9873_v21 = vmul.f32 %v12724_v39, %v13795_v32  ;;  %v12645_v57 = vld [vmem:[#allocation16 + $0x28] sm:$0xff]  }
0x14d5   :  { %v12646_v32 = vld [vmem:[#allocation16 + $0xa8] sm:$0xff]  }
0x14d6   :  { %v9883_v33 = vmul.f32 %v9881_v37, %v9873_v21  ;;  %v9882_v24 = vmul.f32 %v9877_v25, %v9872_v34 }
0x14d8   :  { %v9893_v38 = vadd.f32 %v9891_v61, %v9883_v33  ;;  %v9892_v41 = vadd.f32 %v9887_v44, %v9882_v24 }
0x14da   :  { %v9895_v46 = vpack.c.bf16 %v9893_v38, %v9893_v38  ;;  %v9894_v47 = vpack.c.bf16 %v9892_v41, %v9892_v41 }
0x14dc   :  { %10260 = vmatprep.mubr.bf16.mxu0 %v9895_v46  ;;  %10301 = vmatprep.mubr.bf16.mxu1 %v9895_v46 }
0x14dd   :  { %10261 = vmatmul.mubr.bf16.vlgmr.msra.gmra.mrb[160].mxu0 %v9894_v47  ;;  %10302 = vmatmul.mubr.bf16.vlgmr.msra.gmra.mrb[196].mxu1 %v9894_v47 }
0x14de   :  { %11460 = vmatpush3.bf16.msra.mxu1 %v12630_v49  ;;  %11651 = vmatpush3.bf16.msra.mxu0 %v12631_v17 }
0x14df   :  { %11461 = vmatprep.subr.bf16.mxu1 %v12632_v14  ;;  %11652 = vmatprep.subr.bf16.mxu0 %v13006_v62 }
0x14e0   :  { %11666 = vmatprep.mubr.msk.bf16.mxu0 %vm13007_vm0, %v13006_v62 }
0x14e2   :  { %11462 = vmatpush3.bf16.msra.mxu1 %v12633_v50  ;;  %11653 = vmatpush3.bf16.msra.mxu0 %v12634_v15 }
0x14e3   :  { %11463 = vmatprep.subr.bf16.mxu1 %v12635_v51  ;;  %11654 = vmatprep.subr.bf16.mxu0 %v13006_v62 }
0x14e6   :  { %11464 = vmatpush3.bf16.msra.mxu1 %v12636_v40  ;;  %11655 = vmatpush3.bf16.msra.mxu0 %v12637_v54 }
0x14e7   :  { %11465 = vmatprep.subr.bf16.mxu1 %v12638_v29  ;;  %11656 = vmatprep.subr.bf16.mxu0 %v13006_v62 }
0x14ea   :  { %11466 = vmatpush3.bf16.msra.mxu1 %v12639_v30  ;;  %11657 = vmatpush3.bf16.msra.mxu0 %v12640_v55 }
0x14eb   :  { %11467 = vmatprep.subr.bf16.mxu1 %v12641_v36  ;;  %11658 = vmatprep.subr.bf16.mxu0 %v13006_v62 }
0x14ee   :  { %11468 = vmatpush3.bf16.msra.mxu1 %v12642_v31  ;;  %11659 = vmatpush3.bf16.msra.mxu0 %v12643_v56 }
0x14ef   :  { %11469 = vmatprep.subr.bf16.mxu1 %v12644_v43  ;;  %11660 = vmatprep.subr.bf16.mxu0 %v13006_v62 }
0x14f2   :  { %11470 = vmatpush3.bf16.msra.mxu1 %v12645_v57  ;;  %11661 = vmatpush3.bf16.msra.mxu0 %v12646_v32 }
0x14f3   :  { %11662 = vmatprep.subr.bf16.mxu0 %v13006_v62  ;;  %11471 = vmatprep.subr.bf16.mxu1 %v12647_v20 }
0x14f6   :  { %11472 = vmatpush3.bf16.msra.mxu1 %v12648_v63  ;;  %11663 = vmatpush3.bf16.msra.mxu0 %v12649_v42 }
0x14f7   :  { %11664 = vmatprep.subr.bf16.mxu0 %v13006_v62  ;;  %11473 = vmatprep.subr.bf16.mxu1 %v12650_v45 }
0x14fa   :  { %11474 = vmatpush3.bf16.msra.mxu1 %v12651_v1  ;;  %11665 = vmatpush3.bf16.msra.mxu0 %v12652_v22 }
0x15b0   :  { %v10262_v35 = vpop.f32.mrb[160].mxu0  ;;  %v11453_v59 = vpop.f32.mrb[196].mxu1 }
0x15b1   :  { %v10263_v5 = vadd.f32 %v10262_v35, %v9963_v3  ;;  %v10264_v6 = vpop.f32.mrb[161].mxu0  ;;  %v11454_v8 = vpop.f32.mrb[197].mxu1 }
0x15b2   :  { %v10265_v10 = vadd.f32 %v10264_v6, %v9967_v4  ;;  %v11455_v62 = vadd.f32 %v11454_v8, %v11453_v59  ;;  %v10266_v12 = vpop.f32.mrb[162].mxu0  ;;  %v11456_v18 = vpop.f32.mrb[198].mxu1 }
0x15b3   :  { %v10309_v52 = vmax.f32 %v10263_v5, 0.0  ;;  %v10267_v28 = vpop.f32.mrb[163].mxu0  ;;  %v11457_v11 = vpop.f32.mrb[199].mxu1 }
0x15b4   :  { %v10310_v26 = vmax.f32 %v10265_v10, 0.0  ;;  %v10304_v0 = vadd.f32 %v11455_v62, %v9971_v23 }
0x15b5   :  { %v10312_v7 = vpack.c.bf16 %v10309_v52, %v10309_v52 }
0x15b6   :  { %v10313_v13 = vpack.c.bf16 %v10310_v26, %v10310_v26  ;;  %v10311_v2 = vmax.f32 %v10304_v0, 0.0 }
0x15b8   :  { %v10314_v9 = vpack.c.bf16 %v10311_v2, %v10311_v2  ;;  %10543 = vmatprep.mubr.bf16.mxu1 %v10313_v13 }
0x15b9   :  { %10544 = vmatmul.mubr.bf16.vlgmr.msra.gmra.mrb[200].mxu1 %v10312_v7 }
0x15ba   :  { %11667 = vmatmul.mubr.bf16.vlgmr.msra.gmra.mrb[164].mxu0 %v10314_v9 }
0x168c   :  { %v11475_v60 = vpop.f32.mrb[200].mxu1 }
0x168d   :  { %v11476_v48 = vpop.f32.mrb[201].mxu1  ;;  %v10585_v16 = vpop.f32.mrb[164].mxu0 }
0x168e   :  { %v11477_v58 = vadd.f32 %v11476_v48, %v11475_v60  ;;  %v11478_v37 = vpop.f32.mrb[202].mxu1  ;;  %v11668_v25 = vpop.f32.mrb[165].mxu0 }
0x168f   :  { %v11479_v39 = vpop.f32.mrb[203].mxu1  ;;  %v10588_v34 = vpop.f32.mrb[166].mxu0 }
0x1690   :  { %v10546_v21 = vadd.f32 %v11477_v58, %v11348_v27  ;;  %v11669_v61 = vpop.f32.mrb[167].mxu0 }
0x1692   :  { %v10586_v44 = vadd.f32 %v10585_v16, %v10546_v21 }
0x1694   :  { %10591 = vst [vmem:[#allocation19] sm:$0xff] %v10586_v44 }
0x1695   :  { %12960 = shalt.err (!%p12957_p0)
}
0x1696   :  { %s12961_s3 = scalar_lea.hbm %s13847_s10, 128 }
0x1697   :  { %p12962_p1 = scmp.ne.s32.totalorder %s13847_s10, %s12961_s3  ;;  %p12965_p2 = scmp.lt.u32.totalorder %s12961_s3, %s13847_s10 }
0x1699   :  { %p12967_p3 = pnand %p12965_p2, %p12962_p1 }
0x169b   :  { %12970 = shalt.err (!%p12967_p3)
}
0x169c   :  { %10601 = dma.vmem_to_hbm [thread:$0]  %s10599_s0, 128, %s13847_s10, [#allocation4]  }
0x169d   :  { %12983 = dma.done.wait [#allocation4], 128  }
0x169e   :  { %12984 = vsyncadd [#allocation4], 4294967168 }
0x169f   :  { %10605 = vsyncpa [#allocation3], 1 }
0x16a0   :  { %10606 = vsyncpa [#allocation6], 1 }
0x16a1   :  { %10607 = vsyncpa [#allocation9], 1 }
0x16a2   :  { %10608 = vsyncpa [#allocation12], 1 }
0x16a3   :  { %10609 = vsyncpa [#allocation15], 1 }
0x16a4   :  { %10610 = vsyncpa [#allocation18], 1 }
0x16a5   :  { %10611 = vsyncpa [#allocation4], 1 }

</bundles_post_ra>
